<compile_context>
chip_gen: v7x
topology: tpu7x:2x2x1
jax: 0.10.0
libtpu: 0.0.40
codegen_flags: <defaults>
</compile_context>

<pallas_src>
import jax
import jax.numpy as jnp
from jax.experimental import pallas as pl
from jax.experimental.pallas import tpu as pltpu


def _round_up(x: int, m: int) -> int:
    return (x + m - 1) // m * m


# ----------------------------------------------------------------------------
# Pallas kernel: T GRU time steps per grid invocation (recurrent part only)
# ----------------------------------------------------------------------------
def _gru_kernel(gi_ref, wh_ref, bhn_ref, out_ref, h_ref):
    """gi_ref : (T, Bt, 3*Hp) stream dtype. Precomputed
                x @ W_ih^T + b_ih + [b_hh_r | b_hh_z | 0], gate order [r|z|n].
       wh_ref : (Hp, 3*Hp) stream dtype. W_hh^T, padded, gate-blocked.
       bhn_ref: (1, Hp) f32. b_hh of the n gate (must stay inside r*(...)).
       out_ref: (T, Bt, Hp) f32. hs chunk for this (batch tile, time chunk).
       h_ref  : (Bt, Hp) f32 VMEM scratch carrying h across time chunks.
    """
    # Time axis is the last grid dim: reset the carried state at chunk 0
    # (re-fires at the start of each batch tile, which is what we want).
    @pl.when(pl.program_id(1) == 0)
    def _():
        h_ref[...] = jnp.zeros_like(h_ref)        # h_0 = 0 (PyTorch default)

    Hp = h_ref.shape[-1]
    T = gi_ref.shape[0]
    bhn = bhn_ref[...]                            # (1, Hp) f32

    h = h_ref[...]
    # Static unroll over the chunk (full scheduler visibility).  For much
    # larger T switch to lax.fori_loop(..., unroll=2/4) if spills show up.
    for t in range(T):
        gi = gi_ref[t].astype(jnp.float32)                        # (Bt, 3*Hp)
        # Re-read W_hh^T from VMEM each step instead of holding ~48 vregs live
        # across the whole unrolled chunk (vld slots are not the bottleneck).
        gh = jnp.dot(h.astype(wh_ref.dtype), wh_ref[...],
                     preferred_element_type=jnp.float32)          # (Bt, 3*Hp)
        # r|z with a single sigmoid over the contiguous first 2*Hp lanes.
        rz = jax.nn.sigmoid(gi[:, :2 * Hp] + gh[:, :2 * Hp])
        r = rz[:, :Hp]
        z = rz[:, Hp:]
        n = jnp.tanh(gi[:, 2 * Hp:] + r * (gh[:, 2 * Hp:] + bhn))
        h = n + z * (h - n)                    # == (1-z)*n + z*h, 1 fewer mul
        out_ref[t] = h.astype(out_ref.dtype)   # lane-dense (Hp % 128 == 0)
    h_ref[...] = h
    # TODO(synk): if the MXU-push slot saturates at large Hp, pin W_hh^T in
    # MXU weight registers via pltpu.matmul_push_rhs / matmul_acc_lhs.


# ----------------------------------------------------------------------------
# Wrapper: hoisted input projection (padded layout) + Pallas recurrence
# ----------------------------------------------------------------------------
def gru_forward_pallas(emb, w_ih, b_ih, w_hh, b_hh, *,
                       time_chunk=16, stream_dtype=jnp.bfloat16):
    """emb: (S, B, E) f32 -> hs: (S, B, H) f32 (PyTorch nn.GRU, h_0 = 0)."""
    S, B, E = emb.shape
    H = w_hh.shape[1]

    # ---- TPU-friendly padded sizes ---------------------------------------
    Hp = _round_up(max(H, 128), 128)             # lane-aligned gate blocks
    b_align = 16 if jnp.dtype(stream_dtype).itemsize < 4 else 8  # sublane pack
    B8 = _round_up(max(B, b_align), b_align)
    if B8 >= 2 * b_align:
        # >= 2 batch tiles so v7x's second TensorCore has work; <= 256 rows to
        # fill (not overflow) v6e's 256-row MXU and bound chunk VMEM.
        Bt = min(256, _round_up(B8 // 2, b_align))
    else:
        Bt = B8
    Bp = _round_up(B8, Bt)
    T = time_chunk
    Sp = _round_up(S, T)

    # ---- input-projection weights/biases padded to gate-blocked layout ----
    w_ih_p = jnp.zeros((3, Hp, E), jnp.float32).at[:, :H, :].set(
        w_ih.reshape(3, H, E))
    # Fold b_ih (all gates) and b_hh (r, z gates only) into the gi bias.
    gate_mask = jnp.array([1.0, 1.0, 0.0], jnp.float32)[:, None]
    b_p = jnp.zeros((3, Hp), jnp.float32).at[:, :H].set(
        b_ih.reshape(3, H) + b_hh.reshape(3, H) * gate_mask)

    # ---- hoisted input projection, produced directly padded + gate-blocked
    emb_p = emb
    if (Sp, Bp) != (S, B):
        emb_p = jnp.zeros((Sp, Bp, E), emb.dtype).at[:S, :B, :].set(emb)
    gi = jnp.einsum("sbe,ghe->sbgh", emb_p, w_ih_p,
                    preferred_element_type=jnp.float32) + b_p
    gi = gi.reshape(Sp, Bp, 3 * Hp).astype(stream_dtype)

    # ---- recurrent weights: W_hh^T padded (zero rows/cols keep padded hidden
    #      lanes exactly 0 -- see padded-lane invariant in the header comment)
    wh_p = jnp.zeros((Hp, 3, Hp), jnp.float32).at[:H, :, :H].set(
        jnp.transpose(w_hh).reshape(H, 3, H))
    wh_p = wh_p.reshape(Hp, 3 * Hp).astype(stream_dtype)
    bhn_p = jnp.zeros((1, Hp), jnp.float32).at[0, :H].set(b_hh[2 * H:])

    # ---- VMEM budget derived from actual buffer sizes ---------------------
    sb = jnp.dtype(stream_dtype).itemsize
    vmem_needed = (2 * T * Bt * 3 * Hp * sb       # double-buffered gi chunks
                   + 2 * T * Bt * Hp * 4          # double-buffered out chunks
                   + 2 * Hp * 3 * Hp * sb         # W_hh^T copies
                   + Bt * Hp * 4                  # h scratch
                   + (2 << 20))                   # compiler scratch slack
    vmem_limit = int(min(max(2 * vmem_needed, 16 << 20), 48 << 20))

    out = pl.pallas_call(
        _gru_kernel,
        out_shape=jax.ShapeDtypeStruct((Sp, Bp, Hp), jnp.float32),
        grid_spec=pltpu.PrefetchScalarGridSpec(
            num_scalar_prefetch=0,
            grid=(Bp // Bt, Sp // T),             # (parallel batch, serial time)
            in_specs=[
                pl.BlockSpec((T, Bt, 3 * Hp), lambda b, c: (c, b, 0)),   # gi
                # TODO(synk): pipeline_mode=pl.Buffered(1) on the two constant
                # operands below would save one weight copy of VMEM at large Hp.
                pl.BlockSpec((Hp, 3 * Hp), lambda b, c: (0, 0)),         # W_hh^T
                pl.BlockSpec((1, Hp), lambda b, c: (0, 0)),              # b_hh_n
            ],
            out_specs=pl.BlockSpec((T, Bt, Hp), lambda b, c: (c, b, 0)),
            scratch_shapes=[pltpu.VMEM((Bt, Hp), jnp.float32)],
        ),
        compiler_params=pltpu.CompilerParams(
            # Batch tiles independent (2 TCs on v7x); time is a recurrence.
            dimension_semantics=("parallel", "arbitrary"),
            vmem_limit_bytes=vmem_limit,
        ),
    )(gi, wh_p, bhn_p)

    # TODO(synk): emit hs in bfloat16 if downstream tolerates it (halves the
    # writeback bytes); kept f32 here to match the PyTorch module's dtype.
    return out[:S, :B, :H]


# ----------------------------------------------------------------------------
# Encoder module (embedding gather + hoisted projection + Pallas GRU)
# ----------------------------------------------------------------------------
def make_encoder_params(key, vocab_size, embedding_dim, hidden_dim, padding_idx):
    k1, k2, k3, k4, k5 = jax.random.split(key, 5)
    scale = 1.0 / jnp.sqrt(jnp.float32(hidden_dim))
    emb_table = jax.random.normal(k1, (vocab_size, embedding_dim), jnp.float32)
    # padding_idx row is zero (and never updated in PyTorch) -> zero it here.
    emb_table = emb_table.at[padding_idx].set(0.0)
    return {
        "embedding": emb_table,
        "w_ih": jax.random.uniform(k2, (3 * hidden_dim, embedding_dim),
                                   jnp.float32, -scale, scale),
        "w_hh": jax.random.uniform(k3, (3 * hidden_dim, hidden_dim),
                                   jnp.float32, -scale, scale),
        "b_ih": jax.random.uniform(k4, (3 * hidden_dim,), jnp.float32, -scale, scale),
        "b_hh": jax.random.uniform(k5, (3 * hidden_dim,), jnp.float32, -scale, scale),
    }


def encoder_forward(params, tokens, *, time_chunk=16, stream_dtype=jnp.bfloat16):
    """tokens: (seq_len, batch) int32 -> hs: (seq_len, batch, hidden_dim) f32."""
    emb = params["embedding"][tokens]             # (S, B, E) gather (XLA side)
    return gru_forward_pallas(emb, params["w_ih"], params["b_ih"],
                              params["w_hh"], params["b_hh"],
                              time_chunk=time_chunk, stream_dtype=stream_dtype)


# ----------------------------------------------------------------------------
# Pure-JAX reference (for correctness check)
# ----------------------------------------------------------------------------
def encoder_reference(params, tokens):
    emb = params["embedding"][tokens]
    w_ih, w_hh = params["w_ih"], params["w_hh"]
    b_ih, b_hh = params["b_ih"], params["b_hh"]
    H = w_hh.shape[1]
    S, B, _ = emb.shape

    def step(h, x):
        gi = x @ w_ih.T + b_ih
        gh = h @ w_hh.T + b_hh
        r = jax.nn.sigmoid(gi[:, :H] + gh[:, :H])
        z = jax.nn.sigmoid(gi[:, H:2 * H] + gh[:, H:2 * H])
        n = jnp.tanh(gi[:, 2 * H:] + r * gh[:, 2 * H:])
        h_new = (1.0 - z) * n + z * h
        return h_new, h_new

    h0 = jnp.zeros((B, H), jnp.float32)
    _, hs = jax.lax.scan(step, h0, emb)
    return hs


# ----------------------------------------------------------------------------
if __name__ == "__main__":
    vocab_size, embedding_dim, hidden_dim, padding_idx = 11, 8, 16, 0
    seq_len, batch = 8, 4

    key = jax.random.PRNGKey(0)
    k_params, k_tok = jax.random.split(key)
    params = make_encoder_params(k_params, vocab_size, embedding_dim,
                                 hidden_dim, padding_idx)

    tokens = jax.random.randint(k_tok, (seq_len, batch), 0, vocab_size,
                                dtype=jnp.int32)
    # make the tail of each sequence look padded, like pad_sequence output
    tokens = tokens.at[-2:, :].set(padding_idx)

    hs_ref = jax.block_until_ready(encoder_reference(params, tokens))

    # f32 streaming path: tight check against the reference.
    hs_f32 = jax.block_until_ready(
        encoder_forward(params, tokens, stream_dtype=jnp.float32))
    assert hs_f32.shape == (seq_len, batch, hidden_dim)
    assert jnp.allclose(hs_f32, hs_ref, atol=1e-5, rtol=1e-5), "f32 mismatch"

    # bf16 streaming path (default / fast): tolerance loosened deliberately.
    hs_bf16 = jax.block_until_ready(encoder_forward(params, tokens))
    assert hs_bf16.shape == (seq_len, batch, hidden_dim)
    assert jnp.allclose(hs_bf16, hs_ref, atol=3e-2, rtol=3e-2), "bf16 mismatch"

    print("KERNEL_OK")
</pallas_src>

<mosaic_0001>
module attributes {stable_mosaic.version = 11 : i64} {
  func.func @_gru_kernel(%arg0: i32, %arg1: i32, %arg2: memref<16x8x384xf32, #tpu.memory_space<vmem>>, %arg3: memref<128x384xf32, #tpu.memory_space<vmem>>, %arg4: memref<1x128xf32, #tpu.memory_space<vmem>>, %arg5: memref<16x8x128xf32, #tpu.memory_space<vmem>>, %arg6: memref<8x128xf32, #tpu.memory_space<vmem>>) attributes {dimension_semantics = [#tpu.dimension_semantics<parallel>, #tpu.dimension_semantics<arbitrary>], iteration_bounds = array<i64: 1, 1>, scalar_prefetch = 0 : i64, scratch_operands = 1 : i64, tpu.core_type = #tpu.core_type<tc>, window_params = [{transform_indices = @transform_0, window_bounds = array<i64: 16, 8, 384>}, {pipeline_mode = #tpu.pipeline_mode<synchronous>, transform_indices = @transform_1, window_bounds = array<i64: 128, 384>}, {pipeline_mode = #tpu.pipeline_mode<synchronous>, transform_indices = @transform_2, window_bounds = array<i64: 1, 128>}, {transform_indices = @transform_3, window_bounds = array<i64: 16, 8, 128>}]} {
    %c0_i32 = arith.constant 0 : i32
    %0 = arith.cmpi eq, %arg1, %c0_i32 : i32
    %1 = arith.extui %0 : i1 to i32
    %c0_i32_0 = arith.constant 0 : i32
    %2 = arith.cmpi ne, %1, %c0_i32_0 : i32
    scf.if %2 {
      %cst_150 = arith.constant 0.000000e+00 : f32
      %438 = vector.broadcast %cst_150 : f32 to vector<8x128xf32>
      %c0_151 = arith.constant 0 : index
      %c0_152 = arith.constant 0 : index
      %439 = vector.load %arg6[%c0_151, %c0_152] : memref<8x128xf32, #tpu.memory_space<vmem>>, vector<8x128xf32>
      tpu.vector_store %arg6[%c0_151, %c0_152], %438 {strides = array<i32>} : memref<8x128xf32, #tpu.memory_space<vmem>>, vector<8x128xf32>,
    } else {
    }
    %c0 = arith.constant 0 : index
    %c0_1 = arith.constant 0 : index
    %3 = vector.load %arg4[%c0, %c0_1] : memref<1x128xf32, #tpu.memory_space<vmem>>, vector<1x128xf32>
    %c0_2 = arith.constant 0 : index
    %c0_3 = arith.constant 0 : index
    %4 = vector.load %arg6[%c0_2, %c0_3] : memref<8x128xf32, #tpu.memory_space<vmem>>, vector<8x128xf32>
    %c0_4 = arith.constant 0 : index
    %c0_5 = arith.constant 0 : index
    %c0_6 = arith.constant 0 : index
    %5 = vector.load %arg2[%c0_4, %c0_5, %c0_6] : memref<16x8x384xf32, #tpu.memory_space<vmem>>, vector<1x8x384xf32>
    %6 = vector.shape_cast %5 : vector<1x8x384xf32> to vector<8x384xf32>
    %c0_7 = arith.constant 0 : index
    %c0_8 = arith.constant 0 : index
    %7 = vector.load %arg3[%c0_7, %c0_8] : memref<128x384xf32, #tpu.memory_space<vmem>>, vector<128x384xf32>
    %cst = arith.constant dense<0.000000e+00> : vector<8x384xf32>
    %8 = tpu.matmul %4, %7, %cst {dimension_numbers = #tpu.dot_dimension_numbers<[1], [0], [0], [1], [0, 0, 1, 1], [], []>} : vector<8x128xf32>, vector<128x384xf32>, vector<8x384xf32> -> vector<8x384xf32>
    %9 = vector.extract_strided_slice %6 {offsets = [0, 0], sizes = [8, 256], strides = [1, 1]} : vector<8x384xf32> to vector<8x256xf32>
    %10 = vector.extract_strided_slice %8 {offsets = [0, 0], sizes = [8, 256], strides = [1, 1]} : vector<8x384xf32> to vector<8x256xf32>
    %11 = arith.addf %9, %10 : vector<8x256xf32>
    %12 = arith.negf %11 : vector<8x256xf32>
    %13 = math.exp %12 : vector<8x256xf32>
    %cst_9 = arith.constant 1.000000e+00 : f32
    %14 = vector.broadcast %cst_9 : f32 to vector<8x256xf32>
    %15 = arith.addf %14, %13 : vector<8x256xf32>
    %16 = arith.divf %14, %15 : vector<8x256xf32>
    %17 = vector.extract_strided_slice %16 {offsets = [0, 0], sizes = [8, 128], strides = [1, 1]} : vector<8x256xf32> to vector<8x128xf32>
    %18 = vector.extract_strided_slice %16 {offsets = [0, 128], sizes = [8, 128], strides = [1, 1]} : vector<8x256xf32> to vector<8x128xf32>
    %19 = vector.extract_strided_slice %6 {offsets = [0, 256], sizes = [8, 128], strides = [1, 1]} : vector<8x384xf32> to vector<8x128xf32>
    %20 = vector.extract_strided_slice %8 {offsets = [0, 256], sizes = [8, 128], strides = [1, 1]} : vector<8x384xf32> to vector<8x128xf32>
    %21 = vector.broadcast %3 : vector<1x128xf32> to vector<8x128xf32>
    %22 = arith.addf %20, %21 : vector<8x128xf32>
    %23 = arith.mulf %17, %22 : vector<8x128xf32>
    %24 = arith.addf %19, %23 : vector<8x128xf32>
    %25 = math.tanh %24 : vector<8x128xf32>
    %26 = arith.subf %4, %25 : vector<8x128xf32>
    %27 = arith.mulf %18, %26 : vector<8x128xf32>
    %28 = arith.addf %25, %27 : vector<8x128xf32>
    %c0_10 = arith.constant 0 : index
    %c0_11 = arith.constant 0 : index
    %c0_12 = arith.constant 0 : index
    %29 = vector.load %arg5[%c0_10, %c0_11, %c0_12] : memref<16x8x128xf32, #tpu.memory_space<vmem>>, vector<1x8x128xf32>
    %30 = vector.shape_cast %29 : vector<1x8x128xf32> to vector<8x128xf32>
    %31 = vector.shape_cast %28 : vector<8x128xf32> to vector<1x8x128xf32>
    tpu.vector_store %arg5[%c0_10, %c0_11, %c0_12], %31 {strides = array<i32>} : memref<16x8x128xf32, #tpu.memory_space<vmem>>, vector<1x8x128xf32>,
    %c1 = arith.constant 1 : index
    %c0_13 = arith.constant 0 : index
    %c0_14 = arith.constant 0 : index
    %32 = vector.load %arg2[%c1, %c0_13, %c0_14] : memref<16x8x384xf32, #tpu.memory_space<vmem>>, vector<1x8x384xf32>
    %33 = vector.shape_cast %32 : vector<1x8x384xf32> to vector<8x384xf32>
    %c0_15 = arith.constant 0 : index
    %c0_16 = arith.constant 0 : index
    %34 = vector.load %arg3[%c0_15, %c0_16] : memref<128x384xf32, #tpu.memory_space<vmem>>, vector<128x384xf32>
    %cst_17 = arith.constant dense<0.000000e+00> : vector<8x384xf32>
    %35 = tpu.matmul %28, %34, %cst_17 {dimension_numbers = #tpu.dot_dimension_numbers<[1], [0], [0], [1], [0, 0, 1, 1], [], []>} : vector<8x128xf32>, vector<128x384xf32>, vector<8x384xf32> -> vector<8x384xf32>
    %36 = vector.extract_strided_slice %33 {offsets = [0, 0], sizes = [8, 256], strides = [1, 1]} : vector<8x384xf32> to vector<8x256xf32>
    %37 = vector.extract_strided_slice %35 {offsets = [0, 0], sizes = [8, 256], strides = [1, 1]} : vector<8x384xf32> to vector<8x256xf32>
    %38 = arith.addf %36, %37 : vector<8x256xf32>
    %39 = arith.negf %38 : vector<8x256xf32>
    %40 = math.exp %39 : vector<8x256xf32>
    %cst_18 = arith.constant 1.000000e+00 : f32
    %41 = vector.broadcast %cst_18 : f32 to vector<8x256xf32>
    %42 = arith.addf %41, %40 : vector<8x256xf32>
    %43 = arith.divf %41, %42 : vector<8x256xf32>
    %44 = vector.extract_strided_slice %43 {offsets = [0, 0], sizes = [8, 128], strides = [1, 1]} : vector<8x256xf32> to vector<8x128xf32>
    %45 = vector.extract_strided_slice %43 {offsets = [0, 128], sizes = [8, 128], strides = [1, 1]} : vector<8x256xf32> to vector<8x128xf32>
    %46 = vector.extract_strided_slice %33 {offsets = [0, 256], sizes = [8, 128], strides = [1, 1]} : vector<8x384xf32> to vector<8x128xf32>
    %47 = vector.extract_strided_slice %35 {offsets = [0, 256], sizes = [8, 128], strides = [1, 1]} : vector<8x384xf32> to vector<8x128xf32>
    %48 = vector.broadcast %3 : vector<1x128xf32> to vector<8x128xf32>
    %49 = arith.addf %47, %48 : vector<8x128xf32>
    %50 = arith.mulf %44, %49 : vector<8x128xf32>
    %51 = arith.addf %46, %50 : vector<8x128xf32>
    %52 = math.tanh %51 : vector<8x128xf32>
    %53 = arith.subf %28, %52 : vector<8x128xf32>
    %54 = arith.mulf %45, %53 : vector<8x128xf32>
    %55 = arith.addf %52, %54 : vector<8x128xf32>
    %c1_19 = arith.constant 1 : index
    %c0_20 = arith.constant 0 : index
    %c0_21 = arith.constant 0 : index
    %56 = vector.load %arg5[%c1_19, %c0_20, %c0_21] : memref<16x8x128xf32, #tpu.memory_space<vmem>>, vector<1x8x128xf32>
    %57 = vector.shape_cast %56 : vector<1x8x128xf32> to vector<8x128xf32>
    %58 = vector.shape_cast %55 : vector<8x128xf32> to vector<1x8x128xf32>
    tpu.vector_store %arg5[%c1_19, %c0_20, %c0_21], %58 {strides = array<i32>} : memref<16x8x128xf32, #tpu.memory_space<vmem>>, vector<1x8x128xf32>,
    %c2 = arith.constant 2 : index
    %c0_22 = arith.constant 0 : index
    %c0_23 = arith.constant 0 : index
    %59 = vector.load %arg2[%c2, %c0_22, %c0_23] : memref<16x8x384xf32, #tpu.memory_space<vmem>>, vector<1x8x384xf32>
    %60 = vector.shape_cast %59 : vector<1x8x384xf32> to vector<8x384xf32>
    %c0_24 = arith.constant 0 : index
    %c0_25 = arith.constant 0 : index
    %61 = vector.load %arg3[%c0_24, %c0_25] : memref<128x384xf32, #tpu.memory_space<vmem>>, vector<128x384xf32>
    %cst_26 = arith.constant dense<0.000000e+00> : vector<8x384xf32>
    %62 = tpu.matmul %55, %61, %cst_26 {dimension_numbers = #tpu.dot_dimension_numbers<[1], [0], [0], [1], [0, 0, 1, 1], [], []>} : vector<8x128xf32>, vector<128x384xf32>, vector<8x384xf32> -> vector<8x384xf32>
    %63 = vector.extract_strided_slice %60 {offsets = [0, 0], sizes = [8, 256], strides = [1, 1]} : vector<8x384xf32> to vector<8x256xf32>
    %64 = vector.extract_strided_slice %62 {offsets = [0, 0], sizes = [8, 256], strides = [1, 1]} : vector<8x384xf32> to vector<8x256xf32>
    %65 = arith.addf %63, %64 : vector<8x256xf32>
    %66 = arith.negf %65 : vector<8x256xf32>
    %67 = math.exp %66 : vector<8x256xf32>
    %cst_27 = arith.constant 1.000000e+00 : f32
    %68 = vector.broadcast %cst_27 : f32 to vector<8x256xf32>
    %69 = arith.addf %68, %67 : vector<8x256xf32>
    %70 = arith.divf %68, %69 : vector<8x256xf32>
    %71 = vector.extract_strided_slice %70 {offsets = [0, 0], sizes = [8, 128], strides = [1, 1]} : vector<8x256xf32> to vector<8x128xf32>
    %72 = vector.extract_strided_slice %70 {offsets = [0, 128], sizes = [8, 128], strides = [1, 1]} : vector<8x256xf32> to vector<8x128xf32>
    %73 = vector.extract_strided_slice %60 {offsets = [0, 256], sizes = [8, 128], strides = [1, 1]} : vector<8x384xf32> to vector<8x128xf32>
    %74 = vector.extract_strided_slice %62 {offsets = [0, 256], sizes = [8, 128], strides = [1, 1]} : vector<8x384xf32> to vector<8x128xf32>
    %75 = vector.broadcast %3 : vector<1x128xf32> to vector<8x128xf32>
    %76 = arith.addf %74, %75 : vector<8x128xf32>
    %77 = arith.mulf %71, %76 : vector<8x128xf32>
    %78 = arith.addf %73, %77 : vector<8x128xf32>
    %79 = math.tanh %78 : vector<8x128xf32>
    %80 = arith.subf %55, %79 : vector<8x128xf32>
    %81 = arith.mulf %72, %80 : vector<8x128xf32>
    %82 = arith.addf %79, %81 : vector<8x128xf32>
    %c2_28 = arith.constant 2 : index
    %c0_29 = arith.constant 0 : index
    %c0_30 = arith.constant 0 : index
    %83 = vector.load %arg5[%c2_28, %c0_29, %c0_30] : memref<16x8x128xf32, #tpu.memory_space<vmem>>, vector<1x8x128xf32>
    %84 = vector.shape_cast %83 : vector<1x8x128xf32> to vector<8x128xf32>
    %85 = vector.shape_cast %82 : vector<8x128xf32> to vector<1x8x128xf32>
    tpu.vector_store %arg5[%c2_28, %c0_29, %c0_30], %85 {strides = array<i32>} : memref<16x8x128xf32, #tpu.memory_space<vmem>>, vector<1x8x128xf32>,
    %c3 = arith.constant 3 : index
    %c0_31 = arith.constant 0 : index
    %c0_32 = arith.constant 0 : index
    %86 = vector.load %arg2[%c3, %c0_31, %c0_32] : memref<16x8x384xf32, #tpu.memory_space<vmem>>, vector<1x8x384xf32>
    %87 = vector.shape_cast %86 : vector<1x8x384xf32> to vector<8x384xf32>
    %c0_33 = arith.constant 0 : index
    %c0_34 = arith.constant 0 : index
    %88 = vector.load %arg3[%c0_33, %c0_34] : memref<128x384xf32, #tpu.memory_space<vmem>>, vector<128x384xf32>
    %cst_35 = arith.constant dense<0.000000e+00> : vector<8x384xf32>
    %89 = tpu.matmul %82, %88, %cst_35 {dimension_numbers = #tpu.dot_dimension_numbers<[1], [0], [0], [1], [0, 0, 1, 1], [], []>} : vector<8x128xf32>, vector<128x384xf32>, vector<8x384xf32> -> vector<8x384xf32>
    %90 = vector.extract_strided_slice %87 {offsets = [0, 0], sizes = [8, 256], strides = [1, 1]} : vector<8x384xf32> to vector<8x256xf32>
    %91 = vector.extract_strided_slice %89 {offsets = [0, 0], sizes = [8, 256], strides = [1, 1]} : vector<8x384xf32> to vector<8x256xf32>
    %92 = arith.addf %90, %91 : vector<8x256xf32>
    %93 = arith.negf %92 : vector<8x256xf32>
    %94 = math.exp %93 : vector<8x256xf32>
    %cst_36 = arith.constant 1.000000e+00 : f32
    %95 = vector.broadcast %cst_36 : f32 to vector<8x256xf32>
    %96 = arith.addf %95, %94 : vector<8x256xf32>
    %97 = arith.divf %95, %96 : vector<8x256xf32>
    %98 = vector.extract_strided_slice %97 {offsets = [0, 0], sizes = [8, 128], strides = [1, 1]} : vector<8x256xf32> to vector<8x128xf32>
    %99 = vector.extract_strided_slice %97 {offsets = [0, 128], sizes = [8, 128], strides = [1, 1]} : vector<8x256xf32> to vector<8x128xf32>
    %100 = vector.extract_strided_slice %87 {offsets = [0, 256], sizes = [8, 128], strides = [1, 1]} : vector<8x384xf32> to vector<8x128xf32>
    %101 = vector.extract_strided_slice %89 {offsets = [0, 256], sizes = [8, 128], strides = [1, 1]} : vector<8x384xf32> to vector<8x128xf32>
    %102 = vector.broadcast %3 : vector<1x128xf32> to vector<8x128xf32>
    %103 = arith.addf %101, %102 : vector<8x128xf32>
    %104 = arith.mulf %98, %103 : vector<8x128xf32>
    %105 = arith.addf %100, %104 : vector<8x128xf32>
    %106 = math.tanh %105 : vector<8x128xf32>
    %107 = arith.subf %82, %106 : vector<8x128xf32>
    %108 = arith.mulf %99, %107 : vector<8x128xf32>
    %109 = arith.addf %106, %108 : vector<8x128xf32>
    %c3_37 = arith.constant 3 : index
    %c0_38 = arith.constant 0 : index
    %c0_39 = arith.constant 0 : index
    %110 = vector.load %arg5[%c3_37, %c0_38, %c0_39] : memref<16x8x128xf32, #tpu.memory_space<vmem>>, vector<1x8x128xf32>
    %111 = vector.shape_cast %110 : vector<1x8x128xf32> to vector<8x128xf32>
    %112 = vector.shape_cast %109 : vector<8x128xf32> to vector<1x8x128xf32>
    tpu.vector_store %arg5[%c3_37, %c0_38, %c0_39], %112 {strides = array<i32>} : memref<16x8x128xf32, #tpu.memory_space<vmem>>, vector<1x8x128xf32>,
    %c4 = arith.constant 4 : index
    %c0_40 = arith.constant 0 : index
    %c0_41 = arith.constant 0 : index
    %113 = vector.load %arg2[%c4, %c0_40, %c0_41] : memref<16x8x384xf32, #tpu.memory_space<vmem>>, vector<1x8x384xf32>
    %114 = vector.shape_cast %113 : vector<1x8x384xf32> to vector<8x384xf32>
    %c0_42 = arith.constant 0 : index
    %c0_43 = arith.constant 0 : index
    %115 = vector.load %arg3[%c0_42, %c0_43] : memref<128x384xf32, #tpu.memory_space<vmem>>, vector<128x384xf32>
    %cst_44 = arith.constant dense<0.000000e+00> : vector<8x384xf32>
    %116 = tpu.matmul %109, %115, %cst_44 {dimension_numbers = #tpu.dot_dimension_numbers<[1], [0], [0], [1], [0, 0, 1, 1], [], []>} : vector<8x128xf32>, vector<128x384xf32>, vector<8x384xf32> -> vector<8x384xf32>
    %117 = vector.extract_strided_slice %114 {offsets = [0, 0], sizes = [8, 256], strides = [1, 1]} : vector<8x384xf32> to vector<8x256xf32>
    %118 = vector.extract_strided_slice %116 {offsets = [0, 0], sizes = [8, 256], strides = [1, 1]} : vector<8x384xf32> to vector<8x256xf32>
    %119 = arith.addf %117, %118 : vector<8x256xf32>
    %120 = arith.negf %119 : vector<8x256xf32>
    %121 = math.exp %120 : vector<8x256xf32>
    %cst_45 = arith.constant 1.000000e+00 : f32
    %122 = vector.broadcast %cst_45 : f32 to vector<8x256xf32>
    %123 = arith.addf %122, %121 : vector<8x256xf32>
    %124 = arith.divf %122, %123 : vector<8x256xf32>
    %125 = vector.extract_strided_slice %124 {offsets = [0, 0], sizes = [8, 128], strides = [1, 1]} : vector<8x256xf32> to vector<8x128xf32>
    %126 = vector.extract_strided_slice %124 {offsets = [0, 128], sizes = [8, 128], strides = [1, 1]} : vector<8x256xf32> to vector<8x128xf32>
    %127 = vector.extract_strided_slice %114 {offsets = [0, 256], sizes = [8, 128], strides = [1, 1]} : vector<8x384xf32> to vector<8x128xf32>
    %128 = vector.extract_strided_slice %116 {offsets = [0, 256], sizes = [8, 128], strides = [1, 1]} : vector<8x384xf32> to vector<8x128xf32>
    %129 = vector.broadcast %3 : vector<1x128xf32> to vector<8x128xf32>
    %130 = arith.addf %128, %129 : vector<8x128xf32>
    %131 = arith.mulf %125, %130 : vector<8x128xf32>
    %132 = arith.addf %127, %131 : vector<8x128xf32>
    %133 = math.tanh %132 : vector<8x128xf32>
    %134 = arith.subf %109, %133 : vector<8x128xf32>
    %135 = arith.mulf %126, %134 : vector<8x128xf32>
    %136 = arith.addf %133, %135 : vector<8x128xf32>
    %c4_46 = arith.constant 4 : index
    %c0_47 = arith.constant 0 : index
    %c0_48 = arith.constant 0 : index
    %137 = vector.load %arg5[%c4_46, %c0_47, %c0_48] : memref<16x8x128xf32, #tpu.memory_space<vmem>>, vector<1x8x128xf32>
    %138 = vector.shape_cast %137 : vector<1x8x128xf32> to vector<8x128xf32>
    %139 = vector.shape_cast %136 : vector<8x128xf32> to vector<1x8x128xf32>
    tpu.vector_store %arg5[%c4_46, %c0_47, %c0_48], %139 {strides = array<i32>} : memref<16x8x128xf32, #tpu.memory_space<vmem>>, vector<1x8x128xf32>,
    %c5 = arith.constant 5 : index
    %c0_49 = arith.constant 0 : index
    %c0_50 = arith.constant 0 : index
    %140 = vector.load %arg2[%c5, %c0_49, %c0_50] : memref<16x8x384xf32, #tpu.memory_space<vmem>>, vector<1x8x384xf32>
    %141 = vector.shape_cast %140 : vector<1x8x384xf32> to vector<8x384xf32>
    %c0_51 = arith.constant 0 : index
    %c0_52 = arith.constant 0 : index
    %142 = vector.load %arg3[%c0_51, %c0_52] : memref<128x384xf32, #tpu.memory_space<vmem>>, vector<128x384xf32>
    %cst_53 = arith.constant dense<0.000000e+00> : vector<8x384xf32>
    %143 = tpu.matmul %136, %142, %cst_53 {dimension_numbers = #tpu.dot_dimension_numbers<[1], [0], [0], [1], [0, 0, 1, 1], [], []>} : vector<8x128xf32>, vector<128x384xf32>, vector<8x384xf32> -> vector<8x384xf32>
    %144 = vector.extract_strided_slice %141 {offsets = [0, 0], sizes = [8, 256], strides = [1, 1]} : vector<8x384xf32> to vector<8x256xf32>
    %145 = vector.extract_strided_slice %143 {offsets = [0, 0], sizes = [8, 256], strides = [1, 1]} : vector<8x384xf32> to vector<8x256xf32>
    %146 = arith.addf %144, %145 : vector<8x256xf32>
    %147 = arith.negf %146 : vector<8x256xf32>
    %148 = math.exp %147 : vector<8x256xf32>
    %cst_54 = arith.constant 1.000000e+00 : f32
    %149 = vector.broadcast %cst_54 : f32 to vector<8x256xf32>
    %150 = arith.addf %149, %148 : vector<8x256xf32>
    %151 = arith.divf %149, %150 : vector<8x256xf32>
    %152 = vector.extract_strided_slice %151 {offsets = [0, 0], sizes = [8, 128], strides = [1, 1]} : vector<8x256xf32> to vector<8x128xf32>
    %153 = vector.extract_strided_slice %151 {offsets = [0, 128], sizes = [8, 128], strides = [1, 1]} : vector<8x256xf32> to vector<8x128xf32>
    %154 = vector.extract_strided_slice %141 {offsets = [0, 256], sizes = [8, 128], strides = [1, 1]} : vector<8x384xf32> to vector<8x128xf32>
    %155 = vector.extract_strided_slice %143 {offsets = [0, 256], sizes = [8, 128], strides = [1, 1]} : vector<8x384xf32> to vector<8x128xf32>
    %156 = vector.broadcast %3 : vector<1x128xf32> to vector<8x128xf32>
    %157 = arith.addf %155, %156 : vector<8x128xf32>
    %158 = arith.mulf %152, %157 : vector<8x128xf32>
    %159 = arith.addf %154, %158 : vector<8x128xf32>
    %160 = math.tanh %159 : vector<8x128xf32>
    %161 = arith.subf %136, %160 : vector<8x128xf32>
    %162 = arith.mulf %153, %161 : vector<8x128xf32>
    %163 = arith.addf %160, %162 : vector<8x128xf32>
    %c5_55 = arith.constant 5 : index
    %c0_56 = arith.constant 0 : index
    %c0_57 = arith.constant 0 : index
    %164 = vector.load %arg5[%c5_55, %c0_56, %c0_57] : memref<16x8x128xf32, #tpu.memory_space<vmem>>, vector<1x8x128xf32>
    %165 = vector.shape_cast %164 : vector<1x8x128xf32> to vector<8x128xf32>
    %166 = vector.shape_cast %163 : vector<8x128xf32> to vector<1x8x128xf32>
    tpu.vector_store %arg5[%c5_55, %c0_56, %c0_57], %166 {strides = array<i32>} : memref<16x8x128xf32, #tpu.memory_space<vmem>>, vector<1x8x128xf32>,
    %c6 = arith.constant 6 : index
    %c0_58 = arith.constant 0 : index
    %c0_59 = arith.constant 0 : index
    %167 = vector.load %arg2[%c6, %c0_58, %c0_59] : memref<16x8x384xf32, #tpu.memory_space<vmem>>, vector<1x8x384xf32>
    %168 = vector.shape_cast %167 : vector<1x8x384xf32> to vector<8x384xf32>
    %c0_60 = arith.constant 0 : index
    %c0_61 = arith.constant 0 : index
    %169 = vector.load %arg3[%c0_60, %c0_61] : memref<128x384xf32, #tpu.memory_space<vmem>>, vector<128x384xf32>
    %cst_62 = arith.constant dense<0.000000e+00> : vector<8x384xf32>
    %170 = tpu.matmul %163, %169, %cst_62 {dimension_numbers = #tpu.dot_dimension_numbers<[1], [0], [0], [1], [0, 0, 1, 1], [], []>} : vector<8x128xf32>, vector<128x384xf32>, vector<8x384xf32> -> vector<8x384xf32>
    %171 = vector.extract_strided_slice %168 {offsets = [0, 0], sizes = [8, 256], strides = [1, 1]} : vector<8x384xf32> to vector<8x256xf32>
    %172 = vector.extract_strided_slice %170 {offsets = [0, 0], sizes = [8, 256], strides = [1, 1]} : vector<8x384xf32> to vector<8x256xf32>
    %173 = arith.addf %171, %172 : vector<8x256xf32>
    %174 = arith.negf %173 : vector<8x256xf32>
    %175 = math.exp %174 : vector<8x256xf32>
    %cst_63 = arith.constant 1.000000e+00 : f32
    %176 = vector.broadcast %cst_63 : f32 to vector<8x256xf32>
    %177 = arith.addf %176, %175 : vector<8x256xf32>
    %178 = arith.divf %176, %177 : vector<8x256xf32>
    %179 = vector.extract_strided_slice %178 {offsets = [0, 0], sizes = [8, 128], strides = [1, 1]} : vector<8x256xf32> to vector<8x128xf32>
    %180 = vector.extract_strided_slice %178 {offsets = [0, 128], sizes = [8, 128], strides = [1, 1]} : vector<8x256xf32> to vector<8x128xf32>
    %181 = vector.extract_strided_slice %168 {offsets = [0, 256], sizes = [8, 128], strides = [1, 1]} : vector<8x384xf32> to vector<8x128xf32>
    %182 = vector.extract_strided_slice %170 {offsets = [0, 256], sizes = [8, 128], strides = [1, 1]} : vector<8x384xf32> to vector<8x128xf32>
    %183 = vector.broadcast %3 : vector<1x128xf32> to vector<8x128xf32>
    %184 = arith.addf %182, %183 : vector<8x128xf32>
    %185 = arith.mulf %179, %184 : vector<8x128xf32>
    %186 = arith.addf %181, %185 : vector<8x128xf32>
    %187 = math.tanh %186 : vector<8x128xf32>
    %188 = arith.subf %163, %187 : vector<8x128xf32>
    %189 = arith.mulf %180, %188 : vector<8x128xf32>
    %190 = arith.addf %187, %189 : vector<8x128xf32>
    %c6_64 = arith.constant 6 : index
    %c0_65 = arith.constant 0 : index
    %c0_66 = arith.constant 0 : index
    %191 = vector.load %arg5[%c6_64, %c0_65, %c0_66] : memref<16x8x128xf32, #tpu.memory_space<vmem>>, vector<1x8x128xf32>
    %192 = vector.shape_cast %191 : vector<1x8x128xf32> to vector<8x128xf32>
    %193 = vector.shape_cast %190 : vector<8x128xf32> to vector<1x8x128xf32>
    tpu.vector_store %arg5[%c6_64, %c0_65, %c0_66], %193 {strides = array<i32>} : memref<16x8x128xf32, #tpu.memory_space<vmem>>, vector<1x8x128xf32>,
    %c7 = arith.constant 7 : index
    %c0_67 = arith.constant 0 : index
    %c0_68 = arith.constant 0 : index
    %194 = vector.load %arg2[%c7, %c0_67, %c0_68] : memref<16x8x384xf32, #tpu.memory_space<vmem>>, vector<1x8x384xf32>
    %195 = vector.shape_cast %194 : vector<1x8x384xf32> to vector<8x384xf32>
    %c0_69 = arith.constant 0 : index
    %c0_70 = arith.constant 0 : index
    %196 = vector.load %arg3[%c0_69, %c0_70] : memref<128x384xf32, #tpu.memory_space<vmem>>, vector<128x384xf32>
    %cst_71 = arith.constant dense<0.000000e+00> : vector<8x384xf32>
    %197 = tpu.matmul %190, %196, %cst_71 {dimension_numbers = #tpu.dot_dimension_numbers<[1], [0], [0], [1], [0, 0, 1, 1], [], []>} : vector<8x128xf32>, vector<128x384xf32>, vector<8x384xf32> -> vector<8x384xf32>
    %198 = vector.extract_strided_slice %195 {offsets = [0, 0], sizes = [8, 256], strides = [1, 1]} : vector<8x384xf32> to vector<8x256xf32>
    %199 = vector.extract_strided_slice %197 {offsets = [0, 0], sizes = [8, 256], strides = [1, 1]} : vector<8x384xf32> to vector<8x256xf32>
    %200 = arith.addf %198, %199 : vector<8x256xf32>
    %201 = arith.negf %200 : vector<8x256xf32>
    %202 = math.exp %201 : vector<8x256xf32>
    %cst_72 = arith.constant 1.000000e+00 : f32
    %203 = vector.broadcast %cst_72 : f32 to vector<8x256xf32>
    %204 = arith.addf %203, %202 : vector<8x256xf32>
    %205 = arith.divf %203, %204 : vector<8x256xf32>
    %206 = vector.extract_strided_slice %205 {offsets = [0, 0], sizes = [8, 128], strides = [1, 1]} : vector<8x256xf32> to vector<8x128xf32>
    %207 = vector.extract_strided_slice %205 {offsets = [0, 128], sizes = [8, 128], strides = [1, 1]} : vector<8x256xf32> to vector<8x128xf32>
    %208 = vector.extract_strided_slice %195 {offsets = [0, 256], sizes = [8, 128], strides = [1, 1]} : vector<8x384xf32> to vector<8x128xf32>
    %209 = vector.extract_strided_slice %197 {offsets = [0, 256], sizes = [8, 128], strides = [1, 1]} : vector<8x384xf32> to vector<8x128xf32>
    %210 = vector.broadcast %3 : vector<1x128xf32> to vector<8x128xf32>
    %211 = arith.addf %209, %210 : vector<8x128xf32>
    %212 = arith.mulf %206, %211 : vector<8x128xf32>
    %213 = arith.addf %208, %212 : vector<8x128xf32>
    %214 = math.tanh %213 : vector<8x128xf32>
    %215 = arith.subf %190, %214 : vector<8x128xf32>
    %216 = arith.mulf %207, %215 : vector<8x128xf32>
    %217 = arith.addf %214, %216 : vector<8x128xf32>
    %c7_73 = arith.constant 7 : index
    %c0_74 = arith.constant 0 : index
    %c0_75 = arith.constant 0 : index
    %218 = vector.load %arg5[%c7_73, %c0_74, %c0_75] : memref<16x8x128xf32, #tpu.memory_space<vmem>>, vector<1x8x128xf32>
    %219 = vector.shape_cast %218 : vector<1x8x128xf32> to vector<8x128xf32>
    %220 = vector.shape_cast %217 : vector<8x128xf32> to vector<1x8x128xf32>
    tpu.vector_store %arg5[%c7_73, %c0_74, %c0_75], %220 {strides = array<i32>} : memref<16x8x128xf32, #tpu.memory_space<vmem>>, vector<1x8x128xf32>,
    %c8 = arith.constant 8 : index
    %c0_76 = arith.constant 0 : index
    %c0_77 = arith.constant 0 : index
    %221 = vector.load %arg2[%c8, %c0_76, %c0_77] : memref<16x8x384xf32, #tpu.memory_space<vmem>>, vector<1x8x384xf32>
    %222 = vector.shape_cast %221 : vector<1x8x384xf32> to vector<8x384xf32>
    %c0_78 = arith.constant 0 : index
    %c0_79 = arith.constant 0 : index
    %223 = vector.load %arg3[%c0_78, %c0_79] : memref<128x384xf32, #tpu.memory_space<vmem>>, vector<128x384xf32>
    %cst_80 = arith.constant dense<0.000000e+00> : vector<8x384xf32>
    %224 = tpu.matmul %217, %223, %cst_80 {dimension_numbers = #tpu.dot_dimension_numbers<[1], [0], [0], [1], [0, 0, 1, 1], [], []>} : vector<8x128xf32>, vector<128x384xf32>, vector<8x384xf32> -> vector<8x384xf32>
    %225 = vector.extract_strided_slice %222 {offsets = [0, 0], sizes = [8, 256], strides = [1, 1]} : vector<8x384xf32> to vector<8x256xf32>
    %226 = vector.extract_strided_slice %224 {offsets = [0, 0], sizes = [8, 256], strides = [1, 1]} : vector<8x384xf32> to vector<8x256xf32>
    %227 = arith.addf %225, %226 : vector<8x256xf32>
    %228 = arith.negf %227 : vector<8x256xf32>
    %229 = math.exp %228 : vector<8x256xf32>
    %cst_81 = arith.constant 1.000000e+00 : f32
    %230 = vector.broadcast %cst_81 : f32 to vector<8x256xf32>
    %231 = arith.addf %230, %229 : vector<8x256xf32>
    %232 = arith.divf %230, %231 : vector<8x256xf32>
    %233 = vector.extract_strided_slice %232 {offsets = [0, 0], sizes = [8, 128], strides = [1, 1]} : vector<8x256xf32> to vector<8x128xf32>
    %234 = vector.extract_strided_slice %232 {offsets = [0, 128], sizes = [8, 128], strides = [1, 1]} : vector<8x256xf32> to vector<8x128xf32>
    %235 = vector.extract_strided_slice %222 {offsets = [0, 256], sizes = [8, 128], strides = [1, 1]} : vector<8x384xf32> to vector<8x128xf32>
    %236 = vector.extract_strided_slice %224 {offsets = [0, 256], sizes = [8, 128], strides = [1, 1]} : vector<8x384xf32> to vector<8x128xf32>
    %237 = vector.broadcast %3 : vector<1x128xf32> to vector<8x128xf32>
    %238 = arith.addf %236, %237 : vector<8x128xf32>
    %239 = arith.mulf %233, %238 : vector<8x128xf32>
    %240 = arith.addf %235, %239 : vector<8x128xf32>
    %241 = math.tanh %240 : vector<8x128xf32>
    %242 = arith.subf %217, %241 : vector<8x128xf32>
    %243 = arith.mulf %234, %242 : vector<8x128xf32>
    %244 = arith.addf %241, %243 : vector<8x128xf32>
    %c8_82 = arith.constant 8 : index
    %c0_83 = arith.constant 0 : index
    %c0_84 = arith.constant 0 : index
    %245 = vector.load %arg5[%c8_82, %c0_83, %c0_84] : memref<16x8x128xf32, #tpu.memory_space<vmem>>, vector<1x8x128xf32>
    %246 = vector.shape_cast %245 : vector<1x8x128xf32> to vector<8x128xf32>
    %247 = vector.shape_cast %244 : vector<8x128xf32> to vector<1x8x128xf32>
    tpu.vector_store %arg5[%c8_82, %c0_83, %c0_84], %247 {strides = array<i32>} : memref<16x8x128xf32, #tpu.memory_space<vmem>>, vector<1x8x128xf32>,
    %c9 = arith.constant 9 : index
    %c0_85 = arith.constant 0 : index
    %c0_86 = arith.constant 0 : index
    %248 = vector.load %arg2[%c9, %c0_85, %c0_86] : memref<16x8x384xf32, #tpu.memory_space<vmem>>, vector<1x8x384xf32>
    %249 = vector.shape_cast %248 : vector<1x8x384xf32> to vector<8x384xf32>
    %c0_87 = arith.constant 0 : index
    %c0_88 = arith.constant 0 : index
    %250 = vector.load %arg3[%c0_87, %c0_88] : memref<128x384xf32, #tpu.memory_space<vmem>>, vector<128x384xf32>
    %cst_89 = arith.constant dense<0.000000e+00> : vector<8x384xf32>
    %251 = tpu.matmul %244, %250, %cst_89 {dimension_numbers = #tpu.dot_dimension_numbers<[1], [0], [0], [1], [0, 0, 1, 1], [], []>} : vector<8x128xf32>, vector<128x384xf32>, vector<8x384xf32> -> vector<8x384xf32>
    %252 = vector.extract_strided_slice %249 {offsets = [0, 0], sizes = [8, 256], strides = [1, 1]} : vector<8x384xf32> to vector<8x256xf32>
    %253 = vector.extract_strided_slice %251 {offsets = [0, 0], sizes = [8, 256], strides = [1, 1]} : vector<8x384xf32> to vector<8x256xf32>
    %254 = arith.addf %252, %253 : vector<8x256xf32>
    %255 = arith.negf %254 : vector<8x256xf32>
    %256 = math.exp %255 : vector<8x256xf32>
    %cst_90 = arith.constant 1.000000e+00 : f32
    %257 = vector.broadcast %cst_90 : f32 to vector<8x256xf32>
    %258 = arith.addf %257, %256 : vector<8x256xf32>
    %259 = arith.divf %257, %258 : vector<8x256xf32>
    %260 = vector.extract_strided_slice %259 {offsets = [0, 0], sizes = [8, 128], strides = [1, 1]} : vector<8x256xf32> to vector<8x128xf32>
    %261 = vector.extract_strided_slice %259 {offsets = [0, 128], sizes = [8, 128], strides = [1, 1]} : vector<8x256xf32> to vector<8x128xf32>
    %262 = vector.extract_strided_slice %249 {offsets = [0, 256], sizes = [8, 128], strides = [1, 1]} : vector<8x384xf32> to vector<8x128xf32>
    %263 = vector.extract_strided_slice %251 {offsets = [0, 256], sizes = [8, 128], strides = [1, 1]} : vector<8x384xf32> to vector<8x128xf32>
    %264 = vector.broadcast %3 : vector<1x128xf32> to vector<8x128xf32>
    %265 = arith.addf %263, %264 : vector<8x128xf32>
    %266 = arith.mulf %260, %265 : vector<8x128xf32>
    %267 = arith.addf %262, %266 : vector<8x128xf32>
    %268 = math.tanh %267 : vector<8x128xf32>
    %269 = arith.subf %244, %268 : vector<8x128xf32>
    %270 = arith.mulf %261, %269 : vector<8x128xf32>
    %271 = arith.addf %268, %270 : vector<8x128xf32>
    %c9_91 = arith.constant 9 : index
    %c0_92 = arith.constant 0 : index
    %c0_93 = arith.constant 0 : index
    %272 = vector.load %arg5[%c9_91, %c0_92, %c0_93] : memref<16x8x128xf32, #tpu.memory_space<vmem>>, vector<1x8x128xf32>
    %273 = vector.shape_cast %272 : vector<1x8x128xf32> to vector<8x128xf32>
    %274 = vector.shape_cast %271 : vector<8x128xf32> to vector<1x8x128xf32>
    tpu.vector_store %arg5[%c9_91, %c0_92, %c0_93], %274 {strides = array<i32>} : memref<16x8x128xf32, #tpu.memory_space<vmem>>, vector<1x8x128xf32>,
    %c10 = arith.constant 10 : index
    %c0_94 = arith.constant 0 : index
    %c0_95 = arith.constant 0 : index
    %275 = vector.load %arg2[%c10, %c0_94, %c0_95] : memref<16x8x384xf32, #tpu.memory_space<vmem>>, vector<1x8x384xf32>
    %276 = vector.shape_cast %275 : vector<1x8x384xf32> to vector<8x384xf32>
    %c0_96 = arith.constant 0 : index
    %c0_97 = arith.constant 0 : index
    %277 = vector.load %arg3[%c0_96, %c0_97] : memref<128x384xf32, #tpu.memory_space<vmem>>, vector<128x384xf32>
    %cst_98 = arith.constant dense<0.000000e+00> : vector<8x384xf32>
    %278 = tpu.matmul %271, %277, %cst_98 {dimension_numbers = #tpu.dot_dimension_numbers<[1], [0], [0], [1], [0, 0, 1, 1], [], []>} : vector<8x128xf32>, vector<128x384xf32>, vector<8x384xf32> -> vector<8x384xf32>
    %279 = vector.extract_strided_slice %276 {offsets = [0, 0], sizes = [8, 256], strides = [1, 1]} : vector<8x384xf32> to vector<8x256xf32>
    %280 = vector.extract_strided_slice %278 {offsets = [0, 0], sizes = [8, 256], strides = [1, 1]} : vector<8x384xf32> to vector<8x256xf32>
    %281 = arith.addf %279, %280 : vector<8x256xf32>
    %282 = arith.negf %281 : vector<8x256xf32>
    %283 = math.exp %282 : vector<8x256xf32>
    %cst_99 = arith.constant 1.000000e+00 : f32
    %284 = vector.broadcast %cst_99 : f32 to vector<8x256xf32>
    %285 = arith.addf %284, %283 : vector<8x256xf32>
    %286 = arith.divf %284, %285 : vector<8x256xf32>
    %287 = vector.extract_strided_slice %286 {offsets = [0, 0], sizes = [8, 128], strides = [1, 1]} : vector<8x256xf32> to vector<8x128xf32>
    %288 = vector.extract_strided_slice %286 {offsets = [0, 128], sizes = [8, 128], strides = [1, 1]} : vector<8x256xf32> to vector<8x128xf32>
    %289 = vector.extract_strided_slice %276 {offsets = [0, 256], sizes = [8, 128], strides = [1, 1]} : vector<8x384xf32> to vector<8x128xf32>
    %290 = vector.extract_strided_slice %278 {offsets = [0, 256], sizes = [8, 128], strides = [1, 1]} : vector<8x384xf32> to vector<8x128xf32>
    %291 = vector.broadcast %3 : vector<1x128xf32> to vector<8x128xf32>
    %292 = arith.addf %290, %291 : vector<8x128xf32>
    %293 = arith.mulf %287, %292 : vector<8x128xf32>
    %294 = arith.addf %289, %293 : vector<8x128xf32>
    %295 = math.tanh %294 : vector<8x128xf32>
    %296 = arith.subf %271, %295 : vector<8x128xf32>
    %297 = arith.mulf %288, %296 : vector<8x128xf32>
    %298 = arith.addf %295, %297 : vector<8x128xf32>
    %c10_100 = arith.constant 10 : index
    %c0_101 = arith.constant 0 : index
    %c0_102 = arith.constant 0 : index
    %299 = vector.load %arg5[%c10_100, %c0_101, %c0_102] : memref<16x8x128xf32, #tpu.memory_space<vmem>>, vector<1x8x128xf32>
    %300 = vector.shape_cast %299 : vector<1x8x128xf32> to vector<8x128xf32>
    %301 = vector.shape_cast %298 : vector<8x128xf32> to vector<1x8x128xf32>
    tpu.vector_store %arg5[%c10_100, %c0_101, %c0_102], %301 {strides = array<i32>} : memref<16x8x128xf32, #tpu.memory_space<vmem>>, vector<1x8x128xf32>,
    %c11 = arith.constant 11 : index
    %c0_103 = arith.constant 0 : index
    %c0_104 = arith.constant 0 : index
    %302 = vector.load %arg2[%c11, %c0_103, %c0_104] : memref<16x8x384xf32, #tpu.memory_space<vmem>>, vector<1x8x384xf32>
    %303 = vector.shape_cast %302 : vector<1x8x384xf32> to vector<8x384xf32>
    %c0_105 = arith.constant 0 : index
    %c0_106 = arith.constant 0 : index
    %304 = vector.load %arg3[%c0_105, %c0_106] : memref<128x384xf32, #tpu.memory_space<vmem>>, vector<128x384xf32>
    %cst_107 = arith.constant dense<0.000000e+00> : vector<8x384xf32>
    %305 = tpu.matmul %298, %304, %cst_107 {dimension_numbers = #tpu.dot_dimension_numbers<[1], [0], [0], [1], [0, 0, 1, 1], [], []>} : vector<8x128xf32>, vector<128x384xf32>, vector<8x384xf32> -> vector<8x384xf32>
    %306 = vector.extract_strided_slice %303 {offsets = [0, 0], sizes = [8, 256], strides = [1, 1]} : vector<8x384xf32> to vector<8x256xf32>
    %307 = vector.extract_strided_slice %305 {offsets = [0, 0], sizes = [8, 256], strides = [1, 1]} : vector<8x384xf32> to vector<8x256xf32>
    %308 = arith.addf %306, %307 : vector<8x256xf32>
    %309 = arith.negf %308 : vector<8x256xf32>
    %310 = math.exp %309 : vector<8x256xf32>
    %cst_108 = arith.constant 1.000000e+00 : f32
    %311 = vector.broadcast %cst_108 : f32 to vector<8x256xf32>
    %312 = arith.addf %311, %310 : vector<8x256xf32>
    %313 = arith.divf %311, %312 : vector<8x256xf32>
    %314 = vector.extract_strided_slice %313 {offsets = [0, 0], sizes = [8, 128], strides = [1, 1]} : vector<8x256xf32> to vector<8x128xf32>
    %315 = vector.extract_strided_slice %313 {offsets = [0, 128], sizes = [8, 128], strides = [1, 1]} : vector<8x256xf32> to vector<8x128xf32>
    %316 = vector.extract_strided_slice %303 {offsets = [0, 256], sizes = [8, 128], strides = [1, 1]} : vector<8x384xf32> to vector<8x128xf32>
    %317 = vector.extract_strided_slice %305 {offsets = [0, 256], sizes = [8, 128], strides = [1, 1]} : vector<8x384xf32> to vector<8x128xf32>
    %318 = vector.broadcast %3 : vector<1x128xf32> to vector<8x128xf32>
    %319 = arith.addf %317, %318 : vector<8x128xf32>
    %320 = arith.mulf %314, %319 : vector<8x128xf32>
    %321 = arith.addf %316, %320 : vector<8x128xf32>
    %322 = math.tanh %321 : vector<8x128xf32>
    %323 = arith.subf %298, %322 : vector<8x128xf32>
    %324 = arith.mulf %315, %323 : vector<8x128xf32>
    %325 = arith.addf %322, %324 : vector<8x128xf32>
    %c11_109 = arith.constant 11 : index
    %c0_110 = arith.constant 0 : index
    %c0_111 = arith.constant 0 : index
    %326 = vector.load %arg5[%c11_109, %c0_110, %c0_111] : memref<16x8x128xf32, #tpu.memory_space<vmem>>, vector<1x8x128xf32>
    %327 = vector.shape_cast %326 : vector<1x8x128xf32> to vector<8x128xf32>
    %328 = vector.shape_cast %325 : vector<8x128xf32> to vector<1x8x128xf32>
    tpu.vector_store %arg5[%c11_109, %c0_110, %c0_111], %328 {strides = array<i32>} : memref<16x8x128xf32, #tpu.memory_space<vmem>>, vector<1x8x128xf32>,
    %c12 = arith.constant 12 : index
    %c0_112 = arith.constant 0 : index
    %c0_113 = arith.constant 0 : index
    %329 = vector.load %arg2[%c12, %c0_112, %c0_113] : memref<16x8x384xf32, #tpu.memory_space<vmem>>, vector<1x8x384xf32>
    %330 = vector.shape_cast %329 : vector<1x8x384xf32> to vector<8x384xf32>
    %c0_114 = arith.constant 0 : index
    %c0_115 = arith.constant 0 : index
    %331 = vector.load %arg3[%c0_114, %c0_115] : memref<128x384xf32, #tpu.memory_space<vmem>>, vector<128x384xf32>
    %cst_116 = arith.constant dense<0.000000e+00> : vector<8x384xf32>
    %332 = tpu.matmul %325, %331, %cst_116 {dimension_numbers = #tpu.dot_dimension_numbers<[1], [0], [0], [1], [0, 0, 1, 1], [], []>} : vector<8x128xf32>, vector<128x384xf32>, vector<8x384xf32> -> vector<8x384xf32>
    %333 = vector.extract_strided_slice %330 {offsets = [0, 0], sizes = [8, 256], strides = [1, 1]} : vector<8x384xf32> to vector<8x256xf32>
    %334 = vector.extract_strided_slice %332 {offsets = [0, 0], sizes = [8, 256], strides = [1, 1]} : vector<8x384xf32> to vector<8x256xf32>
    %335 = arith.addf %333, %334 : vector<8x256xf32>
    %336 = arith.negf %335 : vector<8x256xf32>
    %337 = math.exp %336 : vector<8x256xf32>
    %cst_117 = arith.constant 1.000000e+00 : f32
    %338 = vector.broadcast %cst_117 : f32 to vector<8x256xf32>
    %339 = arith.addf %338, %337 : vector<8x256xf32>
    %340 = arith.divf %338, %339 : vector<8x256xf32>
    %341 = vector.extract_strided_slice %340 {offsets = [0, 0], sizes = [8, 128], strides = [1, 1]} : vector<8x256xf32> to vector<8x128xf32>
    %342 = vector.extract_strided_slice %340 {offsets = [0, 128], sizes = [8, 128], strides = [1, 1]} : vector<8x256xf32> to vector<8x128xf32>
    %343 = vector.extract_strided_slice %330 {offsets = [0, 256], sizes = [8, 128], strides = [1, 1]} : vector<8x384xf32> to vector<8x128xf32>
    %344 = vector.extract_strided_slice %332 {offsets = [0, 256], sizes = [8, 128], strides = [1, 1]} : vector<8x384xf32> to vector<8x128xf32>
    %345 = vector.broadcast %3 : vector<1x128xf32> to vector<8x128xf32>
    %346 = arith.addf %344, %345 : vector<8x128xf32>
    %347 = arith.mulf %341, %346 : vector<8x128xf32>
    %348 = arith.addf %343, %347 : vector<8x128xf32>
    %349 = math.tanh %348 : vector<8x128xf32>
    %350 = arith.subf %325, %349 : vector<8x128xf32>
    %351 = arith.mulf %342, %350 : vector<8x128xf32>
    %352 = arith.addf %349, %351 : vector<8x128xf32>
    %c12_118 = arith.constant 12 : index
    %c0_119 = arith.constant 0 : index
    %c0_120 = arith.constant 0 : index
    %353 = vector.load %arg5[%c12_118, %c0_119, %c0_120] : memref<16x8x128xf32, #tpu.memory_space<vmem>>, vector<1x8x128xf32>
    %354 = vector.shape_cast %353 : vector<1x8x128xf32> to vector<8x128xf32>
    %355 = vector.shape_cast %352 : vector<8x128xf32> to vector<1x8x128xf32>
    tpu.vector_store %arg5[%c12_118, %c0_119, %c0_120], %355 {strides = array<i32>} : memref<16x8x128xf32, #tpu.memory_space<vmem>>, vector<1x8x128xf32>,
    %c13 = arith.constant 13 : index
    %c0_121 = arith.constant 0 : index
    %c0_122 = arith.constant 0 : index
    %356 = vector.load %arg2[%c13, %c0_121, %c0_122] : memref<16x8x384xf32, #tpu.memory_space<vmem>>, vector<1x8x384xf32>
    %357 = vector.shape_cast %356 : vector<1x8x384xf32> to vector<8x384xf32>
    %c0_123 = arith.constant 0 : index
    %c0_124 = arith.constant 0 : index
    %358 = vector.load %arg3[%c0_123, %c0_124] : memref<128x384xf32, #tpu.memory_space<vmem>>, vector<128x384xf32>
    %cst_125 = arith.constant dense<0.000000e+00> : vector<8x384xf32>
    %359 = tpu.matmul %352, %358, %cst_125 {dimension_numbers = #tpu.dot_dimension_numbers<[1], [0], [0], [1], [0, 0, 1, 1], [], []>} : vector<8x128xf32>, vector<128x384xf32>, vector<8x384xf32> -> vector<8x384xf32>
    %360 = vector.extract_strided_slice %357 {offsets = [0, 0], sizes = [8, 256], strides = [1, 1]} : vector<8x384xf32> to vector<8x256xf32>
    %361 = vector.extract_strided_slice %359 {offsets = [0, 0], sizes = [8, 256], strides = [1, 1]} : vector<8x384xf32> to vector<8x256xf32>
    %362 = arith.addf %360, %361 : vector<8x256xf32>
    %363 = arith.negf %362 : vector<8x256xf32>
    %364 = math.exp %363 : vector<8x256xf32>
    %cst_126 = arith.constant 1.000000e+00 : f32
    %365 = vector.broadcast %cst_126 : f32 to vector<8x256xf32>
    %366 = arith.addf %365, %364 : vector<8x256xf32>
    %367 = arith.divf %365, %366 : vector<8x256xf32>
    %368 = vector.extract_strided_slice %367 {offsets = [0, 0], sizes = [8, 128], strides = [1, 1]} : vector<8x256xf32> to vector<8x128xf32>
    %369 = vector.extract_strided_slice %367 {offsets = [0, 128], sizes = [8, 128], strides = [1, 1]} : vector<8x256xf32> to vector<8x128xf32>
    %370 = vector.extract_strided_slice %357 {offsets = [0, 256], sizes = [8, 128], strides = [1, 1]} : vector<8x384xf32> to vector<8x128xf32>
    %371 = vector.extract_strided_slice %359 {offsets = [0, 256], sizes = [8, 128], strides = [1, 1]} : vector<8x384xf32> to vector<8x128xf32>
    %372 = vector.broadcast %3 : vector<1x128xf32> to vector<8x128xf32>
    %373 = arith.addf %371, %372 : vector<8x128xf32>
    %374 = arith.mulf %368, %373 : vector<8x128xf32>
    %375 = arith.addf %370, %374 : vector<8x128xf32>
    %376 = math.tanh %375 : vector<8x128xf32>
    %377 = arith.subf %352, %376 : vector<8x128xf32>
    %378 = arith.mulf %369, %377 : vector<8x128xf32>
    %379 = arith.addf %376, %378 : vector<8x128xf32>
    %c13_127 = arith.constant 13 : index
    %c0_128 = arith.constant 0 : index
    %c0_129 = arith.constant 0 : index
    %380 = vector.load %arg5[%c13_127, %c0_128, %c0_129] : memref<16x8x128xf32, #tpu.memory_space<vmem>>, vector<1x8x128xf32>
    %381 = vector.shape_cast %380 : vector<1x8x128xf32> to vector<8x128xf32>
    %382 = vector.shape_cast %379 : vector<8x128xf32> to vector<1x8x128xf32>
    tpu.vector_store %arg5[%c13_127, %c0_128, %c0_129], %382 {strides = array<i32>} : memref<16x8x128xf32, #tpu.memory_space<vmem>>, vector<1x8x128xf32>,
    %c14 = arith.constant 14 : index
    %c0_130 = arith.constant 0 : index
    %c0_131 = arith.constant 0 : index
    %383 = vector.load %arg2[%c14, %c0_130, %c0_131] : memref<16x8x384xf32, #tpu.memory_space<vmem>>, vector<1x8x384xf32>
    %384 = vector.shape_cast %383 : vector<1x8x384xf32> to vector<8x384xf32>
    %c0_132 = arith.constant 0 : index
    %c0_133 = arith.constant 0 : index
    %385 = vector.load %arg3[%c0_132, %c0_133] : memref<128x384xf32, #tpu.memory_space<vmem>>, vector<128x384xf32>
    %cst_134 = arith.constant dense<0.000000e+00> : vector<8x384xf32>
    %386 = tpu.matmul %379, %385, %cst_134 {dimension_numbers = #tpu.dot_dimension_numbers<[1], [0], [0], [1], [0, 0, 1, 1], [], []>} : vector<8x128xf32>, vector<128x384xf32>, vector<8x384xf32> -> vector<8x384xf32>
    %387 = vector.extract_strided_slice %384 {offsets = [0, 0], sizes = [8, 256], strides = [1, 1]} : vector<8x384xf32> to vector<8x256xf32>
    %388 = vector.extract_strided_slice %386 {offsets = [0, 0], sizes = [8, 256], strides = [1, 1]} : vector<8x384xf32> to vector<8x256xf32>
    %389 = arith.addf %387, %388 : vector<8x256xf32>
    %390 = arith.negf %389 : vector<8x256xf32>
    %391 = math.exp %390 : vector<8x256xf32>
    %cst_135 = arith.constant 1.000000e+00 : f32
    %392 = vector.broadcast %cst_135 : f32 to vector<8x256xf32>
    %393 = arith.addf %392, %391 : vector<8x256xf32>
    %394 = arith.divf %392, %393 : vector<8x256xf32>
    %395 = vector.extract_strided_slice %394 {offsets = [0, 0], sizes = [8, 128], strides = [1, 1]} : vector<8x256xf32> to vector<8x128xf32>
    %396 = vector.extract_strided_slice %394 {offsets = [0, 128], sizes = [8, 128], strides = [1, 1]} : vector<8x256xf32> to vector<8x128xf32>
    %397 = vector.extract_strided_slice %384 {offsets = [0, 256], sizes = [8, 128], strides = [1, 1]} : vector<8x384xf32> to vector<8x128xf32>
    %398 = vector.extract_strided_slice %386 {offsets = [0, 256], sizes = [8, 128], strides = [1, 1]} : vector<8x384xf32> to vector<8x128xf32>
    %399 = vector.broadcast %3 : vector<1x128xf32> to vector<8x128xf32>
    %400 = arith.addf %398, %399 : vector<8x128xf32>
    %401 = arith.mulf %395, %400 : vector<8x128xf32>
    %402 = arith.addf %397, %401 : vector<8x128xf32>
    %403 = math.tanh %402 : vector<8x128xf32>
    %404 = arith.subf %379, %403 : vector<8x128xf32>
    %405 = arith.mulf %396, %404 : vector<8x128xf32>
    %406 = arith.addf %403, %405 : vector<8x128xf32>
    %c14_136 = arith.constant 14 : index
    %c0_137 = arith.constant 0 : index
    %c0_138 = arith.constant 0 : index
    %407 = vector.load %arg5[%c14_136, %c0_137, %c0_138] : memref<16x8x128xf32, #tpu.memory_space<vmem>>, vector<1x8x128xf32>
    %408 = vector.shape_cast %407 : vector<1x8x128xf32> to vector<8x128xf32>
    %409 = vector.shape_cast %406 : vector<8x128xf32> to vector<1x8x128xf32>
    tpu.vector_store %arg5[%c14_136, %c0_137, %c0_138], %409 {strides = array<i32>} : memref<16x8x128xf32, #tpu.memory_space<vmem>>, vector<1x8x128xf32>,
    %c15 = arith.constant 15 : index
    %c0_139 = arith.constant 0 : index
    %c0_140 = arith.constant 0 : index
    %410 = vector.load %arg2[%c15, %c0_139, %c0_140] : memref<16x8x384xf32, #tpu.memory_space<vmem>>, vector<1x8x384xf32>
    %411 = vector.shape_cast %410 : vector<1x8x384xf32> to vector<8x384xf32>
    %c0_141 = arith.constant 0 : index
    %c0_142 = arith.constant 0 : index
    %412 = vector.load %arg3[%c0_141, %c0_142] : memref<128x384xf32, #tpu.memory_space<vmem>>, vector<128x384xf32>
    %cst_143 = arith.constant dense<0.000000e+00> : vector<8x384xf32>
    %413 = tpu.matmul %406, %412, %cst_143 {dimension_numbers = #tpu.dot_dimension_numbers<[1], [0], [0], [1], [0, 0, 1, 1], [], []>} : vector<8x128xf32>, vector<128x384xf32>, vector<8x384xf32> -> vector<8x384xf32>
    %414 = vector.extract_strided_slice %411 {offsets = [0, 0], sizes = [8, 256], strides = [1, 1]} : vector<8x384xf32> to vector<8x256xf32>
    %415 = vector.extract_strided_slice %413 {offsets = [0, 0], sizes = [8, 256], strides = [1, 1]} : vector<8x384xf32> to vector<8x256xf32>
    %416 = arith.addf %414, %415 : vector<8x256xf32>
    %417 = arith.negf %416 : vector<8x256xf32>
    %418 = math.exp %417 : vector<8x256xf32>
    %cst_144 = arith.constant 1.000000e+00 : f32
    %419 = vector.broadcast %cst_144 : f32 to vector<8x256xf32>
    %420 = arith.addf %419, %418 : vector<8x256xf32>
    %421 = arith.divf %419, %420 : vector<8x256xf32>
    %422 = vector.extract_strided_slice %421 {offsets = [0, 0], sizes = [8, 128], strides = [1, 1]} : vector<8x256xf32> to vector<8x128xf32>
    %423 = vector.extract_strided_slice %421 {offsets = [0, 128], sizes = [8, 128], strides = [1, 1]} : vector<8x256xf32> to vector<8x128xf32>
    %424 = vector.extract_strided_slice %411 {offsets = [0, 256], sizes = [8, 128], strides = [1, 1]} : vector<8x384xf32> to vector<8x128xf32>
    %425 = vector.extract_strided_slice %413 {offsets = [0, 256], sizes = [8, 128], strides = [1, 1]} : vector<8x384xf32> to vector<8x128xf32>
    %426 = vector.broadcast %3 : vector<1x128xf32> to vector<8x128xf32>
    %427 = arith.addf %425, %426 : vector<8x128xf32>
    %428 = arith.mulf %422, %427 : vector<8x128xf32>
    %429 = arith.addf %424, %428 : vector<8x128xf32>
    %430 = math.tanh %429 : vector<8x128xf32>
    %431 = arith.subf %406, %430 : vector<8x128xf32>
    %432 = arith.mulf %423, %431 : vector<8x128xf32>
    %433 = arith.addf %430, %432 : vector<8x128xf32>
    %c15_145 = arith.constant 15 : index
    %c0_146 = arith.constant 0 : index
    %c0_147 = arith.constant 0 : index
    %434 = vector.load %arg5[%c15_145, %c0_146, %c0_147] : memref<16x8x128xf32, #tpu.memory_space<vmem>>, vector<1x8x128xf32>
    %435 = vector.shape_cast %434 : vector<1x8x128xf32> to vector<8x128xf32>
    %436 = vector.shape_cast %433 : vector<8x128xf32> to vector<1x8x128xf32>
    tpu.vector_store %arg5[%c15_145, %c0_146, %c0_147], %436 {strides = array<i32>} : memref<16x8x128xf32, #tpu.memory_space<vmem>>, vector<1x8x128xf32>,
    %c0_148 = arith.constant 0 : index
    %c0_149 = arith.constant 0 : index
    %437 = vector.load %arg6[%c0_148, %c0_149] : memref<8x128xf32, #tpu.memory_space<vmem>>, vector<8x128xf32>
    tpu.vector_store %arg6[%c0_148, %c0_149], %433 {strides = array<i32>} : memref<8x128xf32, #tpu.memory_space<vmem>>, vector<8x128xf32>,
    return
  }
  func.func @transform_0(%arg0: i32, %arg1: i32) -> (i32, i32, i32) {
    %c0_i32 = arith.constant 0 : i32
    %c0_i32_0 = arith.constant 0 : i32
    return %arg1, %arg0, %c0_i32 : i32, i32, i32
  }
  func.func @transform_1(%arg0: i32, %arg1: i32) -> (i32, i32) {
    %c0_i32 = arith.constant 0 : i32
    %c0_i32_0 = arith.constant 0 : i32
    %c0_i32_1 = arith.constant 0 : i32
    return %c0_i32, %c0_i32_0 : i32, i32
  }
  func.func @transform_2(%arg0: i32, %arg1: i32) -> (i32, i32) {
    %c0_i32 = arith.constant 0 : i32
    %c0_i32_0 = arith.constant 0 : i32
    %c0_i32_1 = arith.constant 0 : i32
    return %c0_i32, %c0_i32_0 : i32, i32
  }
  func.func @transform_3(%arg0: i32, %arg1: i32) -> (i32, i32, i32) {
    %c0_i32 = arith.constant 0 : i32
    %c0_i32_0 = arith.constant 0 : i32
    return %arg1, %arg0, %c0_i32 : i32, i32, i32
  }
}

</mosaic_0001>

<bundles_post_ra>
// kernel: tpu_custom_call.1
= control target key start
LH: loop header
LB: loop body
LE: loop exit
PB: predicated region body
PF: predicated region fallthrough
CT: control target
= control target key end

     0   :  { %8 = vsyncpa [#allocation4], 0  ;;  %s6465_s0 = inlined_call_operand.hbm [shape: f32[16,8,384], index: 0, kind: input, shape index: {}]   ;;  %s6466_s1 = inlined_call_operand.hbm [shape: f32[128,384], index: 1, kind: input, shape index: {}]   ;;  %s6467_s2 = inlined_call_operand.vmem [shape: f32[1,128], index: 2, kind: input, shape index: {}]   ;;  %s6468_s3 = inlined_call_operand.hbm [shape: f32[16,8,128], index: 3, kind: output, shape index: {}]  }
   0x1   :  { %9 = vsyncpa [#allocation7], 0 }
   0x2   :  { %10 = vsyncpa [#allocation5], 0  ;;  %s5534_s12 = smov [#allocation3]   ;;  %s5462_s16 = scalar_lea.hbm %s6465_s0, 6144 }
   0x3   :  { %s16_s13 = sshll.u32 %s5534_s12, 4  ;;  %p5463_p0 = scmp.ne.s32.totalorder %s6465_s0, %s5462_s16  ;;  %s17_s13 = int_to_ptr.vmem [resolvable:$true] %s16_s13 }
   0x4   :  { %p5466_p1 = scmp.lt.u32.totalorder %s5462_s16, %s6465_s0 }
   0x6   :  { %p5468_p2 = pnand %p5466_p1, %p5463_p0 }
   0x8   :  { %5471 = shalt.err (!%p5468_p2)
}
   0x9   :  { %s5472_s21 = scalar_lea.vmem %s17_s13, 6144  ;;  %p5477_p4 = scmp.lt.s32.totalorder %s17_s13, %s17_s13 }
   0xa   :  { %p5473_p3 = scmp.ne.s32.totalorder %s17_s13, %s5472_s21  ;;  %p5478_p5 = scmp.lt.s32.totalorder %s5472_s21, %s5472_s21 }
   0xc   :  { %p5479_p6 = por %p5478_p5, %p5477_p4 }
   0xe   :  { %p5480_p7 = pnand %p5479_p6, %p5473_p3 }
  0x10   :  { %5483 = shalt.err (!%p5480_p7)
}
  0x11   :  { %s5535_s22 = smov 384   ;;  %s5536_s23 = smov 24  }
  0x12   :  { %22 = dma.hbm_to_vmem [thread:$0]  %s6465_s0, 6144, %s17_s13, [#allocation4], %s5535_s22, %s5535_s22, %s5536_s23  }
  0x13   :  { %s5537_s26 = smov [#allocation6]   ;;  %s5484_s30 = scalar_lea.hbm %s6466_s1, 6144 }
  0x14   :  { %s28_s27 = sshll.u32 %s5537_s26, 4  ;;  %p5485_p8 = scmp.ne.s32.totalorder %s6466_s1, %s5484_s30  ;;  %s29_s27 = int_to_ptr.vmem [resolvable:$true] %s28_s27 }
  0x15   :  { %p5488_p9 = scmp.lt.u32.totalorder %s5484_s30, %s6466_s1 }
  0x17   :  { %p5490_p10 = pnand %p5488_p9, %p5485_p8 }
  0x19   :  { %5493 = shalt.err (!%p5490_p10)
}
  0x1a   :  { %s5494_s8 = scalar_lea.vmem %s29_s27, 6144  ;;  %p5499_p12 = scmp.lt.s32.totalorder %s29_s27, %s29_s27 }
  0x1b   :  { %p5495_p11 = scmp.ne.s32.totalorder %s29_s27, %s5494_s8  ;;  %p5500_p13 = scmp.lt.s32.totalorder %s5494_s8, %s5494_s8 }
  0x1d   :  { %p5501_p0 = por %p5500_p13, %p5499_p12 }
  0x1f   :  { %p5502_p1 = pnand %p5501_p0, %p5495_p11 }
  0x21   :  { %5505 = shalt.err (!%p5502_p1)
}
  0x22   :  { %34 = dma.hbm_to_vmem [thread:$0]  %s6466_s1, 6144, %s29_s27, [#allocation7], %s5535_s22, %s5535_s22, %s5536_s23  }
  0x23   :  { %5528 = dma.done.wait [#allocation4], 6144  }
  0x24   :  { %5529 = vsyncadd [#allocation4], 4294961152 }
  0x25   :  { %5530 = dma.done.wait [#allocation7], 6144  }
  0x26   :  { %5531 = vsyncadd [#allocation7], 4294961152  ;;  %v5538_v0 = vmov 0.0|0.0   ;;  %v5539_v1 = vmov 0.0   ;;  %vm5540_vm0 = vmmov 0   ;;  %v54_v2 = vld [vmem:[#allocation6 + $0x8] sm:$0xff] }
  0x27   :  { %4426 = vmatprep.subr.bf16.mxu1 %v5538_v0  ;;  %165 = vmatprep.mubr.f32.mxu0 %v5539_v1  ;;  %v57_v3 = vld [vmem:[#allocation6 + $0x20] sm:$0xff]  ;;  %v56_v6 = vld [vmem:[#allocation6 + $0x18] sm:$0xff]  ;;  %v63_v8 = vld [vmem:[#allocation6 + $0x50] sm:$0xff] }
  0x28   :  { %3866 = vmatprep.mubr.msk.f32.mxu1 %vm5540_vm0, %v5539_v1  ;;  %v53_v4 = vld [vmem:[#allocation6] sm:$0xff]  ;;  %v5592_v5 = vpack.c.bf16 %v57_v3, %v54_v2  ;;  %v60_v7 = vld [vmem:[#allocation6 + $0x38] sm:$0xff]  ;;  %v59_v11 = vld [vmem:[#allocation6 + $0x30] sm:$0xff] }
  0x29   :  { %v5594_v9 = vpack.c.bf16 %v56_v6, %v53_v4  ;;  %v5596_v10 = vpack.c.bf16 %v63_v8, %v60_v7  ;;  %v62_v12 = vld [vmem:[#allocation6 + $0x48] sm:$0xff]  ;;  %v69_v14 = vld [vmem:[#allocation6 + $0x80] sm:$0xff]  ;;  %v68_v18 = vld [vmem:[#allocation6 + $0x78] sm:$0xff] }
  0x2a   :  { %v66_v13 = vld [vmem:[#allocation6 + $0x68] sm:$0xff]  ;;  %4395 = vmatprep.subr.bf16.mxu0 %v5592_v5  ;;  %v5600_v15 = vpack.c.bf16 %v62_v12, %v59_v11  ;;  %v65_v17 = vld [vmem:[#allocation6 + $0x60] sm:$0xff]  ;;  %v72_v19 = vld [vmem:[#allocation6 + $0x98] sm:$0xff] }
  0x2b   :  { %4397 = vmatpush1.bf16.msra.mxu0 %v5594_v9  ;;  %v5603_v16 = vpack.c.bf16 %v69_v14, %v66_v13  ;;  %v75_v20 = vld [vmem:[#allocation6 + $0xb0] sm:$0xff]  ;;  %v5606_v21 = vpack.c.bf16 %v68_v18, %v65_v17  ;;  %v74_v24 = vld [vmem:[#allocation6 + $0xa8] sm:$0xff]  ;;  %v81_v28 = vld [vmem:[#allocation6 + $0xe0] sm:$0xff] }
  0x2c   :  { %4399 = vmatprep.subr.bf16.mxu0 %v5596_v10  ;;  %v71_v22 = vld [vmem:[#allocation6 + $0x90] sm:$0xff]  ;;  %v5609_v23 = vpack.c.bf16 %v75_v20, %v72_v19  ;;  %v58_v26 = vld [vmem:[#allocation6 + $0x28] sm:$0xff]  ;;  %v61_v30 = vld [vmem:[#allocation6 + $0x40] sm:$0xff] }
  0x2d   :  { %v55_v25 = vld [vmem:[#allocation6 + $0x10] sm:$0xff]  ;;  %v78_v27 = vld [vmem:[#allocation6 + $0xc8] sm:$0xff]  ;;  %v64_v31 = vld [vmem:[#allocation6 + $0x58] sm:$0xff]  ;;  %v5614_v32 = vpack.c.bf16 %v74_v24, %v71_v22 }
  0x2e   :  { %v5611_v29 = vpack.c.bf16 %v58_v26, %v55_v25  ;;  %v77_v33 = vld [vmem:[#allocation6 + $0xc0] sm:$0xff]  ;;  %v5617_v34 = vpack.c.bf16 %v64_v31, %v61_v30  ;;  %v5620_v35 = vpack.c.bf16 %v81_v28, %v78_v27  ;;  %v80_v36 = vld [vmem:[#allocation6 + $0xd8] sm:$0xff]  ;;  %v67_v37 = vld [vmem:[#allocation6 + $0x70] sm:$0xff] }
  0x2f   :  { %4401 = vmatpush1.bf16.msra.mxu0 %v5600_v15  ;;  %v70_v38 = vld [vmem:[#allocation6 + $0x88] sm:$0xff]  ;;  %v84_v39 = vld [vmem:[#allocation6 + $0xf8] sm:$0xff]  ;;  %v87_v40 = vld [vmem:[#allocation6 + $0x110] sm:$0xff]  ;;  %v5624_v41 = vpack.c.bf16 %v80_v36, %v77_v33 }
  0x30   :  { %4403 = vmatprep.subr.bf16.mxu0 %v5603_v16  ;;  %4428 = vmatpush3.bf16.msra.mxu1 %v5611_v29  ;;  %v83_v42 = vld [vmem:[#allocation6 + $0xf0] sm:$0xff]  ;;  %v5627_v43 = vpack.c.bf16 %v70_v38, %v67_v37  ;;  %v5630_v44 = vpack.c.bf16 %v87_v40, %v84_v39  ;;  %v86_v45 = vld [vmem:[#allocation6 + $0x108] sm:$0xff]  ;;  %v73_v46 = vld [vmem:[#allocation6 + $0xa0] sm:$0xff] }
  0x31   :  { %4429 = vmatprep.subr.bf16.mxu1 %v5538_v0  ;;  %v76_v47 = vld [vmem:[#allocation6 + $0xb8] sm:$0xff]  ;;  %v90_v48 = vld [vmem:[#allocation6 + $0x128] sm:$0xff]  ;;  %v93_v49 = vld [vmem:[#allocation6 + $0x140] sm:$0xff]  ;;  %v5634_v50 = vpack.c.bf16 %v86_v45, %v83_v42 }
  0x32   :  { %v89_v51 = vld [vmem:[#allocation6 + $0x120] sm:$0xff]  ;;  %v5637_v52 = vpack.c.bf16 %v76_v47, %v73_v46  ;;  %v5640_v53 = vpack.c.bf16 %v93_v49, %v90_v48  ;;  %v92_v54 = vld [vmem:[#allocation6 + $0x138] sm:$0xff]  ;;  %v79_v55 = vld [vmem:[#allocation6 + $0xd0] sm:$0xff] }
  0x33   :  { %4405 = vmatpush1.bf16.msra.mxu0 %v5606_v21  ;;  %v82_v56 = vld [vmem:[#allocation6 + $0xe8] sm:$0xff]  ;;  %v96_v57 = vld [vmem:[#allocation6 + $0x158] sm:$0xff]  ;;  %v99_v58 = vld [vmem:[#allocation6 + $0x170] sm:$0xff]  ;;  %v5644_v59 = vpack.c.bf16 %v92_v54, %v89_v51 }
  0x34   :  { %4407 = vmatprep.subr.bf16.mxu0 %v5609_v23  ;;  %4431 = vmatpush3.bf16.msra.mxu1 %v5617_v34  ;;  %v95_v60 = vld [vmem:[#allocation6 + $0x150] sm:$0xff]  ;;  %v5647_v61 = vpack.c.bf16 %v82_v56, %v79_v55  ;;  %v5650_v62 = vpack.c.bf16 %v99_v58, %v96_v57  ;;  %v98_v63 = vld [vmem:[#allocation6 + $0x168] sm:$0xff]  ;;  %v85_v2 = vld [vmem:[#allocation6 + $0x100] sm:$0xff] }
  0x35   :  { %4432 = vmatprep.subr.bf16.mxu1 %v5538_v0  ;;  %v88_v3 = vld [vmem:[#allocation6 + $0x118] sm:$0xff]  ;;  %v5654_v4 = vpack.c.bf16 %v98_v63, %v95_v60  ;;  %v91_v7 = vld [vmem:[#allocation6 + $0x130] sm:$0xff]  ;;  %v94_v8 = vld [vmem:[#allocation6 + $0x148] sm:$0xff] }
  0x36   :  { %v5657_v6 = vpack.c.bf16 %v88_v3, %v85_v2  ;;  %v5663_v11 = vpack.c.bf16 %v94_v8, %v91_v7  ;;  %v97_v12 = vld [vmem:[#allocation6 + $0x160] sm:$0xff]  ;;  %v100_v13 = vld [vmem:[#allocation6 + $0x178] sm:$0xff]  ;;  %v51_v24 = vld [vmem:[#allocation3 + $0x8] sm:$0xff] }
  0x37   :  { %4409 = vmatpush1.bf16.msra.mxu0 %v5614_v32  ;;  %v5669_v14 = vpack.c.bf16 %v100_v13, %v97_v12  ;;  %v50_v17 = vld [vmem:[#allocation3] sm:$0xff]  ;;  %v52_v39 = vld [vmem:[#allocation3 + $0x10] sm:$0xff]  ;;  %v271_v54 = vld [vmem:[#allocation3 + $0x18] sm:$0xff] }
  0x38   :  { %4411 = vmatprep.subr.bf16.mxu0 %v5620_v35  ;;  %4434 = vmatpush3.bf16.msra.mxu1 %v5627_v43  ;;  %v5713_v33 = vld [vmem:[%s6467_s2] ss:$0 sm:$0xff] }
  0x39   :  { %4435 = vmatprep.subr.bf16.mxu1 %v5538_v0  ;;  %v272_v2 = vld [vmem:[#allocation3 + $0x20] sm:$0xff] }
  0x3b   :  { %4413 = vmatpush1.bf16.msra.mxu0 %v5624_v41 }
  0x3c   :  { %4415 = vmatprep.subr.bf16.mxu0 %v5630_v44  ;;  %4437 = vmatpush3.bf16.msra.mxu1 %v5637_v52 }
  0x3d   :  { %4438 = vmatprep.subr.bf16.mxu1 %v5538_v0 }
  0x3f   :  { %4417 = vmatpush1.bf16.msra.mxu0 %v5634_v50 }
  0x40   :  { %4419 = vmatprep.subr.bf16.mxu0 %v5640_v53  ;;  %4440 = vmatpush3.bf16.msra.mxu1 %v5647_v61 }
  0x41   :  { %4441 = vmatprep.subr.bf16.mxu1 %v5538_v0 }
  0x43   :  { %4421 = vmatpush1.bf16.msra.mxu0 %v5644_v59 }
  0x44   :  { %4423 = vmatprep.subr.bf16.mxu0 %v5650_v62  ;;  %4443 = vmatpush3.bf16.msra.mxu1 %v5657_v6 }
  0x45   :  { %4444 = vmatprep.subr.bf16.mxu1 %v5538_v0 }
  0x47   :  { %4425 = vmatpush1.bf16.msra.mxu0 %v5654_v4 }
  0x48   :  { %4451 = vmatprep.subr.bf16.mxu0 %v5592_v5  ;;  %4446 = vmatpush3.bf16.msra.mxu1 %v5663_v11 }
  0x49   :  { %4447 = vmatprep.subr.bf16.mxu1 %v5538_v0 }
  0x4a   :  { %166 = vmatmul.mubr.f32.vlgmr.msra.gmra.mrb[0].mxu0 %v5539_v1 }
  0x4b   :  { %4453 = vmatpush1.bf16.msra.mxu0 %v5594_v9  ;;  %386 = vmatprep.mubr.f32.mxu0 %v5539_v1 }
  0x4c   :  { %4455 = vmatprep.subr.bf16.mxu0 %v5596_v10  ;;  %4449 = vmatpush3.bf16.msra.mxu1 %v5669_v14 }
  0x4d   :  { %4482 = vmatprep.subr.bf16.mxu1 %v5538_v0 }
  0x4f   :  { %4457 = vmatpush1.bf16.msra.mxu0 %v5600_v15  ;;  %3867 = vmatmul.mubr.f32.vlgmr.msra.gmra.mrb[0].mxu1 %v5539_v1 }
  0x50   :  { %4459 = vmatprep.subr.bf16.mxu0 %v5603_v16  ;;  %4484 = vmatpush3.bf16.msra.mxu1 %v5611_v29 }
  0x51   :  { %4485 = vmatprep.subr.bf16.mxu1 %v5538_v0  ;;  %3901 = vmatprep.mubr.msk.f32.mxu1 %vm5540_vm0, %v5539_v1 }
  0x53   :  { %4461 = vmatpush1.bf16.msra.mxu0 %v5606_v21 }
  0x54   :  { %4463 = vmatprep.subr.bf16.mxu0 %v5609_v23  ;;  %4487 = vmatpush3.bf16.msra.mxu1 %v5617_v34 }
  0x55   :  { %4488 = vmatprep.subr.bf16.mxu1 %v5538_v0 }
  0x57   :  { %4465 = vmatpush1.bf16.msra.mxu0 %v5614_v32 }
  0x58   :  { %4467 = vmatprep.subr.bf16.mxu0 %v5620_v35  ;;  %4490 = vmatpush3.bf16.msra.mxu1 %v5627_v43 }
  0x59   :  { %4491 = vmatprep.subr.bf16.mxu1 %v5538_v0 }
  0x5b   :  { %4469 = vmatpush1.bf16.msra.mxu0 %v5624_v41 }
  0x5c   :  { %4471 = vmatprep.subr.bf16.mxu0 %v5630_v44  ;;  %4493 = vmatpush3.bf16.msra.mxu1 %v5637_v52 }
  0x5d   :  { %4494 = vmatprep.subr.bf16.mxu1 %v5538_v0 }
  0x5f   :  { %4473 = vmatpush1.bf16.msra.mxu0 %v5634_v50 }
  0x60   :  { %4475 = vmatprep.subr.bf16.mxu0 %v5640_v53  ;;  %4496 = vmatpush3.bf16.msra.mxu1 %v5647_v61 }
  0x61   :  { %4497 = vmatprep.subr.bf16.mxu1 %v5538_v0 }
  0x63   :  { %4477 = vmatpush1.bf16.msra.mxu0 %v5644_v59 }
  0x64   :  { %4479 = vmatprep.subr.bf16.mxu0 %v5650_v62  ;;  %4499 = vmatpush3.bf16.msra.mxu1 %v5657_v6 }
  0x65   :  { %4500 = vmatprep.subr.bf16.mxu1 %v5538_v0 }
  0x67   :  { %4481 = vmatpush1.bf16.msra.mxu0 %v5654_v4 }
  0x68   :  { %4507 = vmatprep.subr.bf16.mxu0 %v5592_v5  ;;  %4502 = vmatpush3.bf16.msra.mxu1 %v5663_v11 }
  0x69   :  { %4503 = vmatprep.subr.bf16.mxu1 %v5538_v0 }
  0x6c   :  { %4505 = vmatpush3.bf16.msra.mxu1 %v5669_v14 }
  0x6d   :  { %4538 = vmatprep.subr.bf16.mxu1 %v5538_v0 }
 0x11d   :  { %v167_v18 = vpop.f32.mrb[0].mxu0 }
 0x11e   :  { %v242_v19 = vadd.f32 %v167_v18, %v50_v17  ;;  %v169_v20 = vpop.f32.mrb[1].mxu0  ;;  %v273_v18 = vld [vmem:[#allocation3 + $0x28] sm:$0xff] }
 0x11f   :  { %v243_v26 = vadd.f32 %v169_v20, %v51_v24 }
 0x120   :  { %v3529_v22 = vmul.f32 -1.442695, %v242_v19 }
 0x121   :  { %v3530_v28 = vmul.f32 -1.442695, %v243_v26 }
 0x122   :  { %5300 = vpow2.f32 %v3529_v22  ;;  %v238_v25 = vpop.f32.mrb[0].mxu1 }
 0x123   :  { %v3868_v27 = vpop.f32.mrb[1].mxu1  ;;  %5302 = vpow2.f32 %v3530_v28  ;;  %v262_v36 = vadd.f32 %v5713_v33, %v238_v25 }
 0x12c   :  { %v5301_v30 = vpop.eup %5300 }
 0x12d   :  { %v250_v31 = vadd.f32 1.0, %v5301_v30  ;;  %v5303_v37 = vpop.eup %5302 }
 0x12e   :  { %v251_v42 = vadd.f32 1.0, %v5303_v37 }
 0x12f   :  { %5304 = vrcp.f32 %v250_v31 }
 0x139   :  { %v5305_v38 = vpop.eup %5304 }
 0x13a   :  { %v263_v40 = vmul.f32 %v5305_v38, %v262_v36 }
 0x13c   :  { %v264_v45 = vadd.f32 %v263_v40, %v52_v39 }
 0x13e   :  { %5306 = vtanh.f32 %v264_v45  ;;  %v922_v45 = vld [vmem:[#allocation6] sm:$0xff] }
 0x13f   :  { %5308 = vrcp.f32 %v251_v42 }
 0x148   :  { %v5307_v46 = vpop.eup %5306 }
 0x149   :  { %v266_v47 = vsub.f32 0.0, %v5307_v46  ;;  %v5309_v48 = vpop.eup %5308 }
 0x14b   :  { %v267_v49 = vmul.f32 %v5309_v48, %v266_v47  ;;  %v928_v48 = vld [vmem:[#allocation6 + $0x30] sm:$0xff] }
 0x14d   :  { %v5716_v51 = vadd.f32 %v5307_v46, %v267_v49 }
 0x14f   :  { %269 = vst [vmem:[#allocation8] sm:$0xff] %v5716_v51  ;;  %387 = vmatmul.mubr.f32.vlgmr.msra.gmra.mrb[2].mxu0 %v5716_v51  ;;  %3902 = vmatmul.mubr.f32.vlgmr.msra.gmra.mrb[2].mxu1 %v5716_v51 }
 0x150   :  { %4509 = vmatpush1.bf16.msra.mxu0 %v5594_v9  ;;  %4540 = vmatpush3.bf16.msra.mxu1 %v5611_v29 }
 0x151   :  { %4511 = vmatprep.subr.bf16.mxu0 %v5596_v10  ;;  %4541 = vmatprep.subr.bf16.mxu1 %v5538_v0 }
 0x152   :  { %602 = vmatprep.mubr.f32.mxu0 %v5539_v1  ;;  %3936 = vmatprep.mubr.msk.f32.mxu1 %vm5540_vm0, %v5539_v1 }
 0x154   :  { %4513 = vmatpush1.bf16.msra.mxu0 %v5600_v15  ;;  %4543 = vmatpush3.bf16.msra.mxu1 %v5617_v34 }
 0x155   :  { %4515 = vmatprep.subr.bf16.mxu0 %v5603_v16  ;;  %4544 = vmatprep.subr.bf16.mxu1 %v5538_v0 }
 0x158   :  { %4517 = vmatpush1.bf16.msra.mxu0 %v5606_v21  ;;  %4546 = vmatpush3.bf16.msra.mxu1 %v5627_v43 }
 0x159   :  { %4519 = vmatprep.subr.bf16.mxu0 %v5609_v23  ;;  %4547 = vmatprep.subr.bf16.mxu1 %v5538_v0 }
 0x15c   :  { %4521 = vmatpush1.bf16.msra.mxu0 %v5614_v32  ;;  %4549 = vmatpush3.bf16.msra.mxu1 %v5637_v52 }
 0x15d   :  { %4523 = vmatprep.subr.bf16.mxu0 %v5620_v35  ;;  %4550 = vmatprep.subr.bf16.mxu1 %v5538_v0 }
 0x160   :  { %4525 = vmatpush1.bf16.msra.mxu0 %v5624_v41  ;;  %4552 = vmatpush3.bf16.msra.mxu1 %v5647_v61 }
 0x161   :  { %4527 = vmatprep.subr.bf16.mxu0 %v5630_v44  ;;  %4553 = vmatprep.subr.bf16.mxu1 %v5538_v0 }
 0x164   :  { %4529 = vmatpush1.bf16.msra.mxu0 %v5634_v50  ;;  %4555 = vmatpush3.bf16.msra.mxu1 %v5657_v6 }
 0x165   :  { %4531 = vmatprep.subr.bf16.mxu0 %v5640_v53  ;;  %4556 = vmatprep.subr.bf16.mxu1 %v5538_v0 }
 0x168   :  { %4533 = vmatpush1.bf16.msra.mxu0 %v5644_v59  ;;  %4558 = vmatpush3.bf16.msra.mxu1 %v5663_v11 }
 0x169   :  { %4535 = vmatprep.subr.bf16.mxu0 %v5650_v62  ;;  %4559 = vmatprep.subr.bf16.mxu1 %v5538_v0 }
 0x16c   :  { %4537 = vmatpush1.bf16.msra.mxu0 %v5654_v4  ;;  %4561 = vmatpush3.bf16.msra.mxu1 %v5669_v14 }
 0x16d   :  { %4563 = vmatprep.subr.bf16.mxu0 %v5592_v5  ;;  %4594 = vmatprep.subr.bf16.mxu1 %v5538_v0 }
 0x222   :  { %v388_v55 = vpop.f32.mrb[2].mxu0  ;;  %v459_v56 = vpop.f32.mrb[2].mxu1 }
 0x223   :  { %v463_v57 = vadd.f32 %v388_v55, %v271_v54  ;;  %v390_v58 = vpop.f32.mrb[3].mxu0  ;;  %v3903_v60 = vpop.f32.mrb[3].mxu1  ;;  %v477_v5 = vadd.f32 %v5713_v33, %v459_v56  ;;  %v938_v54 = vld [vmem:[#allocation6 + $0x80] sm:$0xff] }
 0x224   :  { %v464_v3 = vadd.f32 %v390_v58, %v272_v2  ;;  %v934_v56 = vld [vmem:[#allocation6 + $0x60] sm:$0xff]  ;;  %v941_v60 = vld [vmem:[#allocation6 + $0x98] sm:$0xff] }
 0x225   :  { %v3532_v63 = vmul.f32 -1.442695, %v463_v57  ;;  %v937_v57 = vld [vmem:[#allocation6 + $0x78] sm:$0xff] }
 0x226   :  { %v3533_v7 = vmul.f32 -1.442695, %v464_v3  ;;  %v5833_v58 = vpack.c.bf16 %v937_v57, %v934_v56  ;;  %v940_v3 = vld [vmem:[#allocation6 + $0x90] sm:$0xff] }
 0x227   :  { %5310 = vpow2.f32 %v3532_v63  ;;  %v944_v63 = vld [vmem:[#allocation6 + $0xb0] sm:$0xff] }
 0x228   :  { %5312 = vpow2.f32 %v3533_v7  ;;  %v5837_v2 = vpack.c.bf16 %v944_v63, %v941_v60  ;;  %v943_v7 = vld [vmem:[#allocation6 + $0xa8] sm:$0xff] }
 0x231   :  { %v5311_v8 = vpop.eup %5310 }
 0x232   :  { %v471_v12 = vadd.f32 1.0, %v5311_v8  ;;  %v5313_v13 = vpop.eup %5312  ;;  %v5839_v8 = vpack.c.bf16 %v943_v7, %v940_v3 }
 0x233   :  { %v472_v22 = vadd.f32 1.0, %v5313_v13  ;;  %v950_v13 = vld [vmem:[#allocation6 + $0xe0] sm:$0xff] }
 0x234   :  { %5314 = vrcp.f32 %v471_v12  ;;  %v947_v12 = vld [vmem:[#allocation6 + $0xc8] sm:$0xff] }
 0x23e   :  { %v5315_v17 = vpop.eup %5314 }
 0x23f   :  { %v478_v19 = vmul.f32 %v5315_v17, %v477_v5  ;;  %v5843_v5 = vpack.c.bf16 %v950_v13, %v947_v12  ;;  %v946_v17 = vld [vmem:[#allocation6 + $0xc0] sm:$0xff] }
 0x241   :  { %v479_v20 = vadd.f32 %v478_v19, %v273_v18  ;;  %v949_v18 = vld [vmem:[#allocation6 + $0xd8] sm:$0xff] }
 0x242   :  { %v5845_v19 = vpack.c.bf16 %v949_v18, %v946_v17  ;;  %v1143_v17 = vld [vmem:[#allocation6 + $0x28] sm:$0xff] }
 0x243   :  { %5316 = vtanh.f32 %v479_v20  ;;  %v953_v20 = vld [vmem:[#allocation6 + $0xf8] sm:$0xff] }
 0x244   :  { %5318 = vrcp.f32 %v472_v22  ;;  %v956_v22 = vld [vmem:[#allocation6 + $0x110] sm:$0xff] }
 0x24d   :  { %v5317_v24 = vpop.eup %5316 }
 0x24e   :  { %v481_v25 = vsub.f32 %v5716_v51, %v5317_v24  ;;  %v5319_v26 = vpop.eup %5318  ;;  %v935_v51 = vld [vmem:[#allocation6 + $0x68] sm:$0xff] }
 0x24f   :  { %v5831_v55 = vpack.c.bf16 %v938_v54, %v935_v51  ;;  %v705_v54 = vld [vmem:[#allocation3 + $0x58] sm:$0xff] }
 0x250   :  { %v482_v27 = vmul.f32 %v5319_v26, %v481_v25  ;;  %v5848_v25 = vpack.c.bf16 %v956_v22, %v953_v20  ;;  %v955_v26 = vld [vmem:[#allocation6 + $0x108] sm:$0xff]  ;;  %v1146_v20 = vld [vmem:[#allocation6 + $0x40] sm:$0xff]  ;;  %v1149_v22 = vld [vmem:[#allocation6 + $0x58] sm:$0xff] }
 0x252   :  { %v5758_v28 = vadd.f32 %v5317_v24, %v482_v27  ;;  %v952_v24 = vld [vmem:[#allocation6 + $0xf0] sm:$0xff]  ;;  %v959_v27 = vld [vmem:[#allocation6 + $0x128] sm:$0xff] }
 0x254   :  { %485 = vst [vmem:[#allocation8 + $0x8] sm:$0xff] %v5758_v28  ;;  %603 = vmatmul.mubr.f32.vlgmr.msra.gmra.mrb[4].mxu0 %v5758_v28  ;;  %3937 = vmatmul.mubr.f32.vlgmr.msra.gmra.mrb[4].mxu1 %v5758_v28 }
 0x255   :  { %4565 = vmatpush1.bf16.msra.mxu0 %v5594_v9  ;;  %4596 = vmatpush3.bf16.msra.mxu1 %v5611_v29  ;;  %v487_v9 = vld [vmem:[#allocation3 + $0x30] sm:$0xff] }
 0x256   :  { %4567 = vmatprep.subr.bf16.mxu0 %v5596_v10  ;;  %4597 = vmatprep.subr.bf16.mxu1 %v5538_v0 }
 0x257   :  { %818 = vmatprep.mubr.f32.mxu0 %v5539_v1  ;;  %3971 = vmatprep.mubr.msk.f32.mxu1 %vm5540_vm0, %v5539_v1 }
 0x259   :  { %4569 = vmatpush1.bf16.msra.mxu0 %v5600_v15  ;;  %4599 = vmatpush3.bf16.msra.mxu1 %v5617_v34 }
 0x25a   :  { %4571 = vmatprep.subr.bf16.mxu0 %v5603_v16  ;;  %4600 = vmatprep.subr.bf16.mxu1 %v5538_v0 }
 0x25d   :  { %4573 = vmatpush1.bf16.msra.mxu0 %v5606_v21  ;;  %4602 = vmatpush3.bf16.msra.mxu1 %v5627_v43 }
 0x25e   :  { %4575 = vmatprep.subr.bf16.mxu0 %v5609_v23  ;;  %4603 = vmatprep.subr.bf16.mxu1 %v5538_v0 }
 0x261   :  { %4577 = vmatpush1.bf16.msra.mxu0 %v5614_v32  ;;  %4605 = vmatpush3.bf16.msra.mxu1 %v5637_v52 }
 0x262   :  { %4579 = vmatprep.subr.bf16.mxu0 %v5620_v35  ;;  %4606 = vmatprep.subr.bf16.mxu1 %v5538_v0  ;;  %v488_v35 = vld [vmem:[#allocation3 + $0x38] sm:$0xff] }
 0x265   :  { %4581 = vmatpush1.bf16.msra.mxu0 %v5624_v41  ;;  %4608 = vmatpush3.bf16.msra.mxu1 %v5647_v61 }
 0x266   :  { %4583 = vmatprep.subr.bf16.mxu0 %v5630_v44  ;;  %4609 = vmatprep.subr.bf16.mxu1 %v5538_v0 }
 0x269   :  { %4585 = vmatpush1.bf16.msra.mxu0 %v5634_v50  ;;  %4611 = vmatpush3.bf16.msra.mxu1 %v5657_v6 }
 0x26a   :  { %4587 = vmatprep.subr.bf16.mxu0 %v5640_v53  ;;  %4612 = vmatprep.subr.bf16.mxu1 %v5538_v0 }
 0x26d   :  { %4589 = vmatpush1.bf16.msra.mxu0 %v5644_v59  ;;  %4614 = vmatpush3.bf16.msra.mxu1 %v5663_v11  ;;  %v489_v11 = vld [vmem:[#allocation3 + $0x40] sm:$0xff] }
 0x26e   :  { %4591 = vmatprep.subr.bf16.mxu0 %v5650_v62  ;;  %4615 = vmatprep.subr.bf16.mxu1 %v5538_v0 }
 0x271   :  { %4593 = vmatpush1.bf16.msra.mxu0 %v5654_v4  ;;  %4617 = vmatpush3.bf16.msra.mxu1 %v5669_v14 }
 0x272   :  { %4650 = vmatprep.subr.bf16.mxu1 %v5538_v0 }
 0x327   :  { %v604_v10 = vpop.f32.mrb[4].mxu0  ;;  %v675_v15 = vpop.f32.mrb[4].mxu1 }
 0x328   :  { %v679_v16 = vadd.f32 %v604_v10, %v487_v9  ;;  %v606_v21 = vpop.f32.mrb[5].mxu0  ;;  %v3938_v23 = vpop.f32.mrb[5].mxu1  ;;  %v693_v62 = vadd.f32 %v5713_v33, %v675_v15  ;;  %v5851_v9 = vpack.c.bf16 %v955_v26, %v952_v24  ;;  %v960_v10 = vld [vmem:[#allocation6 + $0x130] sm:$0xff]  ;;  %v5906_v24 = vpack.c.bf16 %v1149_v22, %v1146_v20 }
 0x329   :  { %v680_v41 = vadd.f32 %v606_v21, %v488_v35  ;;  %v961_v21 = vld [vmem:[#allocation6 + $0x138] sm:$0xff]  ;;  %v963_v23 = vld [vmem:[#allocation6 + $0x148] sm:$0xff]  ;;  %v1152_v26 = vld [vmem:[#allocation6 + $0x70] sm:$0xff] }
 0x32a   :  { %v3534_v32 = vmul.f32 -1.442695, %v679_v16  ;;  %v958_v16 = vld [vmem:[#allocation6 + $0x120] sm:$0xff]  ;;  %v965_v35 = vld [vmem:[#allocation6 + $0x158] sm:$0xff] }
 0x32b   :  { %v3535_v44 = vmul.f32 -1.442695, %v680_v41  ;;  %v968_v41 = vld [vmem:[#allocation6 + $0x170] sm:$0xff] }
 0x32c   :  { %5320 = vpow2.f32 %v3534_v32  ;;  %v5856_v32 = vpack.c.bf16 %v963_v23, %v960_v10  ;;  %v1158_v10 = vld [vmem:[#allocation6 + $0xa0] sm:$0xff]  ;;  %v1164_v23 = vld [vmem:[#allocation6 + $0xd0] sm:$0xff] }
 0x32d   :  { %5322 = vpow2.f32 %v3535_v44  ;;  %v966_v44 = vld [vmem:[#allocation6 + $0x160] sm:$0xff] }
 0x336   :  { %v5321_v50 = vpop.eup %5320 }
 0x337   :  { %v687_v53 = vadd.f32 1.0, %v5321_v50  ;;  %v5323_v59 = vpop.eup %5322  ;;  %v969_v50 = vld [vmem:[#allocation6 + $0x178] sm:$0xff] }
 0x338   :  { %v688_v31 = vadd.f32 1.0, %v5323_v59  ;;  %v5862_v59 = vpack.c.bf16 %v969_v50, %v966_v44  ;;  %v1170_v44 = vld [vmem:[#allocation6 + $0x100] sm:$0xff]  ;;  %v1173_v50 = vld [vmem:[#allocation6 + $0x118] sm:$0xff] }
 0x339   :  { %5324 = vrcp.f32 %v687_v53  ;;  %v5859_v53 = vpack.c.bf16 %v961_v21, %v958_v16  ;;  %v1161_v16 = vld [vmem:[#allocation6 + $0xb8] sm:$0xff] }
 0x33a   :  { %v5914_v21 = vpack.c.bf16 %v1161_v16, %v1158_v10  ;;  %v1136_v10 = vld [vmem:[#allocation3 + $0x80] sm:$0xff] }
 0x343   :  { %v5325_v4 = vpop.eup %5324 }
 0x344   :  { %v694_v14 = vmul.f32 %v5325_v4, %v693_v62  ;;  %v5865_v62 = vpack.c.bf16 %v968_v41, %v965_v35  ;;  %v964_v4 = vld [vmem:[#allocation6 + $0x150] sm:$0xff]  ;;  %v1167_v35 = vld [vmem:[#allocation6 + $0xe8] sm:$0xff] }
 0x345   :  { %v5918_v41 = vpack.c.bf16 %v1167_v35, %v1164_v23 }
 0x346   :  { %v695_v30 = vadd.f32 %v694_v14, %v489_v11  ;;  %v967_v11 = vld [vmem:[#allocation6 + $0x168] sm:$0xff] }
 0x347   :  { %v5869_v14 = vpack.c.bf16 %v967_v11, %v964_v4  ;;  %v5921_v4 = vpack.c.bf16 %v1173_v50, %v1170_v44  ;;  %v919_v11 = vld [vmem:[#allocation3 + $0x60] sm:$0xff] }
 0x348   :  { %5326 = vtanh.f32 %v695_v30  ;;  %v703_v30 = vld [vmem:[#allocation3 + $0x48] sm:$0xff] }
 0x349   :  { %5328 = vrcp.f32 %v688_v31 }
 0x352   :  { %v5327_v36 = vpop.eup %5326 }
 0x353   :  { %v697_v37 = vsub.f32 %v5758_v28, %v5327_v36  ;;  %v5329_v38 = vpop.eup %5328  ;;  %v962_v28 = vld [vmem:[#allocation6 + $0x140] sm:$0xff] }
 0x354   :  { %v5854_v15 = vpack.c.bf16 %v962_v28, %v959_v27  ;;  %v1155_v27 = vld [vmem:[#allocation6 + $0x88] sm:$0xff] }
 0x355   :  { %v698_v39 = vmul.f32 %v5329_v38, %v697_v37  ;;  %v5910_v28 = vpack.c.bf16 %v1155_v27, %v1152_v26 }
 0x357   :  { %v5799_v40 = vadd.f32 %v5327_v36, %v698_v39 }
 0x359   :  { %701 = vst [vmem:[#allocation8 + $0x10] sm:$0xff] %v5799_v40  ;;  %819 = vmatmul.mubr.f32.vlgmr.msra.gmra.mrb[6].mxu0 %v5799_v40  ;;  %3972 = vmatmul.mubr.f32.vlgmr.msra.gmra.mrb[6].mxu1 %v5799_v40 }
 0x35a   :  { %4652 = vmatpush3.bf16.msra.mxu1 %v5611_v29  ;;  %1034 = vmatprep.mubr.f32.mxu0 %v5539_v1  ;;  %v923_v29 = vld [vmem:[#allocation6 + $0x8] sm:$0xff] }
 0x35b   :  { %4653 = vmatprep.subr.bf16.mxu1 %v5538_v0  ;;  %4006 = vmatprep.mubr.msk.f32.mxu1 %vm5540_vm0, %v5539_v1 }
 0x35e   :  { %4655 = vmatpush3.bf16.msra.mxu1 %v5617_v34  ;;  %v926_v34 = vld [vmem:[#allocation6 + $0x20] sm:$0xff] }
 0x35f   :  { %4656 = vmatprep.subr.bf16.mxu1 %v5538_v0  ;;  %v5819_v42 = vpack.c.bf16 %v926_v34, %v923_v29  ;;  %v704_v34 = vld [vmem:[#allocation3 + $0x50] sm:$0xff] }
 0x361   :  { %4619 = vmatprep.subr.bf16.mxu0 %v5819_v42 }
 0x362   :  { %4658 = vmatpush3.bf16.msra.mxu1 %v5627_v43  ;;  %v925_v43 = vld [vmem:[#allocation6 + $0x18] sm:$0xff] }
 0x363   :  { %4659 = vmatprep.subr.bf16.mxu1 %v5538_v0  ;;  %v5821_v46 = vpack.c.bf16 %v925_v43, %v922_v45 }
 0x365   :  { %4621 = vmatpush1.bf16.msra.mxu0 %v5821_v46 }
 0x366   :  { %4661 = vmatpush3.bf16.msra.mxu1 %v5637_v52  ;;  %v929_v52 = vld [vmem:[#allocation6 + $0x38] sm:$0xff] }
 0x367   :  { %4662 = vmatprep.subr.bf16.mxu1 %v5538_v0 }
 0x36a   :  { %4664 = vmatpush3.bf16.msra.mxu1 %v5647_v61  ;;  %v932_v61 = vld [vmem:[#allocation6 + $0x50] sm:$0xff] }
 0x36b   :  { %4665 = vmatprep.subr.bf16.mxu1 %v5538_v0  ;;  %v5825_v47 = vpack.c.bf16 %v932_v61, %v929_v52 }
 0x36d   :  { %4623 = vmatprep.subr.bf16.mxu0 %v5825_v47 }
 0x36e   :  { %4667 = vmatpush3.bf16.msra.mxu1 %v5657_v6  ;;  %v931_v6 = vld [vmem:[#allocation6 + $0x48] sm:$0xff] }
 0x36f   :  { %4668 = vmatprep.subr.bf16.mxu1 %v5538_v0  ;;  %v5827_v49 = vpack.c.bf16 %v931_v6, %v928_v48 }
 0x371   :  { %4625 = vmatpush1.bf16.msra.mxu0 %v5827_v49 }
 0x372   :  { %4627 = vmatprep.subr.bf16.mxu0 %v5831_v55  ;;  %4670 = vmatpush3.bf16.msra.mxu1 %v5856_v32 }
 0x373   :  { %4671 = vmatprep.subr.bf16.mxu1 %v5538_v0 }
 0x375   :  { %4629 = vmatpush1.bf16.msra.mxu0 %v5833_v58 }
 0x376   :  { %4631 = vmatprep.subr.bf16.mxu0 %v5837_v2  ;;  %4673 = vmatpush3.bf16.msra.mxu1 %v5862_v59 }
 0x377   :  { %4706 = vmatprep.subr.bf16.mxu1 %v5538_v0 }
 0x379   :  { %4633 = vmatpush1.bf16.msra.mxu0 %v5839_v8 }
 0x37a   :  { %4635 = vmatprep.subr.bf16.mxu0 %v5843_v5 }
 0x37d   :  { %4637 = vmatpush1.bf16.msra.mxu0 %v5845_v19 }
 0x37e   :  { %4639 = vmatprep.subr.bf16.mxu0 %v5848_v25 }
 0x381   :  { %4641 = vmatpush1.bf16.msra.mxu0 %v5851_v9 }
 0x382   :  { %4643 = vmatprep.subr.bf16.mxu0 %v5854_v15 }
 0x385   :  { %4645 = vmatpush1.bf16.msra.mxu0 %v5859_v53 }
 0x386   :  { %4647 = vmatprep.subr.bf16.mxu0 %v5865_v62 }
 0x389   :  { %4649 = vmatpush1.bf16.msra.mxu0 %v5869_v14 }
 0x38a   :  { %4675 = vmatprep.subr.bf16.mxu0 %v5819_v42 }
 0x42c   :  { %v820_v31 = vpop.f32.mrb[6].mxu0  ;;  %v891_v36 = vpop.f32.mrb[6].mxu1 }
 0x42d   :  { %v895_v37 = vadd.f32 %v820_v31, %v703_v30  ;;  %v822_v38 = vpop.f32.mrb[7].mxu0  ;;  %v3973_v39 = vpop.f32.mrb[7].mxu1  ;;  %v909_v6 = vadd.f32 %v5713_v33, %v891_v36 }
 0x42e   :  { %v896_v45 = vadd.f32 %v822_v38, %v704_v34 }
 0x42f   :  { %v3536_v29 = vmul.f32 -1.442695, %v895_v37 }
 0x430   :  { %v3537_v43 = vmul.f32 -1.442695, %v896_v45 }
 0x431   :  { %5330 = vpow2.f32 %v3536_v29  ;;  %v920_v29 = vld [vmem:[#allocation3 + $0x68] sm:$0xff] }
 0x432   :  { %5332 = vpow2.f32 %v3537_v43 }
 0x43b   :  { %v5331_v52 = vpop.eup %5330 }
 0x43c   :  { %v903_v61 = vadd.f32 1.0, %v5331_v52  ;;  %v5333_v48 = vpop.eup %5332 }
 0x43d   :  { %v904_v60 = vadd.f32 1.0, %v5333_v48 }
 0x43e   :  { %5334 = vrcp.f32 %v903_v61 }
 0x448   :  { %v5335_v51 = vpop.eup %5334 }
 0x449   :  { %v910_v56 = vmul.f32 %v5335_v51, %v909_v6  ;;  %v921_v51 = vld [vmem:[#allocation3 + $0x70] sm:$0xff] }
 0x44b   :  { %v911_v57 = vadd.f32 %v910_v56, %v705_v54 }
 0x44d   :  { %5336 = vtanh.f32 %v911_v57 }
 0x44e   :  { %5338 = vrcp.f32 %v904_v60 }
 0x457   :  { %v5337_v63 = vpop.eup %5336 }
 0x458   :  { %v913_v3 = vsub.f32 %v5799_v40, %v5337_v63  ;;  %v5339_v7 = vpop.eup %5338  ;;  %v1140_v40 = vld [vmem:[#allocation6 + $0x10] sm:$0xff] }
 0x459   :  { %v5902_v18 = vpack.c.bf16 %v1143_v17, %v1140_v40 }
 0x45a   :  { %v914_v12 = vmul.f32 %v5339_v7, %v913_v3 }
 0x45c   :  { %v5878_v13 = vadd.f32 %v5337_v63, %v914_v12 }
 0x45e   :  { %917 = vst [vmem:[#allocation8 + $0x18] sm:$0xff] %v5878_v13  ;;  %1035 = vmatmul.mubr.f32.vlgmr.msra.gmra.mrb[8].mxu0 %v5878_v13  ;;  %4007 = vmatmul.mubr.f32.vlgmr.msra.gmra.mrb[8].mxu1 %v5878_v13 }
 0x45f   :  { %4677 = vmatpush1.bf16.msra.mxu0 %v5821_v46  ;;  %1250 = vmatprep.mubr.f32.mxu0 %v5539_v1 }
 0x460   :  { %4679 = vmatprep.subr.bf16.mxu0 %v5825_v47  ;;  %4041 = vmatprep.mubr.msk.f32.mxu1 %vm5540_vm0, %v5539_v1 }
 0x461   :  { %4708 = vmatpush3.bf16.msra.mxu1 %v5902_v18 }
 0x462   :  { %4709 = vmatprep.subr.bf16.mxu1 %v5538_v0 }
 0x463   :  { %4681 = vmatpush1.bf16.msra.mxu0 %v5827_v49 }
 0x464   :  { %4683 = vmatprep.subr.bf16.mxu0 %v5831_v55 }
 0x465   :  { %4711 = vmatpush3.bf16.msra.mxu1 %v5906_v24 }
 0x466   :  { %4712 = vmatprep.subr.bf16.mxu1 %v5538_v0 }
 0x467   :  { %4685 = vmatpush1.bf16.msra.mxu0 %v5833_v58 }
 0x468   :  { %4687 = vmatprep.subr.bf16.mxu0 %v5837_v2 }
 0x469   :  { %4714 = vmatpush3.bf16.msra.mxu1 %v5910_v28 }
 0x46a   :  { %4715 = vmatprep.subr.bf16.mxu1 %v5538_v0 }
 0x46b   :  { %4689 = vmatpush1.bf16.msra.mxu0 %v5839_v8 }
 0x46c   :  { %4691 = vmatprep.subr.bf16.mxu0 %v5843_v5 }
 0x46d   :  { %4717 = vmatpush3.bf16.msra.mxu1 %v5914_v21 }
 0x46e   :  { %4718 = vmatprep.subr.bf16.mxu1 %v5538_v0 }
 0x46f   :  { %4693 = vmatpush1.bf16.msra.mxu0 %v5845_v19 }
 0x470   :  { %4695 = vmatprep.subr.bf16.mxu0 %v5848_v25 }
 0x471   :  { %4720 = vmatpush3.bf16.msra.mxu1 %v5918_v41 }
 0x472   :  { %4721 = vmatprep.subr.bf16.mxu1 %v5538_v0 }
 0x473   :  { %4697 = vmatpush1.bf16.msra.mxu0 %v5851_v9 }
 0x474   :  { %4699 = vmatprep.subr.bf16.mxu0 %v5854_v15 }
 0x475   :  { %4723 = vmatpush3.bf16.msra.mxu1 %v5921_v4 }
 0x476   :  { %4724 = vmatprep.subr.bf16.mxu1 %v5538_v0 }
 0x477   :  { %4701 = vmatpush1.bf16.msra.mxu0 %v5859_v53 }
 0x478   :  { %4703 = vmatprep.subr.bf16.mxu0 %v5865_v62 }
 0x479   :  { %4726 = vmatpush3.bf16.msra.mxu1 %v5856_v32 }
 0x47a   :  { %4727 = vmatprep.subr.bf16.mxu1 %v5538_v0 }
 0x47b   :  { %4705 = vmatpush1.bf16.msra.mxu0 %v5869_v14 }
 0x47c   :  { %4731 = vmatprep.subr.bf16.mxu0 %v5819_v42 }
 0x47d   :  { %4729 = vmatpush3.bf16.msra.mxu1 %v5862_v59 }
 0x47e   :  { %4762 = vmatprep.subr.bf16.mxu1 %v5538_v0 }
 0x531   :  { %v1036_v30 = vpop.f32.mrb[8].mxu0  ;;  %v1107_v31 = vpop.f32.mrb[8].mxu1 }
 0x532   :  { %v1111_v36 = vadd.f32 %v1036_v30, %v919_v11  ;;  %v1038_v37 = vpop.f32.mrb[9].mxu0  ;;  %v4008_v38 = vpop.f32.mrb[9].mxu1  ;;  %v1125_v48 = vadd.f32 %v5713_v33, %v1107_v31  ;;  %v1137_v30 = vld [vmem:[#allocation3 + $0x88] sm:$0xff] }
 0x533   :  { %v1112_v34 = vadd.f32 %v1038_v37, %v920_v29 }
 0x534   :  { %v3538_v39 = vmul.f32 -1.442695, %v1111_v36 }
 0x535   :  { %v3539_v45 = vmul.f32 -1.442695, %v1112_v34 }
 0x536   :  { %5340 = vpow2.f32 %v3538_v39 }
 0x537   :  { %5342 = vpow2.f32 %v3539_v45 }
 0x540   :  { %v5341_v43 = vpop.eup %5340 }
 0x541   :  { %v1119_v52 = vadd.f32 1.0, %v5341_v43  ;;  %v5343_v61 = vpop.eup %5342 }
 0x542   :  { %v1120_v57 = vadd.f32 1.0, %v5343_v61 }
 0x543   :  { %5344 = vrcp.f32 %v1119_v52 }
 0x54d   :  { %v5345_v6 = vpop.eup %5344 }
 0x54e   :  { %v1126_v54 = vmul.f32 %v5345_v6, %v1125_v48 }
 0x550   :  { %v1127_v56 = vadd.f32 %v1126_v54, %v921_v51 }
 0x552   :  { %5346 = vtanh.f32 %v1127_v56  ;;  %v1786_v56 = vld [vmem:[#allocation6] sm:$0xff] }
 0x553   :  { %5348 = vrcp.f32 %v1120_v57 }
 0x55c   :  { %v5347_v60 = vpop.eup %5346 }
 0x55d   :  { %v1129_v63 = vsub.f32 %v5878_v13, %v5347_v60  ;;  %v5349_v3 = vpop.eup %5348  ;;  %v1135_v13 = vld [vmem:[#allocation3 + $0x78] sm:$0xff] }
 0x55f   :  { %v1130_v7 = vmul.f32 %v5349_v3, %v1129_v63  ;;  %v1792_v63 = vld [vmem:[#allocation6 + $0x30] sm:$0xff] }
 0x561   :  { %v5932_v12 = vadd.f32 %v5347_v60, %v1130_v7  ;;  %v1799_v7 = vld [vmem:[#allocation6 + $0x68] sm:$0xff] }
 0x563   :  { %1133 = vst [vmem:[#allocation8 + $0x20] sm:$0xff] %v5932_v12  ;;  %1251 = vmatmul.mubr.f32.vlgmr.msra.gmra.mrb[10].mxu0 %v5932_v12  ;;  %4042 = vmatmul.mubr.f32.vlgmr.msra.gmra.mrb[10].mxu1 %v5932_v12 }
 0x564   :  { %4733 = vmatpush1.bf16.msra.mxu0 %v5821_v46  ;;  %4764 = vmatpush3.bf16.msra.mxu1 %v5902_v18 }
 0x565   :  { %4735 = vmatprep.subr.bf16.mxu0 %v5825_v47  ;;  %4765 = vmatprep.subr.bf16.mxu1 %v5538_v0 }
 0x566   :  { %1466 = vmatprep.mubr.f32.mxu0 %v5539_v1  ;;  %4076 = vmatprep.mubr.msk.f32.mxu1 %vm5540_vm0, %v5539_v1 }
 0x568   :  { %4737 = vmatpush1.bf16.msra.mxu0 %v5827_v49  ;;  %4767 = vmatpush3.bf16.msra.mxu1 %v5906_v24 }
 0x569   :  { %4739 = vmatprep.subr.bf16.mxu0 %v5831_v55  ;;  %4768 = vmatprep.subr.bf16.mxu1 %v5538_v0 }
 0x56c   :  { %4741 = vmatpush1.bf16.msra.mxu0 %v5833_v58  ;;  %4770 = vmatpush3.bf16.msra.mxu1 %v5910_v28 }
 0x56d   :  { %4743 = vmatprep.subr.bf16.mxu0 %v5837_v2  ;;  %4771 = vmatprep.subr.bf16.mxu1 %v5538_v0 }
 0x570   :  { %4745 = vmatpush1.bf16.msra.mxu0 %v5839_v8  ;;  %4773 = vmatpush3.bf16.msra.mxu1 %v5914_v21 }
 0x571   :  { %4747 = vmatprep.subr.bf16.mxu0 %v5843_v5  ;;  %4774 = vmatprep.subr.bf16.mxu1 %v5538_v0 }
 0x574   :  { %4749 = vmatpush1.bf16.msra.mxu0 %v5845_v19  ;;  %4776 = vmatpush3.bf16.msra.mxu1 %v5918_v41 }
 0x575   :  { %4751 = vmatprep.subr.bf16.mxu0 %v5848_v25  ;;  %4777 = vmatprep.subr.bf16.mxu1 %v5538_v0 }
 0x578   :  { %4753 = vmatpush1.bf16.msra.mxu0 %v5851_v9  ;;  %4779 = vmatpush3.bf16.msra.mxu1 %v5921_v4 }
 0x579   :  { %4755 = vmatprep.subr.bf16.mxu0 %v5854_v15  ;;  %4780 = vmatprep.subr.bf16.mxu1 %v5538_v0 }
 0x57c   :  { %4757 = vmatpush1.bf16.msra.mxu0 %v5859_v53  ;;  %4782 = vmatpush3.bf16.msra.mxu1 %v5856_v32 }
 0x57d   :  { %4759 = vmatprep.subr.bf16.mxu0 %v5865_v62  ;;  %4783 = vmatprep.subr.bf16.mxu1 %v5538_v0 }
 0x580   :  { %4761 = vmatpush1.bf16.msra.mxu0 %v5869_v14  ;;  %4785 = vmatpush3.bf16.msra.mxu1 %v5862_v59 }
 0x581   :  { %4787 = vmatprep.subr.bf16.mxu0 %v5819_v42  ;;  %4818 = vmatprep.subr.bf16.mxu1 %v5538_v0 }
 0x636   :  { %v1252_v40 = vpop.f32.mrb[10].mxu0  ;;  %v1323_v17 = vpop.f32.mrb[10].mxu1 }
 0x637   :  { %v1327_v20 = vadd.f32 %v1252_v40, %v1135_v13  ;;  %v1254_v22 = vpop.f32.mrb[11].mxu0  ;;  %v4043_v26 = vpop.f32.mrb[11].mxu1  ;;  %v1341_v42 = vadd.f32 %v5713_v33, %v1323_v17  ;;  %v1798_v40 = vld [vmem:[#allocation6 + $0x60] sm:$0xff]  ;;  %v1801_v17 = vld [vmem:[#allocation6 + $0x78] sm:$0xff] }
 0x638   :  { %v1328_v16 = vadd.f32 %v1254_v22, %v1136_v10  ;;  %v1805_v22 = vld [vmem:[#allocation6 + $0x98] sm:$0xff]  ;;  %v1808_v26 = vld [vmem:[#allocation6 + $0xb0] sm:$0xff] }
 0x639   :  { %v3540_v27 = vmul.f32 -1.442695, %v1327_v20  ;;  %v6049_v20 = vpack.c.bf16 %v1801_v17, %v1798_v40  ;;  %v1804_v10 = vld [vmem:[#allocation6 + $0x90] sm:$0xff] }
 0x63a   :  { %v3541_v23 = vmul.f32 -1.442695, %v1328_v16  ;;  %v1807_v16 = vld [vmem:[#allocation6 + $0xa8] sm:$0xff] }
 0x63b   :  { %5350 = vpow2.f32 %v3540_v27  ;;  %v6053_v27 = vpack.c.bf16 %v1808_v26, %v1805_v22 }
 0x63c   :  { %5352 = vpow2.f32 %v3541_v23  ;;  %v6055_v23 = vpack.c.bf16 %v1807_v16, %v1804_v10 }
 0x645   :  { %v5351_v35 = vpop.eup %5350 }
 0x646   :  { %v1335_v44 = vadd.f32 1.0, %v5351_v35  ;;  %v5353_v50 = vpop.eup %5352  ;;  %v1811_v35 = vld [vmem:[#allocation6 + $0xc8] sm:$0xff] }
 0x647   :  { %v1336_v37 = vadd.f32 1.0, %v5353_v50 }
 0x648   :  { %5354 = vrcp.f32 %v1335_v44  ;;  %v1814_v44 = vld [vmem:[#allocation6 + $0xe0] sm:$0xff] }
 0x649   :  { %v6059_v50 = vpack.c.bf16 %v1814_v44, %v1811_v35 }
 0x652   :  { %v5355_v11 = vpop.eup %5354 }
 0x653   :  { %v1342_v31 = vmul.f32 %v5355_v11, %v1341_v42  ;;  %v1810_v42 = vld [vmem:[#allocation6 + $0xc0] sm:$0xff]  ;;  %v1813_v11 = vld [vmem:[#allocation6 + $0xd8] sm:$0xff] }
 0x655   :  { %v1343_v36 = vadd.f32 %v1342_v31, %v1137_v30  ;;  %v6061_v30 = vpack.c.bf16 %v1813_v11, %v1810_v42  ;;  %v1817_v31 = vld [vmem:[#allocation6 + $0xf8] sm:$0xff]  ;;  %v2007_v42 = vld [vmem:[#allocation6 + $0x28] sm:$0xff] }
 0x657   :  { %5356 = vtanh.f32 %v1343_v36  ;;  %v1820_v36 = vld [vmem:[#allocation6 + $0x110] sm:$0xff] }
 0x658   :  { %5358 = vrcp.f32 %v1336_v37  ;;  %v1816_v37 = vld [vmem:[#allocation6 + $0xf0] sm:$0xff] }
 0x661   :  { %v5357_v38 = vpop.eup %5356 }
 0x662   :  { %v1345_v39 = vsub.f32 %v5932_v12, %v5357_v38  ;;  %v5359_v29 = vpop.eup %5358  ;;  %v1802_v12 = vld [vmem:[#allocation6 + $0x80] sm:$0xff] }
 0x663   :  { %v6047_v13 = vpack.c.bf16 %v1802_v12, %v1799_v7  ;;  %v1569_v12 = vld [vmem:[#allocation3 + $0xb8] sm:$0xff] }
 0x664   :  { %v1346_v34 = vmul.f32 %v5359_v29, %v1345_v39  ;;  %v1819_v39 = vld [vmem:[#allocation6 + $0x108] sm:$0xff] }
 0x665   :  { %v1823_v29 = vld [vmem:[#allocation6 + $0x128] sm:$0xff] }
 0x666   :  { %v5974_v45 = vadd.f32 %v5357_v38, %v1346_v34  ;;  %v6064_v38 = vpack.c.bf16 %v1820_v36, %v1817_v31  ;;  %v1826_v34 = vld [vmem:[#allocation6 + $0x140] sm:$0xff]  ;;  %v2013_v36 = vld [vmem:[#allocation6 + $0x58] sm:$0xff] }
 0x667   :  { %v2010_v31 = vld [vmem:[#allocation6 + $0x40] sm:$0xff] }
 0x668   :  { %1349 = vst [vmem:[#allocation8 + $0x28] sm:$0xff] %v5974_v45  ;;  %1467 = vmatmul.mubr.f32.vlgmr.msra.gmra.mrb[12].mxu0 %v5974_v45  ;;  %4077 = vmatmul.mubr.f32.vlgmr.msra.gmra.mrb[12].mxu1 %v5974_v45 }
 0x669   :  { %4789 = vmatpush1.bf16.msra.mxu0 %v5821_v46  ;;  %4820 = vmatpush3.bf16.msra.mxu1 %v5902_v18  ;;  %v1351_v46 = vld [vmem:[#allocation3 + $0x90] sm:$0xff] }
 0x66a   :  { %4791 = vmatprep.subr.bf16.mxu0 %v5825_v47  ;;  %4821 = vmatprep.subr.bf16.mxu1 %v5538_v0 }
 0x66b   :  { %1682 = vmatprep.mubr.f32.mxu0 %v5539_v1  ;;  %4111 = vmatprep.mubr.msk.f32.mxu1 %vm5540_vm0, %v5539_v1 }
 0x66d   :  { %4793 = vmatpush1.bf16.msra.mxu0 %v5827_v49  ;;  %4823 = vmatpush3.bf16.msra.mxu1 %v5906_v24 }
 0x66e   :  { %4795 = vmatprep.subr.bf16.mxu0 %v5831_v55  ;;  %4824 = vmatprep.subr.bf16.mxu1 %v5538_v0 }
 0x671   :  { %4797 = vmatpush1.bf16.msra.mxu0 %v5833_v58  ;;  %4826 = vmatpush3.bf16.msra.mxu1 %v5910_v28 }
 0x672   :  { %4799 = vmatprep.subr.bf16.mxu0 %v5837_v2  ;;  %4827 = vmatprep.subr.bf16.mxu1 %v5538_v0 }
 0x675   :  { %4801 = vmatpush1.bf16.msra.mxu0 %v5839_v8  ;;  %4829 = vmatpush3.bf16.msra.mxu1 %v5914_v21 }
 0x676   :  { %4803 = vmatprep.subr.bf16.mxu0 %v5843_v5  ;;  %4830 = vmatprep.subr.bf16.mxu1 %v5538_v0  ;;  %v1352_v5 = vld [vmem:[#allocation3 + $0x98] sm:$0xff] }
 0x679   :  { %4805 = vmatpush1.bf16.msra.mxu0 %v5845_v19  ;;  %4832 = vmatpush3.bf16.msra.mxu1 %v5918_v41 }
 0x67a   :  { %4807 = vmatprep.subr.bf16.mxu0 %v5848_v25  ;;  %4833 = vmatprep.subr.bf16.mxu1 %v5538_v0 }
 0x67d   :  { %4809 = vmatpush1.bf16.msra.mxu0 %v5851_v9  ;;  %4835 = vmatpush3.bf16.msra.mxu1 %v5921_v4 }
 0x67e   :  { %4811 = vmatprep.subr.bf16.mxu0 %v5854_v15  ;;  %4836 = vmatprep.subr.bf16.mxu1 %v5538_v0 }
 0x681   :  { %4813 = vmatpush1.bf16.msra.mxu0 %v5859_v53  ;;  %4838 = vmatpush3.bf16.msra.mxu1 %v5856_v32 }
 0x682   :  { %4815 = vmatprep.subr.bf16.mxu0 %v5865_v62  ;;  %4839 = vmatprep.subr.bf16.mxu1 %v5538_v0  ;;  %v1353_v62 = vld [vmem:[#allocation3 + $0xa0] sm:$0xff] }
 0x685   :  { %4817 = vmatpush1.bf16.msra.mxu0 %v5869_v14  ;;  %4841 = vmatpush3.bf16.msra.mxu1 %v5862_v59 }
 0x686   :  { %4874 = vmatprep.subr.bf16.mxu1 %v5538_v0 }
 0x73b   :  { %v1468_v47 = vpop.f32.mrb[12].mxu0  ;;  %v1539_v49 = vpop.f32.mrb[12].mxu1 }
 0x73c   :  { %v1543_v55 = vadd.f32 %v1468_v47, %v1351_v46  ;;  %v1470_v58 = vpop.f32.mrb[13].mxu0  ;;  %v4078_v2 = vpop.f32.mrb[13].mxu1  ;;  %v1557_v53 = vadd.f32 %v5713_v33, %v1539_v49  ;;  %v1787_v33 = vld [vmem:[#allocation6 + $0x8] sm:$0xff]  ;;  %v1824_v46 = vld [vmem:[#allocation6 + $0x130] sm:$0xff]  ;;  %v6070_v47 = vpack.c.bf16 %v1826_v34, %v1823_v29  ;;  %v1822_v49 = vld [vmem:[#allocation6 + $0x120] sm:$0xff] }
 0x73d   :  { %v1544_v19 = vadd.f32 %v1470_v58, %v1352_v5  ;;  %v1827_v58 = vld [vmem:[#allocation6 + $0x148] sm:$0xff]  ;;  %v1832_v5 = vld [vmem:[#allocation6 + $0x170] sm:$0xff] }
 0x73e   :  { %v3542_v8 = vmul.f32 -1.442695, %v1543_v55  ;;  %v1825_v55 = vld [vmem:[#allocation6 + $0x138] sm:$0xff]  ;;  %v6072_v2 = vpack.c.bf16 %v1827_v58, %v1824_v46  ;;  %v2019_v29 = vld [vmem:[#allocation6 + $0x88] sm:$0xff]  ;;  %v2022_v46 = vld [vmem:[#allocation6 + $0xa0] sm:$0xff] }
 0x73f   :  { %v3543_v25 = vmul.f32 -1.442695, %v1544_v19  ;;  %v1830_v19 = vld [vmem:[#allocation6 + $0x160] sm:$0xff]  ;;  %v2028_v58 = vld [vmem:[#allocation6 + $0xd0] sm:$0xff] }
 0x740   :  { %5360 = vpow2.f32 %v3542_v8  ;;  %v1829_v8 = vld [vmem:[#allocation6 + $0x158] sm:$0xff] }
 0x741   :  { %5362 = vpow2.f32 %v3543_v25  ;;  %v1833_v25 = vld [vmem:[#allocation6 + $0x178] sm:$0xff] }
 0x74a   :  { %v5361_v9 = vpop.eup %5360 }
 0x74b   :  { %v1551_v15 = vadd.f32 1.0, %v5361_v9  ;;  %v5363_v32 = vpop.eup %5362  ;;  %v6075_v9 = vpack.c.bf16 %v1825_v55, %v1822_v49  ;;  %v2025_v49 = vld [vmem:[#allocation6 + $0xb8] sm:$0xff] }
 0x74c   :  { %v1552_v52 = vadd.f32 1.0, %v5363_v32  ;;  %v6081_v32 = vpack.c.bf16 %v1832_v5, %v1829_v8  ;;  %v6135_v55 = vpack.c.bf16 %v2025_v49, %v2022_v46  ;;  %v2031_v8 = vld [vmem:[#allocation6 + $0xe8] sm:$0xff]  ;;  %v2000_v46 = vld [vmem:[#allocation3 + $0xe0] sm:$0xff] }
 0x74d   :  { %5364 = vrcp.f32 %v1551_v15  ;;  %v6078_v15 = vpack.c.bf16 %v1833_v25, %v1830_v19  ;;  %v6139_v5 = vpack.c.bf16 %v2031_v8, %v2028_v58  ;;  %v2034_v19 = vld [vmem:[#allocation6 + $0x100] sm:$0xff]  ;;  %v2037_v25 = vld [vmem:[#allocation6 + $0x118] sm:$0xff] }
 0x757   :  { %v5365_v59 = vpop.eup %5364 }
 0x758   :  { %v1558_v14 = vmul.f32 %v5365_v59, %v1557_v53  ;;  %v1828_v53 = vld [vmem:[#allocation6 + $0x150] sm:$0xff]  ;;  %v1831_v59 = vld [vmem:[#allocation6 + $0x168] sm:$0xff] }
 0x75a   :  { %v1559_v43 = vadd.f32 %v1558_v14, %v1353_v62  ;;  %v6085_v62 = vpack.c.bf16 %v1831_v59, %v1828_v53  ;;  %v1567_v14 = vld [vmem:[#allocation3 + $0xa8] sm:$0xff]  ;;  %v6142_v53 = vpack.c.bf16 %v2037_v25, %v2034_v19  ;;  %v1783_v59 = vld [vmem:[#allocation3 + $0xc0] sm:$0xff] }
 0x75c   :  { %5366 = vtanh.f32 %v1559_v43 }
 0x75d   :  { %5368 = vrcp.f32 %v1552_v52 }
 0x766   :  { %v5367_v61 = vpop.eup %5366 }
 0x767   :  { %v1561_v48 = vsub.f32 %v5974_v45, %v5367_v61  ;;  %v5369_v6 = vpop.eup %5368  ;;  %v6067_v45 = vpack.c.bf16 %v1819_v39, %v1816_v37  ;;  %v6127_v37 = vpack.c.bf16 %v2013_v36, %v2010_v31  ;;  %v2016_v39 = vld [vmem:[#allocation6 + $0x70] sm:$0xff] }
 0x768   :  { %v6131_v34 = vpack.c.bf16 %v2019_v29, %v2016_v39 }
 0x769   :  { %v1562_v51 = vmul.f32 %v5369_v6, %v1561_v48 }
 0x76b   :  { %v6015_v54 = vadd.f32 %v5367_v61, %v1562_v51 }
 0x76d   :  { %1565 = vst [vmem:[#allocation8 + $0x30] sm:$0xff] %v6015_v54  ;;  %1683 = vmatmul.mubr.f32.vlgmr.msra.gmra.mrb[14].mxu0 %v6015_v54  ;;  %4112 = vmatmul.mubr.f32.vlgmr.msra.gmra.mrb[14].mxu1 %v6015_v54 }
 0x76e   :  { %4876 = vmatpush3.bf16.msra.mxu1 %v5902_v18  ;;  %1898 = vmatprep.mubr.f32.mxu0 %v5539_v1  ;;  %v1790_v18 = vld [vmem:[#allocation6 + $0x20] sm:$0xff] }
 0x76f   :  { %4877 = vmatprep.subr.bf16.mxu1 %v5538_v0  ;;  %4146 = vmatprep.mubr.msk.f32.mxu1 %vm5540_vm0, %v5539_v1 }
 0x772   :  { %4879 = vmatpush3.bf16.msra.mxu1 %v5906_v24  ;;  %v6035_v24 = vpack.c.bf16 %v1790_v18, %v1787_v33  ;;  %v1568_v33 = vld [vmem:[#allocation3 + $0xb0] sm:$0xff] }
 0x773   :  { %4880 = vmatprep.subr.bf16.mxu1 %v5538_v0 }
 0x774   :  { %4843 = vmatprep.subr.bf16.mxu0 %v6035_v24 }
 0x776   :  { %4882 = vmatpush3.bf16.msra.mxu1 %v5910_v28  ;;  %v1789_v28 = vld [vmem:[#allocation6 + $0x18] sm:$0xff] }
 0x777   :  { %4883 = vmatprep.subr.bf16.mxu1 %v5538_v0  ;;  %v6037_v57 = vpack.c.bf16 %v1789_v28, %v1786_v56 }
 0x779   :  { %4845 = vmatpush1.bf16.msra.mxu0 %v6037_v57 }
 0x77a   :  { %4885 = vmatpush3.bf16.msra.mxu1 %v5914_v21  ;;  %v1793_v21 = vld [vmem:[#allocation6 + $0x38] sm:$0xff] }
 0x77b   :  { %4886 = vmatprep.subr.bf16.mxu1 %v5538_v0 }
 0x77e   :  { %4888 = vmatpush3.bf16.msra.mxu1 %v5918_v41  ;;  %v1796_v41 = vld [vmem:[#allocation6 + $0x50] sm:$0xff] }
 0x77f   :  { %4889 = vmatprep.subr.bf16.mxu1 %v5538_v0  ;;  %v6041_v60 = vpack.c.bf16 %v1796_v41, %v1793_v21 }
 0x781   :  { %4847 = vmatprep.subr.bf16.mxu0 %v6041_v60 }
 0x782   :  { %4891 = vmatpush3.bf16.msra.mxu1 %v5921_v4  ;;  %v1795_v4 = vld [vmem:[#allocation6 + $0x48] sm:$0xff] }
 0x783   :  { %4892 = vmatprep.subr.bf16.mxu1 %v5538_v0  ;;  %v6043_v3 = vpack.c.bf16 %v1795_v4, %v1792_v63  ;;  %v6095_v63 = vld [vmem:[%s6467_s2] ss:$0 sm:$0xff] }
 0x785   :  { %4849 = vmatpush1.bf16.msra.mxu0 %v6043_v3 }
 0x786   :  { %4851 = vmatprep.subr.bf16.mxu0 %v6047_v13  ;;  %4894 = vmatpush3.bf16.msra.mxu1 %v6072_v2 }
 0x787   :  { %4895 = vmatprep.subr.bf16.mxu1 %v5538_v0 }
 0x789   :  { %4853 = vmatpush1.bf16.msra.mxu0 %v6049_v20 }
 0x78a   :  { %4855 = vmatprep.subr.bf16.mxu0 %v6053_v27  ;;  %4897 = vmatpush3.bf16.msra.mxu1 %v6078_v15 }
 0x78b   :  { %4930 = vmatprep.subr.bf16.mxu1 %v5538_v0 }
 0x78d   :  { %4857 = vmatpush1.bf16.msra.mxu0 %v6055_v23 }
 0x78e   :  { %4859 = vmatprep.subr.bf16.mxu0 %v6059_v50 }
 0x791   :  { %4861 = vmatpush1.bf16.msra.mxu0 %v6061_v30 }
 0x792   :  { %4863 = vmatprep.subr.bf16.mxu0 %v6064_v38 }
 0x795   :  { %4865 = vmatpush1.bf16.msra.mxu0 %v6067_v45 }
 0x796   :  { %4867 = vmatprep.subr.bf16.mxu0 %v6070_v47 }
 0x799   :  { %4869 = vmatpush1.bf16.msra.mxu0 %v6075_v9 }
 0x79a   :  { %4871 = vmatprep.subr.bf16.mxu0 %v6081_v32 }
 0x79d   :  { %4873 = vmatpush1.bf16.msra.mxu0 %v6085_v62 }
 0x79e   :  { %4899 = vmatprep.subr.bf16.mxu0 %v6035_v24 }
 0x840   :  { %v1684_v43 = vpop.f32.mrb[14].mxu0  ;;  %v1755_v52 = vpop.f32.mrb[14].mxu1 }
 0x841   :  { %v1759_v61 = vadd.f32 %v1684_v43, %v1567_v14  ;;  %v1686_v48 = vpop.f32.mrb[15].mxu0  ;;  %v4113_v6 = vpop.f32.mrb[15].mxu1  ;;  %v1773_v4 = vadd.f32 %v6095_v63, %v1755_v52 }
 0x842   :  { %v1760_v18 = vadd.f32 %v1686_v48, %v1568_v33 }
 0x843   :  { %v3544_v51 = vmul.f32 -1.442695, %v1759_v61 }
 0x844   :  { %v3545_v56 = vmul.f32 -1.442695, %v1760_v18 }
 0x845   :  { %5370 = vpow2.f32 %v3544_v51  ;;  %v1784_v51 = vld [vmem:[#allocation3 + $0xc8] sm:$0xff] }
 0x846   :  { %5372 = vpow2.f32 %v3545_v56 }
 0x84f   :  { %v5371_v28 = vpop.eup %5370 }
 0x850   :  { %v1767_v21 = vadd.f32 1.0, %v5371_v28  ;;  %v5373_v41 = vpop.eup %5372 }
 0x851   :  { %v1768_v22 = vadd.f32 1.0, %v5373_v41 }
 0x852   :  { %5374 = vrcp.f32 %v1767_v21 }
 0x85c   :  { %v5375_v7 = vpop.eup %5374 }
 0x85d   :  { %v1774_v40 = vmul.f32 %v5375_v7, %v1773_v4  ;;  %v1785_v7 = vld [vmem:[#allocation3 + $0xd0] sm:$0xff] }
 0x85f   :  { %v1775_v17 = vadd.f32 %v1774_v40, %v1569_v12 }
 0x861   :  { %5376 = vtanh.f32 %v1775_v17 }
 0x862   :  { %5378 = vrcp.f32 %v1768_v22 }
 0x86b   :  { %v5377_v26 = vpop.eup %5376 }
 0x86c   :  { %v1777_v10 = vsub.f32 %v6015_v54, %v5377_v26  ;;  %v5379_v16 = vpop.eup %5378  ;;  %v2004_v54 = vld [vmem:[#allocation6 + $0x10] sm:$0xff] }
 0x86d   :  { %v6123_v11 = vpack.c.bf16 %v2007_v42, %v2004_v54 }
 0x86e   :  { %v1778_v35 = vmul.f32 %v5379_v16, %v1777_v10 }
 0x870   :  { %v6099_v44 = vadd.f32 %v5377_v26, %v1778_v35 }
 0x872   :  { %1781 = vst [vmem:[#allocation8 + $0x38] sm:$0xff] %v6099_v44  ;;  %1899 = vmatmul.mubr.f32.vlgmr.msra.gmra.mrb[16].mxu0 %v6099_v44  ;;  %4147 = vmatmul.mubr.f32.vlgmr.msra.gmra.mrb[16].mxu1 %v6099_v44 }
 0x873   :  { %4901 = vmatpush1.bf16.msra.mxu0 %v6037_v57  ;;  %2114 = vmatprep.mubr.f32.mxu0 %v5539_v1 }
 0x874   :  { %4903 = vmatprep.subr.bf16.mxu0 %v6041_v60  ;;  %4181 = vmatprep.mubr.msk.f32.mxu1 %vm5540_vm0, %v5539_v1 }
 0x875   :  { %4932 = vmatpush3.bf16.msra.mxu1 %v6123_v11 }
 0x876   :  { %4933 = vmatprep.subr.bf16.mxu1 %v5538_v0 }
 0x877   :  { %4905 = vmatpush1.bf16.msra.mxu0 %v6043_v3 }
 0x878   :  { %4907 = vmatprep.subr.bf16.mxu0 %v6047_v13 }
 0x879   :  { %4935 = vmatpush3.bf16.msra.mxu1 %v6127_v37 }
 0x87a   :  { %4936 = vmatprep.subr.bf16.mxu1 %v5538_v0 }
 0x87b   :  { %4909 = vmatpush1.bf16.msra.mxu0 %v6049_v20 }
 0x87c   :  { %4911 = vmatprep.subr.bf16.mxu0 %v6053_v27 }
 0x87d   :  { %4938 = vmatpush3.bf16.msra.mxu1 %v6131_v34 }
 0x87e   :  { %4939 = vmatprep.subr.bf16.mxu1 %v5538_v0 }
 0x87f   :  { %4913 = vmatpush1.bf16.msra.mxu0 %v6055_v23 }
 0x880   :  { %4915 = vmatprep.subr.bf16.mxu0 %v6059_v50 }
 0x881   :  { %4941 = vmatpush3.bf16.msra.mxu1 %v6135_v55 }
 0x882   :  { %4942 = vmatprep.subr.bf16.mxu1 %v5538_v0 }
 0x883   :  { %4917 = vmatpush1.bf16.msra.mxu0 %v6061_v30 }
 0x884   :  { %4919 = vmatprep.subr.bf16.mxu0 %v6064_v38 }
 0x885   :  { %4944 = vmatpush3.bf16.msra.mxu1 %v6139_v5 }
 0x886   :  { %4945 = vmatprep.subr.bf16.mxu1 %v5538_v0 }
 0x887   :  { %4921 = vmatpush1.bf16.msra.mxu0 %v6067_v45 }
 0x888   :  { %4923 = vmatprep.subr.bf16.mxu0 %v6070_v47 }
 0x889   :  { %4947 = vmatpush3.bf16.msra.mxu1 %v6142_v53 }
 0x88a   :  { %4948 = vmatprep.subr.bf16.mxu1 %v5538_v0 }
 0x88b   :  { %4925 = vmatpush1.bf16.msra.mxu0 %v6075_v9 }
 0x88c   :  { %4927 = vmatprep.subr.bf16.mxu0 %v6081_v32 }
 0x88d   :  { %4950 = vmatpush3.bf16.msra.mxu1 %v6072_v2 }
 0x88e   :  { %4951 = vmatprep.subr.bf16.mxu1 %v5538_v0 }
 0x88f   :  { %4929 = vmatpush1.bf16.msra.mxu0 %v6085_v62 }
 0x890   :  { %4955 = vmatprep.subr.bf16.mxu0 %v6035_v24 }
 0x891   :  { %4953 = vmatpush3.bf16.msra.mxu1 %v6078_v15 }
 0x892   :  { %4986 = vmatprep.subr.bf16.mxu1 %v5538_v0 }
 0x945   :  { %v1900_v14 = vpop.f32.mrb[16].mxu0  ;;  %v1971_v43 = vpop.f32.mrb[16].mxu1 }
 0x946   :  { %v1975_v52 = vadd.f32 %v1900_v14, %v1783_v59  ;;  %v1902_v61 = vpop.f32.mrb[17].mxu0  ;;  %v4148_v48 = vpop.f32.mrb[17].mxu1  ;;  %v1989_v41 = vadd.f32 %v6095_v63, %v1971_v43  ;;  %v2001_v14 = vld [vmem:[#allocation3 + $0xe8] sm:$0xff] }
 0x947   :  { %v1976_v33 = vadd.f32 %v1902_v61, %v1784_v51 }
 0x948   :  { %v3546_v6 = vmul.f32 -1.442695, %v1975_v52 }
 0x949   :  { %v3547_v18 = vmul.f32 -1.442695, %v1976_v33 }
 0x94a   :  { %5380 = vpow2.f32 %v3546_v6 }
 0x94b   :  { %5382 = vpow2.f32 %v3547_v18 }
 0x954   :  { %v5381_v56 = vpop.eup %5380 }
 0x955   :  { %v1983_v28 = vadd.f32 1.0, %v5381_v56  ;;  %v5383_v21 = vpop.eup %5382 }
 0x956   :  { %v1984_v17 = vadd.f32 1.0, %v5383_v21 }
 0x957   :  { %5384 = vrcp.f32 %v1983_v28 }
 0x961   :  { %v5385_v4 = vpop.eup %5384 }
 0x962   :  { %v1990_v12 = vmul.f32 %v5385_v4, %v1989_v41 }
 0x964   :  { %v1991_v40 = vadd.f32 %v1990_v12, %v1785_v7 }
 0x966   :  { %5386 = vtanh.f32 %v1991_v40 }
 0x967   :  { %5388 = vrcp.f32 %v1984_v17  ;;  %v2650_v17 = vld [vmem:[#allocation6] sm:$0xff] }
 0x970   :  { %v5387_v22 = vpop.eup %5386 }
 0x971   :  { %v1993_v26 = vsub.f32 %v6099_v44, %v5387_v22  ;;  %v5389_v10 = vpop.eup %5388  ;;  %v1999_v44 = vld [vmem:[#allocation3 + $0xd8] sm:$0xff] }
 0x973   :  { %v1994_v16 = vmul.f32 %v5389_v10, %v1993_v26  ;;  %v2656_v10 = vld [vmem:[#allocation6 + $0x30] sm:$0xff] }
 0x975   :  { %v6153_v35 = vadd.f32 %v5387_v22, %v1994_v16 }
 0x977   :  { %1997 = vst [vmem:[#allocation8 + $0x40] sm:$0xff] %v6153_v35  ;;  %2115 = vmatmul.mubr.f32.vlgmr.msra.gmra.mrb[18].mxu0 %v6153_v35  ;;  %4182 = vmatmul.mubr.f32.vlgmr.msra.gmra.mrb[18].mxu1 %v6153_v35 }
 0x978   :  { %4957 = vmatpush1.bf16.msra.mxu0 %v6037_v57  ;;  %4988 = vmatpush3.bf16.msra.mxu1 %v6123_v11 }
 0x979   :  { %4959 = vmatprep.subr.bf16.mxu0 %v6041_v60  ;;  %4989 = vmatprep.subr.bf16.mxu1 %v5538_v0 }
 0x97a   :  { %2330 = vmatprep.mubr.f32.mxu0 %v5539_v1  ;;  %4216 = vmatprep.mubr.msk.f32.mxu1 %vm5540_vm0, %v5539_v1 }
 0x97c   :  { %4961 = vmatpush1.bf16.msra.mxu0 %v6043_v3  ;;  %4991 = vmatpush3.bf16.msra.mxu1 %v6127_v37 }
 0x97d   :  { %4963 = vmatprep.subr.bf16.mxu0 %v6047_v13  ;;  %4992 = vmatprep.subr.bf16.mxu1 %v5538_v0 }
 0x980   :  { %4965 = vmatpush1.bf16.msra.mxu0 %v6049_v20  ;;  %4994 = vmatpush3.bf16.msra.mxu1 %v6131_v34 }
 0x981   :  { %4967 = vmatprep.subr.bf16.mxu0 %v6053_v27  ;;  %4995 = vmatprep.subr.bf16.mxu1 %v5538_v0 }
 0x984   :  { %4969 = vmatpush1.bf16.msra.mxu0 %v6055_v23  ;;  %4997 = vmatpush3.bf16.msra.mxu1 %v6135_v55 }
 0x985   :  { %4971 = vmatprep.subr.bf16.mxu0 %v6059_v50  ;;  %4998 = vmatprep.subr.bf16.mxu1 %v5538_v0 }
 0x988   :  { %4973 = vmatpush1.bf16.msra.mxu0 %v6061_v30  ;;  %5000 = vmatpush3.bf16.msra.mxu1 %v6139_v5 }
 0x989   :  { %4975 = vmatprep.subr.bf16.mxu0 %v6064_v38  ;;  %5001 = vmatprep.subr.bf16.mxu1 %v5538_v0 }
 0x98c   :  { %4977 = vmatpush1.bf16.msra.mxu0 %v6067_v45  ;;  %5003 = vmatpush3.bf16.msra.mxu1 %v6142_v53 }
 0x98d   :  { %4979 = vmatprep.subr.bf16.mxu0 %v6070_v47  ;;  %5004 = vmatprep.subr.bf16.mxu1 %v5538_v0 }
 0x990   :  { %4981 = vmatpush1.bf16.msra.mxu0 %v6075_v9  ;;  %5006 = vmatpush3.bf16.msra.mxu1 %v6072_v2 }
 0x991   :  { %4983 = vmatprep.subr.bf16.mxu0 %v6081_v32  ;;  %5007 = vmatprep.subr.bf16.mxu1 %v5538_v0 }
 0x994   :  { %4985 = vmatpush1.bf16.msra.mxu0 %v6085_v62  ;;  %5009 = vmatpush3.bf16.msra.mxu1 %v6078_v15 }
 0x995   :  { %5011 = vmatprep.subr.bf16.mxu0 %v6035_v24  ;;  %5042 = vmatprep.subr.bf16.mxu1 %v5538_v0 }
 0xa4a   :  { %v2116_v54 = vpop.f32.mrb[18].mxu0  ;;  %v2187_v42 = vpop.f32.mrb[18].mxu1 }
 0xa4b   :  { %v2191_v31 = vadd.f32 %v2116_v54, %v1999_v44  ;;  %v2118_v36 = vpop.f32.mrb[19].mxu0  ;;  %v4183_v39 = vpop.f32.mrb[19].mxu1  ;;  %v2205_v24 = vadd.f32 %v6095_v63, %v2187_v42  ;;  %v2666_v44 = vld [vmem:[#allocation6 + $0x80] sm:$0xff] }
 0xa4c   :  { %v2192_v49 = vadd.f32 %v2118_v36, %v2000_v46  ;;  %v2662_v42 = vld [vmem:[#allocation6 + $0x60] sm:$0xff]  ;;  %v2669_v39 = vld [vmem:[#allocation6 + $0x98] sm:$0xff] }
 0xa4d   :  { %v3548_v29 = vmul.f32 -1.442695, %v2191_v31  ;;  %v2665_v31 = vld [vmem:[#allocation6 + $0x78] sm:$0xff] }
 0xa4e   :  { %v3549_v58 = vmul.f32 -1.442695, %v2192_v49  ;;  %v6270_v36 = vpack.c.bf16 %v2665_v31, %v2662_v42  ;;  %v2668_v49 = vld [vmem:[#allocation6 + $0x90] sm:$0xff] }
 0xa4f   :  { %5390 = vpow2.f32 %v3548_v29  ;;  %v2672_v29 = vld [vmem:[#allocation6 + $0xb0] sm:$0xff] }
 0xa50   :  { %5392 = vpow2.f32 %v3549_v58  ;;  %v6274_v46 = vpack.c.bf16 %v2672_v29, %v2669_v39  ;;  %v2671_v58 = vld [vmem:[#allocation6 + $0xa8] sm:$0xff] }
 0xa59   :  { %v5391_v8 = vpop.eup %5390 }
 0xa5a   :  { %v2199_v19 = vadd.f32 1.0, %v5391_v8  ;;  %v5393_v25 = vpop.eup %5392  ;;  %v6276_v8 = vpack.c.bf16 %v2671_v58, %v2668_v49 }
 0xa5b   :  { %v2200_v61 = vadd.f32 1.0, %v5393_v25  ;;  %v2678_v25 = vld [vmem:[#allocation6 + $0xe0] sm:$0xff] }
 0xa5c   :  { %5394 = vrcp.f32 %v2199_v19  ;;  %v2675_v19 = vld [vmem:[#allocation6 + $0xc8] sm:$0xff] }
 0xa66   :  { %v5395_v59 = vpop.eup %5394 }
 0xa67   :  { %v2206_v43 = vmul.f32 %v5395_v59, %v2205_v24  ;;  %v6280_v24 = vpack.c.bf16 %v2678_v25, %v2675_v19  ;;  %v2674_v59 = vld [vmem:[#allocation6 + $0xc0] sm:$0xff] }
 0xa69   :  { %v2207_v52 = vadd.f32 %v2206_v43, %v2001_v14  ;;  %v2677_v14 = vld [vmem:[#allocation6 + $0xd8] sm:$0xff] }
 0xa6a   :  { %v6282_v43 = vpack.c.bf16 %v2677_v14, %v2674_v59  ;;  %v2871_v59 = vld [vmem:[#allocation6 + $0x28] sm:$0xff] }
 0xa6b   :  { %5396 = vtanh.f32 %v2207_v52  ;;  %v2681_v52 = vld [vmem:[#allocation6 + $0xf8] sm:$0xff] }
 0xa6c   :  { %5398 = vrcp.f32 %v2200_v61  ;;  %v2684_v61 = vld [vmem:[#allocation6 + $0x110] sm:$0xff] }
 0xa75   :  { %v5397_v48 = vpop.eup %5396 }
 0xa76   :  { %v2209_v6 = vsub.f32 %v6153_v35, %v5397_v48  ;;  %v5399_v51 = vpop.eup %5398  ;;  %v2663_v35 = vld [vmem:[#allocation6 + $0x68] sm:$0xff] }
 0xa77   :  { %v6268_v54 = vpack.c.bf16 %v2666_v44, %v2663_v35  ;;  %v2433_v44 = vld [vmem:[#allocation3 + $0x118] sm:$0xff] }
 0xa78   :  { %v2210_v33 = vmul.f32 %v5399_v51, %v2209_v6  ;;  %v6285_v6 = vpack.c.bf16 %v2684_v61, %v2681_v52  ;;  %v2683_v51 = vld [vmem:[#allocation6 + $0x108] sm:$0xff]  ;;  %v2874_v52 = vld [vmem:[#allocation6 + $0x40] sm:$0xff]  ;;  %v2877_v61 = vld [vmem:[#allocation6 + $0x58] sm:$0xff] }
 0xa7a   :  { %v6195_v18 = vadd.f32 %v5397_v48, %v2210_v33  ;;  %v2680_v48 = vld [vmem:[#allocation6 + $0xf0] sm:$0xff]  ;;  %v2687_v33 = vld [vmem:[#allocation6 + $0x128] sm:$0xff] }
 0xa7c   :  { %2213 = vst [vmem:[#allocation8 + $0x48] sm:$0xff] %v6195_v18  ;;  %2331 = vmatmul.mubr.f32.vlgmr.msra.gmra.mrb[20].mxu0 %v6195_v18  ;;  %4217 = vmatmul.mubr.f32.vlgmr.msra.gmra.mrb[20].mxu1 %v6195_v18 }
 0xa7d   :  { %5013 = vmatpush1.bf16.msra.mxu0 %v6037_v57  ;;  %5044 = vmatpush3.bf16.msra.mxu1 %v6123_v11  ;;  %v2215_v57 = vld [vmem:[#allocation3 + $0xf0] sm:$0xff] }
 0xa7e   :  { %5015 = vmatprep.subr.bf16.mxu0 %v6041_v60  ;;  %5045 = vmatprep.subr.bf16.mxu1 %v5538_v0 }
 0xa7f   :  { %2546 = vmatprep.mubr.f32.mxu0 %v5539_v1  ;;  %4251 = vmatprep.mubr.msk.f32.mxu1 %vm5540_vm0, %v5539_v1 }
 0xa81   :  { %5017 = vmatpush1.bf16.msra.mxu0 %v6043_v3  ;;  %5047 = vmatpush3.bf16.msra.mxu1 %v6127_v37 }
 0xa82   :  { %5019 = vmatprep.subr.bf16.mxu0 %v6047_v13  ;;  %5048 = vmatprep.subr.bf16.mxu1 %v5538_v0 }
 0xa85   :  { %5021 = vmatpush1.bf16.msra.mxu0 %v6049_v20  ;;  %5050 = vmatpush3.bf16.msra.mxu1 %v6131_v34 }
 0xa86   :  { %5023 = vmatprep.subr.bf16.mxu0 %v6053_v27  ;;  %5051 = vmatprep.subr.bf16.mxu1 %v5538_v0 }
 0xa89   :  { %5025 = vmatpush1.bf16.msra.mxu0 %v6055_v23  ;;  %5053 = vmatpush3.bf16.msra.mxu1 %v6135_v55 }
 0xa8a   :  { %5027 = vmatprep.subr.bf16.mxu0 %v6059_v50  ;;  %5054 = vmatprep.subr.bf16.mxu1 %v5538_v0  ;;  %v2216_v50 = vld [vmem:[#allocation3 + $0xf8] sm:$0xff] }
 0xa8d   :  { %5029 = vmatpush1.bf16.msra.mxu0 %v6061_v30  ;;  %5056 = vmatpush3.bf16.msra.mxu1 %v6139_v5 }
 0xa8e   :  { %5031 = vmatprep.subr.bf16.mxu0 %v6064_v38  ;;  %5057 = vmatprep.subr.bf16.mxu1 %v5538_v0 }
 0xa91   :  { %5033 = vmatpush1.bf16.msra.mxu0 %v6067_v45  ;;  %5059 = vmatpush3.bf16.msra.mxu1 %v6142_v53 }
 0xa92   :  { %5035 = vmatprep.subr.bf16.mxu0 %v6070_v47  ;;  %5060 = vmatprep.subr.bf16.mxu1 %v5538_v0 }
 0xa95   :  { %5037 = vmatpush1.bf16.msra.mxu0 %v6075_v9  ;;  %5062 = vmatpush3.bf16.msra.mxu1 %v6072_v2 }
 0xa96   :  { %5039 = vmatprep.subr.bf16.mxu0 %v6081_v32  ;;  %5063 = vmatprep.subr.bf16.mxu1 %v5538_v0  ;;  %v2217_v32 = vld [vmem:[#allocation3 + $0x100] sm:$0xff] }
 0xa99   :  { %5041 = vmatpush1.bf16.msra.mxu0 %v6085_v62  ;;  %5065 = vmatpush3.bf16.msra.mxu1 %v6078_v15 }
 0xa9a   :  { %5098 = vmatprep.subr.bf16.mxu1 %v5538_v0 }
 0xb4f   :  { %v2332_v60 = vpop.f32.mrb[20].mxu0  ;;  %v2403_v3 = vpop.f32.mrb[20].mxu1 }
 0xb50   :  { %v2407_v13 = vadd.f32 %v2332_v60, %v2215_v57  ;;  %v2334_v20 = vpop.f32.mrb[21].mxu0  ;;  %v4218_v27 = vpop.f32.mrb[21].mxu1  ;;  %v2421_v9 = vadd.f32 %v6095_v63, %v2403_v3  ;;  %v6288_v57 = vpack.c.bf16 %v2683_v51, %v2680_v48  ;;  %v2688_v60 = vld [vmem:[#allocation6 + $0x130] sm:$0xff]  ;;  %v6343_v48 = vpack.c.bf16 %v2877_v61, %v2874_v52 }
 0xb51   :  { %v2408_v30 = vadd.f32 %v2334_v20, %v2216_v50  ;;  %v2689_v20 = vld [vmem:[#allocation6 + $0x138] sm:$0xff]  ;;  %v2691_v27 = vld [vmem:[#allocation6 + $0x148] sm:$0xff]  ;;  %v2880_v51 = vld [vmem:[#allocation6 + $0x70] sm:$0xff] }
 0xb52   :  { %v3550_v23 = vmul.f32 -1.442695, %v2407_v13  ;;  %v2686_v13 = vld [vmem:[#allocation6 + $0x120] sm:$0xff]  ;;  %v2693_v50 = vld [vmem:[#allocation6 + $0x158] sm:$0xff] }
 0xb53   :  { %v3551_v38 = vmul.f32 -1.442695, %v2408_v30  ;;  %v2696_v30 = vld [vmem:[#allocation6 + $0x170] sm:$0xff] }
 0xb54   :  { %5400 = vpow2.f32 %v3550_v23  ;;  %v6293_v23 = vpack.c.bf16 %v2691_v27, %v2688_v60  ;;  %v2886_v60 = vld [vmem:[#allocation6 + $0xa0] sm:$0xff]  ;;  %v2892_v27 = vld [vmem:[#allocation6 + $0xd0] sm:$0xff] }
 0xb55   :  { %5402 = vpow2.f32 %v3551_v38  ;;  %v2694_v38 = vld [vmem:[#allocation6 + $0x160] sm:$0xff] }
 0xb5e   :  { %v5401_v45 = vpop.eup %5400 }
 0xb5f   :  { %v2415_v47 = vadd.f32 1.0, %v5401_v45  ;;  %v5403_v2 = vpop.eup %5402  ;;  %v2697_v45 = vld [vmem:[#allocation6 + $0x178] sm:$0xff] }
 0xb60   :  { %v2416_v28 = vadd.f32 1.0, %v5403_v2  ;;  %v6299_v2 = vpack.c.bf16 %v2697_v45, %v2694_v38  ;;  %v2898_v38 = vld [vmem:[#allocation6 + $0x100] sm:$0xff]  ;;  %v2901_v45 = vld [vmem:[#allocation6 + $0x118] sm:$0xff] }
 0xb61   :  { %5404 = vrcp.f32 %v2415_v47  ;;  %v6296_v47 = vpack.c.bf16 %v2689_v20, %v2686_v13  ;;  %v2889_v13 = vld [vmem:[#allocation6 + $0xb8] sm:$0xff] }
 0xb62   :  { %v6351_v20 = vpack.c.bf16 %v2889_v13, %v2886_v60  ;;  %v2864_v60 = vld [vmem:[#allocation3 + $0x140] sm:$0xff] }
 0xb6b   :  { %v5405_v15 = vpop.eup %5404 }
 0xb6c   :  { %v2422_v62 = vmul.f32 %v5405_v15, %v2421_v9  ;;  %v6302_v9 = vpack.c.bf16 %v2696_v30, %v2693_v50  ;;  %v2692_v15 = vld [vmem:[#allocation6 + $0x150] sm:$0xff]  ;;  %v2895_v50 = vld [vmem:[#allocation6 + $0xe8] sm:$0xff] }
 0xb6d   :  { %v6355_v30 = vpack.c.bf16 %v2895_v50, %v2892_v27 }
 0xb6e   :  { %v2423_v56 = vadd.f32 %v2422_v62, %v2217_v32  ;;  %v2695_v32 = vld [vmem:[#allocation6 + $0x168] sm:$0xff] }
 0xb6f   :  { %v6306_v62 = vpack.c.bf16 %v2695_v32, %v2692_v15  ;;  %v6358_v15 = vpack.c.bf16 %v2901_v45, %v2898_v38  ;;  %v2647_v32 = vld [vmem:[#allocation3 + $0x120] sm:$0xff] }
 0xb70   :  { %5406 = vtanh.f32 %v2423_v56  ;;  %v2431_v56 = vld [vmem:[#allocation3 + $0x108] sm:$0xff] }
 0xb71   :  { %5408 = vrcp.f32 %v2416_v28 }
 0xb7a   :  { %v5407_v21 = vpop.eup %5406 }
 0xb7b   :  { %v2425_v41 = vsub.f32 %v6195_v18, %v5407_v21  ;;  %v5409_v4 = vpop.eup %5408  ;;  %v2690_v18 = vld [vmem:[#allocation6 + $0x140] sm:$0xff] }
 0xb7c   :  { %v6291_v3 = vpack.c.bf16 %v2690_v18, %v2687_v33  ;;  %v2883_v33 = vld [vmem:[#allocation6 + $0x88] sm:$0xff] }
 0xb7d   :  { %v2426_v7 = vmul.f32 %v5409_v4, %v2425_v41  ;;  %v6347_v18 = vpack.c.bf16 %v2883_v33, %v2880_v51 }
 0xb7f   :  { %v6236_v12 = vadd.f32 %v5407_v21, %v2426_v7 }
 0xb81   :  { %2429 = vst [vmem:[#allocation8 + $0x50] sm:$0xff] %v6236_v12  ;;  %2547 = vmatmul.mubr.f32.vlgmr.msra.gmra.mrb[22].mxu0 %v6236_v12  ;;  %4252 = vmatmul.mubr.f32.vlgmr.msra.gmra.mrb[22].mxu1 %v6236_v12 }
 0xb82   :  { %5100 = vmatpush3.bf16.msra.mxu1 %v6123_v11  ;;  %2762 = vmatprep.mubr.f32.mxu0 %v5539_v1  ;;  %v2651_v11 = vld [vmem:[#allocation6 + $0x8] sm:$0xff] }
 0xb83   :  { %5101 = vmatprep.subr.bf16.mxu1 %v5538_v0  ;;  %4286 = vmatprep.mubr.msk.f32.mxu1 %vm5540_vm0, %v5539_v1 }
 0xb86   :  { %5103 = vmatpush3.bf16.msra.mxu1 %v6127_v37  ;;  %v2654_v37 = vld [vmem:[#allocation6 + $0x20] sm:$0xff] }
 0xb87   :  { %5104 = vmatprep.subr.bf16.mxu1 %v5538_v0  ;;  %v6256_v40 = vpack.c.bf16 %v2654_v37, %v2651_v11  ;;  %v2432_v37 = vld [vmem:[#allocation3 + $0x110] sm:$0xff] }
 0xb89   :  { %5067 = vmatprep.subr.bf16.mxu0 %v6256_v40 }
 0xb8a   :  { %5106 = vmatpush3.bf16.msra.mxu1 %v6131_v34  ;;  %v2653_v34 = vld [vmem:[#allocation6 + $0x18] sm:$0xff] }
 0xb8b   :  { %5107 = vmatprep.subr.bf16.mxu1 %v5538_v0  ;;  %v6258_v22 = vpack.c.bf16 %v2653_v34, %v2650_v17 }
 0xb8d   :  { %5069 = vmatpush1.bf16.msra.mxu0 %v6258_v22 }
 0xb8e   :  { %5109 = vmatpush3.bf16.msra.mxu1 %v6135_v55  ;;  %v2657_v55 = vld [vmem:[#allocation6 + $0x38] sm:$0xff] }
 0xb8f   :  { %5110 = vmatprep.subr.bf16.mxu1 %v5538_v0 }
 0xb92   :  { %5112 = vmatpush3.bf16.msra.mxu1 %v6139_v5  ;;  %v2660_v5 = vld [vmem:[#allocation6 + $0x50] sm:$0xff] }
 0xb93   :  { %5113 = vmatprep.subr.bf16.mxu1 %v5538_v0  ;;  %v6262_v26 = vpack.c.bf16 %v2660_v5, %v2657_v55 }
 0xb95   :  { %5071 = vmatprep.subr.bf16.mxu0 %v6262_v26 }
 0xb96   :  { %5115 = vmatpush3.bf16.msra.mxu1 %v6142_v53  ;;  %v2659_v53 = vld [vmem:[#allocation6 + $0x48] sm:$0xff] }
 0xb97   :  { %5116 = vmatprep.subr.bf16.mxu1 %v5538_v0  ;;  %v6264_v16 = vpack.c.bf16 %v2659_v53, %v2656_v10 }
 0xb99   :  { %5073 = vmatpush1.bf16.msra.mxu0 %v6264_v16 }
 0xb9a   :  { %5075 = vmatprep.subr.bf16.mxu0 %v6268_v54  ;;  %5118 = vmatpush3.bf16.msra.mxu1 %v6293_v23 }
 0xb9b   :  { %5119 = vmatprep.subr.bf16.mxu1 %v5538_v0 }
 0xb9d   :  { %5077 = vmatpush1.bf16.msra.mxu0 %v6270_v36 }
 0xb9e   :  { %5079 = vmatprep.subr.bf16.mxu0 %v6274_v46  ;;  %5121 = vmatpush3.bf16.msra.mxu1 %v6299_v2 }
 0xb9f   :  { %5154 = vmatprep.subr.bf16.mxu1 %v5538_v0 }
 0xba1   :  { %5081 = vmatpush1.bf16.msra.mxu0 %v6276_v8 }
 0xba2   :  { %5083 = vmatprep.subr.bf16.mxu0 %v6280_v24 }
 0xba5   :  { %5085 = vmatpush1.bf16.msra.mxu0 %v6282_v43 }
 0xba6   :  { %5087 = vmatprep.subr.bf16.mxu0 %v6285_v6 }
 0xba9   :  { %5089 = vmatpush1.bf16.msra.mxu0 %v6288_v57 }
 0xbaa   :  { %5091 = vmatprep.subr.bf16.mxu0 %v6291_v3 }
 0xbad   :  { %5093 = vmatpush1.bf16.msra.mxu0 %v6296_v47 }
 0xbae   :  { %5095 = vmatprep.subr.bf16.mxu0 %v6302_v9 }
 0xbb1   :  { %5097 = vmatpush1.bf16.msra.mxu0 %v6306_v62 }
 0xbb2   :  { %5123 = vmatprep.subr.bf16.mxu0 %v6256_v40 }
 0xc54   :  { %v2548_v28 = vpop.f32.mrb[22].mxu0  ;;  %v2619_v21 = vpop.f32.mrb[22].mxu1 }
 0xc55   :  { %v2623_v41 = vadd.f32 %v2548_v28, %v2431_v56  ;;  %v2550_v4 = vpop.f32.mrb[23].mxu0  ;;  %v4253_v7 = vpop.f32.mrb[23].mxu1  ;;  %v2637_v53 = vadd.f32 %v6095_v63, %v2619_v21 }
 0xc56   :  { %v2624_v17 = vadd.f32 %v2550_v4, %v2432_v37 }
 0xc57   :  { %v3552_v11 = vmul.f32 -1.442695, %v2623_v41 }
 0xc58   :  { %v3553_v34 = vmul.f32 -1.442695, %v2624_v17 }
 0xc59   :  { %5410 = vpow2.f32 %v3552_v11  ;;  %v2648_v11 = vld [vmem:[#allocation3 + $0x128] sm:$0xff] }
 0xc5a   :  { %5412 = vpow2.f32 %v3553_v34 }
 0xc63   :  { %v5411_v55 = vpop.eup %5410 }
 0xc64   :  { %v2631_v5 = vadd.f32 1.0, %v5411_v55  ;;  %v5413_v10 = vpop.eup %5412 }
 0xc65   :  { %v2632_v39 = vadd.f32 1.0, %v5413_v10 }
 0xc66   :  { %5414 = vrcp.f32 %v2631_v5 }
 0xc70   :  { %v5415_v35 = vpop.eup %5414 }
 0xc71   :  { %v2638_v42 = vmul.f32 %v5415_v35, %v2637_v53  ;;  %v2649_v35 = vld [vmem:[#allocation3 + $0x130] sm:$0xff] }
 0xc73   :  { %v2639_v31 = vadd.f32 %v2638_v42, %v2433_v44 }
 0xc75   :  { %5416 = vtanh.f32 %v2639_v31 }
 0xc76   :  { %5418 = vrcp.f32 %v2632_v39 }
 0xc7f   :  { %v5417_v29 = vpop.eup %5416 }
 0xc80   :  { %v2641_v49 = vsub.f32 %v6236_v12, %v5417_v29  ;;  %v5419_v58 = vpop.eup %5418  ;;  %v2868_v12 = vld [vmem:[#allocation6 + $0x10] sm:$0xff] }
 0xc81   :  { %v6339_v14 = vpack.c.bf16 %v2871_v59, %v2868_v12 }
 0xc82   :  { %v2642_v19 = vmul.f32 %v5419_v58, %v2641_v49 }
 0xc84   :  { %v6315_v25 = vadd.f32 %v5417_v29, %v2642_v19 }
 0xc86   :  { %2645 = vst [vmem:[#allocation8 + $0x58] sm:$0xff] %v6315_v25  ;;  %2763 = vmatmul.mubr.f32.vlgmr.msra.gmra.mrb[24].mxu0 %v6315_v25  ;;  %4287 = vmatmul.mubr.f32.vlgmr.msra.gmra.mrb[24].mxu1 %v6315_v25 }
 0xc87   :  { %5125 = vmatpush1.bf16.msra.mxu0 %v6258_v22  ;;  %2978 = vmatprep.mubr.f32.mxu0 %v5539_v1 }
 0xc88   :  { %5127 = vmatprep.subr.bf16.mxu0 %v6262_v26  ;;  %4321 = vmatprep.mubr.msk.f32.mxu1 %vm5540_vm0, %v5539_v1 }
 0xc89   :  { %5156 = vmatpush3.bf16.msra.mxu1 %v6339_v14 }
 0xc8a   :  { %5157 = vmatprep.subr.bf16.mxu1 %v5538_v0 }
 0xc8b   :  { %5129 = vmatpush1.bf16.msra.mxu0 %v6264_v16 }
 0xc8c   :  { %5131 = vmatprep.subr.bf16.mxu0 %v6268_v54 }
 0xc8d   :  { %5159 = vmatpush3.bf16.msra.mxu1 %v6343_v48 }
 0xc8e   :  { %5160 = vmatprep.subr.bf16.mxu1 %v5538_v0 }
 0xc8f   :  { %5133 = vmatpush1.bf16.msra.mxu0 %v6270_v36 }
 0xc90   :  { %5135 = vmatprep.subr.bf16.mxu0 %v6274_v46 }
 0xc91   :  { %5162 = vmatpush3.bf16.msra.mxu1 %v6347_v18 }
 0xc92   :  { %5163 = vmatprep.subr.bf16.mxu1 %v5538_v0 }
 0xc93   :  { %5137 = vmatpush1.bf16.msra.mxu0 %v6276_v8 }
 0xc94   :  { %5139 = vmatprep.subr.bf16.mxu0 %v6280_v24 }
 0xc95   :  { %5165 = vmatpush3.bf16.msra.mxu1 %v6351_v20 }
 0xc96   :  { %5166 = vmatprep.subr.bf16.mxu1 %v5538_v0 }
 0xc97   :  { %5141 = vmatpush1.bf16.msra.mxu0 %v6282_v43 }
 0xc98   :  { %5143 = vmatprep.subr.bf16.mxu0 %v6285_v6 }
 0xc99   :  { %5168 = vmatpush3.bf16.msra.mxu1 %v6355_v30 }
 0xc9a   :  { %5169 = vmatprep.subr.bf16.mxu1 %v5538_v0 }
 0xc9b   :  { %5145 = vmatpush1.bf16.msra.mxu0 %v6288_v57 }
 0xc9c   :  { %5147 = vmatprep.subr.bf16.mxu0 %v6291_v3 }
 0xc9d   :  { %5171 = vmatpush3.bf16.msra.mxu1 %v6358_v15 }
 0xc9e   :  { %5172 = vmatprep.subr.bf16.mxu1 %v5538_v0 }
 0xc9f   :  { %5149 = vmatpush1.bf16.msra.mxu0 %v6296_v47 }
 0xca0   :  { %5151 = vmatprep.subr.bf16.mxu0 %v6302_v9 }
 0xca1   :  { %5174 = vmatpush3.bf16.msra.mxu1 %v6293_v23 }
 0xca2   :  { %5175 = vmatprep.subr.bf16.mxu1 %v5538_v0 }
 0xca3   :  { %5153 = vmatpush1.bf16.msra.mxu0 %v6306_v62 }
 0xca4   :  { %5179 = vmatprep.subr.bf16.mxu0 %v6256_v40 }
 0xca5   :  { %5177 = vmatpush3.bf16.msra.mxu1 %v6299_v2 }
 0xca6   :  { %5210 = vmatprep.subr.bf16.mxu1 %v5538_v0 }
 0xd59   :  { %v2764_v56 = vpop.f32.mrb[24].mxu0  ;;  %v2835_v28 = vpop.f32.mrb[24].mxu1 }
 0xd5a   :  { %v2839_v21 = vadd.f32 %v2764_v56, %v2647_v32  ;;  %v2766_v41 = vpop.f32.mrb[25].mxu0  ;;  %v4288_v4 = vpop.f32.mrb[25].mxu1  ;;  %v2853_v10 = vadd.f32 %v6095_v63, %v2835_v28  ;;  %v2865_v56 = vld [vmem:[#allocation3 + $0x148] sm:$0xff] }
 0xd5b   :  { %v2840_v37 = vadd.f32 %v2766_v41, %v2648_v11 }
 0xd5c   :  { %v3554_v7 = vmul.f32 -1.442695, %v2839_v21 }
 0xd5d   :  { %v3555_v17 = vmul.f32 -1.442695, %v2840_v37 }
 0xd5e   :  { %5420 = vpow2.f32 %v3554_v7 }
 0xd5f   :  { %5422 = vpow2.f32 %v3555_v17 }
 0xd68   :  { %v5421_v34 = vpop.eup %5420 }
 0xd69   :  { %v2847_v55 = vadd.f32 1.0, %v5421_v34  ;;  %v5423_v5 = vpop.eup %5422 }
 0xd6a   :  { %v2848_v31 = vadd.f32 1.0, %v5423_v5 }
 0xd6b   :  { %5424 = vrcp.f32 %v2847_v55 }
 0xd75   :  { %v5425_v53 = vpop.eup %5424 }
 0xd76   :  { %v2854_v44 = vmul.f32 %v5425_v53, %v2853_v10 }
 0xd78   :  { %v2855_v42 = vadd.f32 %v2854_v44, %v2649_v35  ;;  %v3296_v44 = vld [vmem:[#allocation3 + $0x170] sm:$0xff] }
 0xd7a   :  { %5426 = vtanh.f32 %v2855_v42 }
 0xd7b   :  { %5428 = vrcp.f32 %v2848_v31 }
 0xd84   :  { %v5427_v39 = vpop.eup %5426 }
 0xd85   :  { %v2857_v29 = vsub.f32 %v6315_v25, %v5427_v39  ;;  %v5429_v49 = vpop.eup %5428  ;;  %v2863_v25 = vld [vmem:[#allocation3 + $0x138] sm:$0xff] }
 0xd87   :  { %v2858_v58 = vmul.f32 %v5429_v49, %v2857_v29 }
 0xd89   :  { %v6369_v19 = vadd.f32 %v5427_v39, %v2858_v58 }
 0xd8b   :  { %2861 = vst [vmem:[#allocation8 + $0x60] sm:$0xff] %v6369_v19  ;;  %2979 = vmatmul.mubr.f32.vlgmr.msra.gmra.mrb[26].mxu0 %v6369_v19  ;;  %4322 = vmatmul.mubr.f32.vlgmr.msra.gmra.mrb[26].mxu1 %v6369_v19 }
 0xd8c   :  { %5181 = vmatpush1.bf16.msra.mxu0 %v6258_v22  ;;  %5212 = vmatpush3.bf16.msra.mxu1 %v6339_v14 }
 0xd8d   :  { %5183 = vmatprep.subr.bf16.mxu0 %v6262_v26  ;;  %5213 = vmatprep.subr.bf16.mxu1 %v5538_v0 }
 0xd8e   :  { %3194 = vmatprep.mubr.f32.mxu0 %v5539_v1  ;;  %4356 = vmatprep.mubr.msk.f32.mxu1 %vm5540_vm0, %v5539_v1 }
 0xd90   :  { %5185 = vmatpush1.bf16.msra.mxu0 %v6264_v16  ;;  %5215 = vmatpush3.bf16.msra.mxu1 %v6343_v48 }
 0xd91   :  { %5187 = vmatprep.subr.bf16.mxu0 %v6268_v54  ;;  %5216 = vmatprep.subr.bf16.mxu1 %v5538_v0 }
 0xd94   :  { %5189 = vmatpush1.bf16.msra.mxu0 %v6270_v36  ;;  %5218 = vmatpush3.bf16.msra.mxu1 %v6347_v18 }
 0xd95   :  { %5191 = vmatprep.subr.bf16.mxu0 %v6274_v46  ;;  %5219 = vmatprep.subr.bf16.mxu1 %v5538_v0 }
 0xd98   :  { %5193 = vmatpush1.bf16.msra.mxu0 %v6276_v8  ;;  %5221 = vmatpush3.bf16.msra.mxu1 %v6351_v20 }
 0xd99   :  { %5195 = vmatprep.subr.bf16.mxu0 %v6280_v24  ;;  %5222 = vmatprep.subr.bf16.mxu1 %v5538_v0 }
 0xd9c   :  { %5197 = vmatpush1.bf16.msra.mxu0 %v6282_v43  ;;  %5224 = vmatpush3.bf16.msra.mxu1 %v6355_v30 }
 0xd9d   :  { %5199 = vmatprep.subr.bf16.mxu0 %v6285_v6  ;;  %5225 = vmatprep.subr.bf16.mxu1 %v5538_v0 }
 0xda0   :  { %5201 = vmatpush1.bf16.msra.mxu0 %v6288_v57  ;;  %5227 = vmatpush3.bf16.msra.mxu1 %v6358_v15 }
 0xda1   :  { %5203 = vmatprep.subr.bf16.mxu0 %v6291_v3  ;;  %5228 = vmatprep.subr.bf16.mxu1 %v5538_v0 }
 0xda4   :  { %5205 = vmatpush1.bf16.msra.mxu0 %v6296_v47  ;;  %5230 = vmatpush3.bf16.msra.mxu1 %v6293_v23 }
 0xda5   :  { %5207 = vmatprep.subr.bf16.mxu0 %v6302_v9  ;;  %5231 = vmatprep.subr.bf16.mxu1 %v5538_v0 }
 0xda8   :  { %5209 = vmatpush1.bf16.msra.mxu0 %v6306_v62  ;;  %5233 = vmatpush3.bf16.msra.mxu1 %v6299_v2 }
 0xda9   :  { %5235 = vmatprep.subr.bf16.mxu0 %v6256_v40  ;;  %5266 = vmatprep.subr.bf16.mxu1 %v5538_v0 }
 0xe5e   :  { %v2980_v12 = vpop.f32.mrb[26].mxu0  ;;  %v3051_v59 = vpop.f32.mrb[26].mxu1 }
 0xe5f   :  { %v3055_v52 = vadd.f32 %v2980_v12, %v2863_v25  ;;  %v2982_v61 = vpop.f32.mrb[27].mxu0  ;;  %v4323_v51 = vpop.f32.mrb[27].mxu1  ;;  %v3069_v40 = vadd.f32 %v6095_v63, %v3051_v59  ;;  %v3297_v25 = vld [vmem:[#allocation3 + $0x178] sm:$0xff] }
 0xe60   :  { %v3056_v13 = vadd.f32 %v2982_v61, %v2864_v60 }
 0xe61   :  { %v3556_v33 = vmul.f32 -1.442695, %v3055_v52 }
 0xe62   :  { %v3557_v27 = vmul.f32 -1.442695, %v3056_v13 }
 0xe63   :  { %5430 = vpow2.f32 %v3556_v33 }
 0xe64   :  { %5432 = vpow2.f32 %v3557_v27 }
 0xe6d   :  { %v5431_v50 = vpop.eup %5430 }
 0xe6e   :  { %v3063_v38 = vadd.f32 1.0, %v5431_v50  ;;  %v5433_v45 = vpop.eup %5432 }
 0xe6f   :  { %v3064_v41 = vadd.f32 1.0, %v5433_v45 }
 0xe70   :  { %5434 = vrcp.f32 %v3063_v38 }
 0xe7a   :  { %v5435_v32 = vpop.eup %5434 }
 0xe7b   :  { %v3070_v28 = vmul.f32 %v5435_v32, %v3069_v40 }
 0xe7d   :  { %v3071_v21 = vadd.f32 %v3070_v28, %v2865_v56 }
 0xe7f   :  { %5436 = vtanh.f32 %v3071_v21 }
 0xe80   :  { %5438 = vrcp.f32 %v3064_v41 }
 0xe89   :  { %v5437_v4 = vpop.eup %5436 }
 0xe8a   :  { %v3073_v7 = vsub.f32 %v6369_v19, %v5437_v4  ;;  %v5439_v11 = vpop.eup %5438 }
 0xe8c   :  { %v3074_v37 = vmul.f32 %v5439_v11, %v3073_v7 }
 0xe8e   :  { %v6411_v17 = vadd.f32 %v5437_v4, %v3074_v37 }
 0xe90   :  { %3077 = vst [vmem:[#allocation8 + $0x68] sm:$0xff] %v6411_v17  ;;  %3195 = vmatmul.mubr.f32.vlgmr.msra.gmra.mrb[28].mxu0 %v6411_v17  ;;  %4357 = vmatmul.mubr.f32.vlgmr.msra.gmra.mrb[28].mxu1 %v6411_v17 }
 0xe91   :  { %5237 = vmatpush1.bf16.msra.mxu0 %v6258_v22  ;;  %5268 = vmatpush3.bf16.msra.mxu1 %v6339_v14 }
 0xe92   :  { %5239 = vmatprep.subr.bf16.mxu0 %v6262_v26  ;;  %5269 = vmatprep.subr.bf16.mxu1 %v5538_v0 }
 0xe93   :  { %3410 = vmatprep.mubr.f32.mxu0 %v5539_v1  ;;  %4391 = vmatprep.mubr.msk.f32.mxu1 %vm5540_vm0, %v5539_v1  ;;  %v3079_v1 = vld [vmem:[#allocation3 + $0x150] sm:$0xff] }
 0xe95   :  { %5241 = vmatpush1.bf16.msra.mxu0 %v6264_v16  ;;  %5271 = vmatpush3.bf16.msra.mxu1 %v6343_v48 }
 0xe96   :  { %5243 = vmatprep.subr.bf16.mxu0 %v6268_v54  ;;  %5272 = vmatprep.subr.bf16.mxu1 %v5538_v0 }
 0xe99   :  { %5245 = vmatpush1.bf16.msra.mxu0 %v6270_v36  ;;  %5274 = vmatpush3.bf16.msra.mxu1 %v6347_v18 }
 0xe9a   :  { %5247 = vmatprep.subr.bf16.mxu0 %v6274_v46  ;;  %5275 = vmatprep.subr.bf16.mxu1 %v5538_v0  ;;  %v3080_v46 = vld [vmem:[#allocation3 + $0x158] sm:$0xff] }
 0xe9d   :  { %5249 = vmatpush1.bf16.msra.mxu0 %v6276_v8  ;;  %5277 = vmatpush3.bf16.msra.mxu1 %v6351_v20 }
 0xe9e   :  { %5251 = vmatprep.subr.bf16.mxu0 %v6280_v24  ;;  %5278 = vmatprep.subr.bf16.mxu1 %v5538_v0 }
 0xea1   :  { %5253 = vmatpush1.bf16.msra.mxu0 %v6282_v43  ;;  %5280 = vmatpush3.bf16.msra.mxu1 %v6355_v30 }
 0xea2   :  { %5255 = vmatprep.subr.bf16.mxu0 %v6285_v6  ;;  %5281 = vmatprep.subr.bf16.mxu1 %v5538_v0 }
 0xea5   :  { %5257 = vmatpush1.bf16.msra.mxu0 %v6288_v57  ;;  %5283 = vmatpush3.bf16.msra.mxu1 %v6358_v15  ;;  %v5461_v57 = vld [vmem:[%s6467_s2] ss:$0 sm:$0xff]  ;;  %v3295_v15 = vld [vmem:[#allocation3 + $0x168] sm:$0xff]  ;;  %s5541_s2 = smov [#allocation8]  }
 0xea6   :  { %5259 = vmatprep.subr.bf16.mxu0 %v6291_v3  ;;  %5284 = vmatprep.subr.bf16.mxu1 %v5538_v0  ;;  %s3516_s15 = sshll.u32 %s5541_s2, 4  ;;  %s3517_s15 = int_to_ptr.vmem [resolvable:$true] %s3516_s15 }
 0xea7   :  { %s5506_s16 = scalar_lea.vmem %s3517_s15, 2048  ;;  %p5511_p3 = scmp.lt.s32.totalorder %s3517_s15, %s3517_s15 }
 0xea8   :  { %p5507_p2 = scmp.ne.s32.totalorder %s3517_s15, %s5506_s16  ;;  %p5512_p4 = scmp.lt.s32.totalorder %s5506_s16, %s5506_s16 }
 0xea9   :  { %5261 = vmatpush1.bf16.msra.mxu0 %v6296_v47  ;;  %5286 = vmatpush3.bf16.msra.mxu1 %v6293_v23  ;;  %v3081_v47 = vld [vmem:[#allocation3 + $0x160] sm:$0xff] }
 0xeaa   :  { %5263 = vmatprep.subr.bf16.mxu0 %v6302_v9  ;;  %5287 = vmatprep.subr.bf16.mxu1 %v5538_v0  ;;  %p5513_p5 = por %p5512_p4, %p5511_p3 }
 0xeac   :  { %p5514_p6 = pnand %p5513_p5, %p5507_p2 }
 0xead   :  { %5265 = vmatpush1.bf16.msra.mxu0 %v6306_v62  ;;  %5289 = vmatpush3.bf16.msra.mxu1 %v6299_v2 }
 0xf63   :  { %v3196_v63 = vpop.f32.mrb[28].mxu0  ;;  %v3267_v22 = vpop.f32.mrb[28].mxu1 }
 0xf64   :  { %v3271_v26 = vadd.f32 %v3196_v63, %v3079_v1  ;;  %v3198_v16 = vpop.f32.mrb[29].mxu0  ;;  %v4358_v54 = vpop.f32.mrb[29].mxu1  ;;  %v3285_v3 = vadd.f32 %v5461_v57, %v3267_v22 }
 0xf65   :  { %v3272_v8 = vadd.f32 %v3198_v16, %v3080_v46 }
 0xf66   :  { %v3558_v36 = vmul.f32 -1.442695, %v3271_v26 }
 0xf67   :  { %v3559_v24 = vmul.f32 -1.442695, %v3272_v8 }
 0xf68   :  { %5440 = vpow2.f32 %v3558_v36 }
 0xf69   :  { %5442 = vpow2.f32 %v3559_v24 }
 0xf72   :  { %v5441_v43 = vpop.eup %5440 }
 0xf73   :  { %v3279_v6 = vadd.f32 1.0, %v5441_v43  ;;  %v5443_v0 = vpop.eup %5442 }
 0xf74   :  { %v3280_v62 = vadd.f32 1.0, %v5443_v0 }
 0xf75   :  { %5444 = vrcp.f32 %v3279_v6 }
 0xf7f   :  { %v5445_v23 = vpop.eup %5444 }
 0xf80   :  { %v3286_v2 = vmul.f32 %v5445_v23, %v3285_v3 }
 0xf82   :  { %v3287_v9 = vadd.f32 %v3286_v2, %v3081_v47 }
 0xf84   :  { %5446 = vtanh.f32 %v3287_v9 }
 0xf85   :  { %5448 = vrcp.f32 %v3280_v62 }
 0xf8e   :  { %v5447_v14 = vpop.eup %5446 }
 0xf8f   :  { %v3289_v48 = vsub.f32 %v6411_v17, %v5447_v14  ;;  %v5449_v18 = vpop.eup %5448 }
 0xf91   :  { %v3290_v20 = vmul.f32 %v5449_v18, %v3289_v48 }
 0xf93   :  { %v3291_v30 = vadd.f32 %v5447_v14, %v3290_v20 }
 0xf95   :  { %3293 = vst [vmem:[#allocation8 + $0x70] sm:$0xff] %v3291_v30  ;;  %3411 = vmatmul.mubr.f32.vlgmr.msra.gmra.mrb[30].mxu0 %v3291_v30  ;;  %4392 = vmatmul.mubr.f32.vlgmr.msra.gmra.mrb[30].mxu1 %v3291_v30 }
0x1068   :  { %v3412_v34 = vpop.f32.mrb[30].mxu0  ;;  %v3483_v55 = vpop.f32.mrb[30].mxu1 }
0x1069   :  { %v3487_v5 = vadd.f32 %v3412_v34, %v3295_v15  ;;  %v3414_v10 = vpop.f32.mrb[31].mxu0  ;;  %v4393_v53 = vpop.f32.mrb[31].mxu1  ;;  %v3501_v58 = vadd.f32 %v5461_v57, %v3483_v55 }
0x106a   :  { %v3488_v42 = vadd.f32 %v3414_v10, %v3296_v44 }
0x106b   :  { %v3560_v35 = vmul.f32 -1.442695, %v3487_v5 }
0x106c   :  { %v3561_v31 = vmul.f32 -1.442695, %v3488_v42 }
0x106d   :  { %5450 = vpow2.f32 %v3560_v35 }
0x106e   :  { %5452 = vpow2.f32 %v3561_v31 }
0x1077   :  { %v5451_v39 = vpop.eup %5450 }
0x1078   :  { %v3495_v29 = vadd.f32 1.0, %v5451_v39  ;;  %v5453_v49 = vpop.eup %5452 }
0x1079   :  { %v3496_v52 = vadd.f32 1.0, %v5453_v49 }
0x107a   :  { %5454 = vrcp.f32 %v3495_v29 }
0x1084   :  { %v5455_v19 = vpop.eup %5454 }
0x1085   :  { %v3502_v12 = vmul.f32 %v5455_v19, %v3501_v58 }
0x1087   :  { %v3503_v59 = vadd.f32 %v3502_v12, %v3297_v25 }
0x1089   :  { %5456 = vtanh.f32 %v3503_v59 }
0x108a   :  { %5458 = vrcp.f32 %v3496_v52 }
0x1093   :  { %v5457_v61 = vpop.eup %5456 }
0x1094   :  { %v3505_v51 = vsub.f32 %v3291_v30, %v5457_v61  ;;  %v5459_v33 = vpop.eup %5458 }
0x1096   :  { %v3506_v60 = vmul.f32 %v5459_v33, %v3505_v51 }
0x1098   :  { %v3507_v13 = vadd.f32 %v5457_v61, %v3506_v60 }
0x109a   :  { %3509 = vst [vmem:[#allocation8 + $0x78] sm:$0xff] %v3507_v13 }
0x109b   :  { %5517 = shalt.err (!%p5514_p6)
}
0x109c   :  { %s5518_s19 = scalar_lea.hbm %s6468_s3, 2048 }
0x109d   :  { %p5519_p7 = scmp.ne.s32.totalorder %s6468_s3, %s5518_s19  ;;  %p5522_p8 = scmp.lt.u32.totalorder %s5518_s19, %s6468_s3 }
0x109f   :  { %p5524_p9 = pnand %p5522_p8, %p5519_p7 }
0x10a1   :  { %5527 = shalt.err (!%p5524_p9)
}
0x10a2   :  { %s5542_s24 = smov 128   ;;  %s5543_s25 = smov 8  }
0x10a3   :  { %3522 = dma.vmem_to_hbm [thread:$0]  %s3517_s15, 2048, %s6468_s3, [#allocation5], %s5542_s24, %s5542_s24, %s5543_s25  }
0x10a4   :  { %5532 = dma.done.wait [#allocation5], 2048  }
0x10a5   :  { %5533 = vsyncadd [#allocation5], 4294965248 }
0x10a6   :  { %3526 = vsyncpa [#allocation4], 1 }
0x10a7   :  { %3527 = vsyncpa [#allocation7], 1 }
0x10a8   :  { %3528 = vsyncpa [#allocation5], 1 }

</bundles_post_ra>
